<compile_context>
chip_gen: v6e
topology: v6e:2x2x1
jax: 0.10.0
libtpu: 0.0.40
codegen_flags: <defaults>
</compile_context>

<pallas_src>
from functools import partial

import jax
import jax.numpy as jnp
from jax.experimental import pallas as pl
from jax.experimental.pallas import tpu as pltpu


# ----------------------------------------------------------------------------
# Fused kernel: single-layer LSTM (batch_first) over T steps for one block of
# `rows` independent sequences (transposed [*, rows] state layout), take h_T,
# then Linear (lane-dense, transposed, padded to out_pad rows).
# ----------------------------------------------------------------------------
def lstm_fc_kernel(x_ref, wih_ref, whh_ref, b_ref, wfc_ref, bfc_ref, out_ref, *,
                   t_steps, hidden, rows):
    # x_ref:   [D, t_steps * rows], column index = t * rows + r (time-major).
    # wih_ref: [4H, D]   whh_ref: [4H, H]   b_ref: [4H, 1]  (b_ih + b_hh folded)
    # wfc_ref: [out_pad, H]   bfc_ref: [out_pad, 1]
    # out_ref: [out_pad, rows]
    #
    # 1) Hoisted input projection for every (timestep, row) in one MXU call;
    #    bias broadcast-added once.  gates_x_all: [4H, T*rows].
    gates_x_all = (jnp.dot(wih_ref[...], x_ref[...],
                           preferred_element_type=jnp.float32)
                   + b_ref[...])

    h = jnp.zeros((hidden, rows), jnp.float32)
    c = jnp.zeros((hidden, rows), jnp.float32)

    def step(gx_t, h, c):
        # [4H, H] @ [H, rows] -> [4H, rows]; rows fill the MXU's streaming dim.
        gates = gx_t + jnp.dot(whh_ref[...], h,
                               preferred_element_type=jnp.float32)
        # Gate slices are sublane-aligned (row offsets 0, H, 2H, 3H): whole-vreg
        # picks, no lane shuffles.  PyTorch gate order: i, f, g, o.
        i_g = jax.nn.sigmoid(gates[0 * hidden:1 * hidden, :])
        f_g = jax.nn.sigmoid(gates[1 * hidden:2 * hidden, :])
        g_g = jnp.tanh(gates[2 * hidden:3 * hidden, :])
        o_g = jax.nn.sigmoid(gates[3 * hidden:4 * hidden, :])
        c = f_g * c + i_g * g_g
        h = o_g * jnp.tanh(c)
        return h, c

    if t_steps <= 16:
        # Small static T: full unroll; per-step gates_x slice is a static,
        # lane-aligned (multiple of 128) whole-vreg pick.
        for t in range(t_steps):
            h, c = step(gates_x_all[:, t * rows:(t + 1) * rows], h, c)
    else:
        # Long T: fori_loop bounds live ranges (avoids vreg spills from a huge
        # unrolled body) while keeping a visible loop for the scheduler.
        def body(t, carry):
            h, c = carry
            start = pl.multiple_of(t * rows, 128)
            gx_t = jax.lax.dynamic_slice_in_dim(gates_x_all, start, rows, axis=1)
            return step(gx_t, h, c)
        h, c = jax.lax.fori_loop(0, t_steps, body, (h, c))

    # 3) fc on the final hidden state, computed transposed so the store is an
    #    unmasked, lane-dense vst over `rows` lanes.
    out_ref[...] = (jnp.dot(wfc_ref[...], h, preferred_element_type=jnp.float32)
                    + bfc_ref[...])


# ----------------------------------------------------------------------------
# Wrapper: layout plumbing (padding, time-major column layout, weight
# transposes, final un-pad / permute) in plain JAX.
# ----------------------------------------------------------------------------
def lstm_baseline_forward(x, params, *, lstm_hidden, pred_seq_len, target_dim,
                          num_stations):
    N, T, D = x.shape
    if N == 0:
        return jnp.zeros((0, pred_seq_len, num_stations, target_dim),
                         jnp.float32)
    if N % num_stations != 0:
        raise ValueError(
            f"LSTM input batch {N} not div by num_stations {num_stations}")
    batch = N // num_stations
    four_h = 4 * lstm_hidden
    out_flat_dim = pred_seq_len * target_dim

    # ---- lane-dense padded sizes -------------------------------------------
    # Rows (independent sequences) live on the lane axis -> pad to x128.
    n_pad = ((N + 127) // 128) * 128
    # fc output rows padded to a multiple of 128 sublanes (zero-padded weights).
    out_pad = max(128, ((out_flat_dim + 127) // 128) * 128)

    # row_tile: largest multiple of 128 (<= 512) that divides n_pad.  Grid is a
    # few "parallel" steps: v7x megacore splits them; on v5e/v6e the extra-step
    # cost (~0.35us each) is negligible at this block size.
    m = n_pad // 128
    row_tile = 128
    for k in (4, 3, 2, 1):
        if m % k == 0:
            row_tile = 128 * k
            break
    n_blocks = n_pad // row_tile

    # ---- kernel-layout weights (transposed: [*, rows] math) -----------------
    w_ih_k = params["w_ih"].T.astype(jnp.float32)            # [4H, D]
    w_hh_k = params["w_hh"].T.astype(jnp.float32)            # [4H, H]
    b_k = params["b_lstm"].reshape(1, four_h).T.astype(jnp.float32)  # [4H, 1]
    w_fc_k = jnp.zeros((out_pad, lstm_hidden), jnp.float32)
    w_fc_k = w_fc_k.at[:out_flat_dim, :].set(params["w_fc"].T)
    b_fc_k = jnp.zeros((out_pad, 1), jnp.float32)
    b_fc_k = b_fc_k.at[:out_flat_dim, 0].set(
        params["b_fc"].reshape(out_flat_dim))

    # ---- time-major, block-contiguous x slab --------------------------------
    # x_cols[d, blk*(T*rt) + t*rt + r] = x[blk*rt + r, t, d]
    x_f32 = x.astype(jnp.float32)
    if n_pad != N:
        x_f32 = jnp.pad(x_f32, ((0, n_pad - N), (0, 0), (0, 0)))
    x_cols = (x_f32.reshape(n_blocks, row_tile, T, D)
              .transpose(3, 0, 2, 1)                 # [D, n_blocks, T, rt]
              .reshape(D, n_blocks * T * row_tile))

    out = pl.pallas_call(
        partial(lstm_fc_kernel, t_steps=T, hidden=lstm_hidden, rows=row_tile),
        out_shape=jax.ShapeDtypeStruct((out_pad, n_pad), jnp.float32),
        grid=(n_blocks,),
        in_specs=[
            pl.BlockSpec((D, T * row_tile), lambda i: (0, i)),
            pl.BlockSpec((four_h, D), lambda i: (0, 0)),
            pl.BlockSpec((four_h, lstm_hidden), lambda i: (0, 0)),
            pl.BlockSpec((four_h, 1), lambda i: (0, 0)),
            pl.BlockSpec((out_pad, lstm_hidden), lambda i: (0, 0)),
            pl.BlockSpec((out_pad, 1), lambda i: (0, 0)),
        ],
        out_specs=pl.BlockSpec((out_pad, row_tile), lambda i: (0, i)),
        compiler_params=pltpu.CompilerParams(
            dimension_semantics=("parallel",),
            # Explicit budget (usage is a few MiB): safe on v7x's 64 MiB part
            # and below v5e/v6e physical limits.
            vmem_limit_bytes=32 * 1024 * 1024),
    )(x_cols, w_ih_k, w_hh_k, b_k, w_fc_k, b_fc_k)

    # Un-pad + un-transpose, then the module's view/permute.
    preds_flat = out[:out_flat_dim, :N].T                     # [N, P*Tgt]
    return preds_flat.reshape(batch, num_stations, pred_seq_len,
                              target_dim).transpose(0, 2, 1, 3)


# ----------------------------------------------------------------------------
# Pure-JAX reference (mirrors torch.nn.LSTM + Linear + view/permute).
# ----------------------------------------------------------------------------
def lstm_baseline_reference(x, params, *, lstm_hidden, pred_seq_len,
                            target_dim, num_stations):
    N, T, _ = x.shape
    x = x.astype(jnp.float32)
    h = jnp.zeros((N, lstm_hidden), jnp.float32)
    c = jnp.zeros((N, lstm_hidden), jnp.float32)
    for t in range(T):
        gates = (x[:, t, :] @ params["w_ih"] + h @ params["w_hh"]
                 + params["b_lstm"])
        i_g = jax.nn.sigmoid(gates[:, 0 * lstm_hidden:1 * lstm_hidden])
        f_g = jax.nn.sigmoid(gates[:, 1 * lstm_hidden:2 * lstm_hidden])
        g_g = jnp.tanh(gates[:, 2 * lstm_hidden:3 * lstm_hidden])
        o_g = jax.nn.sigmoid(gates[:, 3 * lstm_hidden:4 * lstm_hidden])
        c = f_g * c + i_g * g_g
        h = o_g * jnp.tanh(c)
    flat = h @ params["w_fc"] + params["b_fc"]
    batch = N // num_stations
    return flat.reshape(batch, num_stations, pred_seq_len,
                        target_dim).transpose(0, 2, 1, 3)


if __name__ == "__main__":
    # Small shapes consistent with LSTMBaseline's forward:
    #   x_station_seq_batched: [batch * num_stations, seq_len, input_dim]
    batch, num_stations = 2, 8
    seq_len, input_dim = 8, 4
    lstm_hidden_dim = 32
    pred_seq_len, target_dim = 3, 2
    N = batch * num_stations           # 16 sequences

    key = jax.random.PRNGKey(0)
    ks = jax.random.split(key, 8)
    sc = 0.1
    params = {
        # nn.LSTM weights stored transposed for x @ W (PyTorch gate order i,f,g,o)
        "w_ih":   sc * jax.random.normal(ks[0], (input_dim, 4 * lstm_hidden_dim), jnp.float32),
        "w_hh":   sc * jax.random.normal(ks[1], (lstm_hidden_dim, 4 * lstm_hidden_dim), jnp.float32),
        "b_lstm": sc * jax.random.normal(ks[2], (1, 4 * lstm_hidden_dim), jnp.float32),  # b_ih + b_hh folded
        # nn.Linear(lstm_hidden, pred_seq_len * target_dim), stored transposed
        "w_fc":   sc * jax.random.normal(ks[3], (lstm_hidden_dim, pred_seq_len * target_dim), jnp.float32),
        "b_fc":   sc * jax.random.normal(ks[4], (1, pred_seq_len * target_dim), jnp.float32),
    }

    x_station_seq_batched = jax.random.normal(
        ks[5], (N, seq_len, input_dim), jnp.float32)

    out = lstm_baseline_forward(
        x_station_seq_batched, params,
        lstm_hidden=lstm_hidden_dim, pred_seq_len=pred_seq_len,
        target_dim=target_dim, num_stations=num_stations)
    out = jax.block_until_ready(out)

    assert out.shape == (batch, pred_seq_len, num_stations, target_dim)

    ref = lstm_baseline_reference(
        x_station_seq_batched, params,
        lstm_hidden=lstm_hidden_dim, pred_seq_len=pred_seq_len,
        target_dim=target_dim, num_stations=num_stations)
    ref = jax.block_until_ready(ref)
    assert bool(jnp.allclose(out, ref, rtol=1e-3, atol=1e-3)), \
        "Pallas LSTMBaseline output mismatch vs pure-JAX reference"

    print("KERNEL_OK")
</pallas_src>

<mosaic_0001>
module attributes {stable_mosaic.version = 11 : i64} {
  func.func @lstm_fc_kernel(%arg0: i32, %arg1: memref<4x1024xf32, #tpu.memory_space<vmem>>, %arg2: memref<128x4xf32, #tpu.memory_space<vmem>>, %arg3: memref<128x32xf32, #tpu.memory_space<vmem>>, %arg4: memref<128x1xf32, #tpu.memory_space<vmem>>, %arg5: memref<128x32xf32, #tpu.memory_space<vmem>>, %arg6: memref<128x1xf32, #tpu.memory_space<vmem>>, %arg7: memref<128x128xf32, #tpu.memory_space<vmem>>) attributes {dimension_semantics = [#tpu.dimension_semantics<parallel>], iteration_bounds = array<i64: 1>, scalar_prefetch = 0 : i64, scratch_operands = 0 : i64, tpu.core_type = #tpu.core_type<tc>, window_params = [{transform_indices = @transform_0, window_bounds = array<i64: 4, 1024>}, {pipeline_mode = #tpu.pipeline_mode<synchronous>, transform_indices = @transform_1, window_bounds = array<i64: 128, 4>}, {pipeline_mode = #tpu.pipeline_mode<synchronous>, transform_indices = @transform_2, window_bounds = array<i64: 128, 32>}, {pipeline_mode = #tpu.pipeline_mode<synchronous>, transform_indices = @transform_3, window_bounds = array<i64: 128, 1>}, {pipeline_mode = #tpu.pipeline_mode<synchronous>, transform_indices = @transform_4, window_bounds = array<i64: 128, 32>}, {pipeline_mode = #tpu.pipeline_mode<synchronous>, transform_indices = @transform_5, window_bounds = array<i64: 128, 1>}, {transform_indices = @transform_6, window_bounds = array<i64: 128, 128>}]} {
    %c0 = arith.constant 0 : index
    %c0_0 = arith.constant 0 : index
    %0 = vector.load %arg2[%c0, %c0_0] : memref<128x4xf32, #tpu.memory_space<vmem>>, vector<128x4xf32>
    %c0_1 = arith.constant 0 : index
    %c0_2 = arith.constant 0 : index
    %1 = vector.load %arg1[%c0_1, %c0_2] : memref<4x1024xf32, #tpu.memory_space<vmem>>, vector<4x1024xf32>
    %cst = arith.constant dense<0.000000e+00> : vector<128x1024xf32>
    %2 = tpu.matmul %0, %1, %cst {dimension_numbers = #tpu.dot_dimension_numbers<[1], [0], [0], [1], [0, 0, 1, 1], [], []>} : vector<128x4xf32>, vector<4x1024xf32>, vector<128x1024xf32> -> vector<128x1024xf32>
    %c0_3 = arith.constant 0 : index
    %c0_4 = arith.constant 0 : index
    %3 = vector.load %arg4[%c0_3, %c0_4] : memref<128x1xf32, #tpu.memory_space<vmem>>, vector<128x1xf32>
    %4 = vector.broadcast %3 : vector<128x1xf32> to vector<128x1024xf32>
    %5 = arith.addf %2, %4 : vector<128x1024xf32>
    %cst_5 = arith.constant 0.000000e+00 : f32
    %6 = vector.broadcast %cst_5 : f32 to vector<32x128xf32>
    %cst_6 = arith.constant 0.000000e+00 : f32
    %7 = vector.broadcast %cst_6 : f32 to vector<32x128xf32>
    %8 = vector.extract_strided_slice %5 {offsets = [0, 0], sizes = [128, 128], strides = [1, 1]} : vector<128x1024xf32> to vector<128x128xf32>
    %c0_7 = arith.constant 0 : index
    %c0_8 = arith.constant 0 : index
    %9 = vector.load %arg3[%c0_7, %c0_8] : memref<128x32xf32, #tpu.memory_space<vmem>>, vector<128x32xf32>
    %cst_9 = arith.constant dense<0.000000e+00> : vector<128x128xf32>
    %10 = tpu.matmul %9, %6, %cst_9 {dimension_numbers = #tpu.dot_dimension_numbers<[1], [0], [0], [1], [0, 0, 1, 1], [], []>} : vector<128x32xf32>, vector<32x128xf32>, vector<128x128xf32> -> vector<128x128xf32>
    %11 = arith.addf %8, %10 : vector<128x128xf32>
    %12 = vector.extract_strided_slice %11 {offsets = [0, 0], sizes = [32, 128], strides = [1, 1]} : vector<128x128xf32> to vector<32x128xf32>
    %13 = arith.negf %12 : vector<32x128xf32>
    %14 = math.exp %13 : vector<32x128xf32>
    %cst_10 = arith.constant 1.000000e+00 : f32
    %15 = vector.broadcast %cst_10 : f32 to vector<32x128xf32>
    %16 = arith.addf %15, %14 : vector<32x128xf32>
    %17 = arith.divf %15, %16 : vector<32x128xf32>
    %18 = vector.extract_strided_slice %11 {offsets = [32, 0], sizes = [32, 128], strides = [1, 1]} : vector<128x128xf32> to vector<32x128xf32>
    %19 = arith.negf %18 : vector<32x128xf32>
    %20 = math.exp %19 : vector<32x128xf32>
    %cst_11 = arith.constant 1.000000e+00 : f32
    %21 = vector.broadcast %cst_11 : f32 to vector<32x128xf32>
    %22 = arith.addf %21, %20 : vector<32x128xf32>
    %23 = arith.divf %21, %22 : vector<32x128xf32>
    %24 = vector.extract_strided_slice %11 {offsets = [64, 0], sizes = [32, 128], strides = [1, 1]} : vector<128x128xf32> to vector<32x128xf32>
    %25 = math.tanh %24 : vector<32x128xf32>
    %26 = vector.extract_strided_slice %11 {offsets = [96, 0], sizes = [32, 128], strides = [1, 1]} : vector<128x128xf32> to vector<32x128xf32>
    %27 = arith.negf %26 : vector<32x128xf32>
    %28 = math.exp %27 : vector<32x128xf32>
    %cst_12 = arith.constant 1.000000e+00 : f32
    %29 = vector.broadcast %cst_12 : f32 to vector<32x128xf32>
    %30 = arith.addf %29, %28 : vector<32x128xf32>
    %31 = arith.divf %29, %30 : vector<32x128xf32>
    %32 = arith.mulf %23, %7 : vector<32x128xf32>
    %33 = arith.mulf %17, %25 : vector<32x128xf32>
    %34 = arith.addf %32, %33 : vector<32x128xf32>
    %35 = math.tanh %34 : vector<32x128xf32>
    %36 = arith.mulf %31, %35 : vector<32x128xf32>
    %37 = vector.extract_strided_slice %5 {offsets = [0, 128], sizes = [128, 128], strides = [1, 1]} : vector<128x1024xf32> to vector<128x128xf32>
    %c0_13 = arith.constant 0 : index
    %c0_14 = arith.constant 0 : index
    %38 = vector.load %arg3[%c0_13, %c0_14] : memref<128x32xf32, #tpu.memory_space<vmem>>, vector<128x32xf32>
    %cst_15 = arith.constant dense<0.000000e+00> : vector<128x128xf32>
    %39 = tpu.matmul %38, %36, %cst_15 {dimension_numbers = #tpu.dot_dimension_numbers<[1], [0], [0], [1], [0, 0, 1, 1], [], []>} : vector<128x32xf32>, vector<32x128xf32>, vector<128x128xf32> -> vector<128x128xf32>
    %40 = arith.addf %37, %39 : vector<128x128xf32>
    %41 = vector.extract_strided_slice %40 {offsets = [0, 0], sizes = [32, 128], strides = [1, 1]} : vector<128x128xf32> to vector<32x128xf32>
    %42 = arith.negf %41 : vector<32x128xf32>
    %43 = math.exp %42 : vector<32x128xf32>
    %cst_16 = arith.constant 1.000000e+00 : f32
    %44 = vector.broadcast %cst_16 : f32 to vector<32x128xf32>
    %45 = arith.addf %44, %43 : vector<32x128xf32>
    %46 = arith.divf %44, %45 : vector<32x128xf32>
    %47 = vector.extract_strided_slice %40 {offsets = [32, 0], sizes = [32, 128], strides = [1, 1]} : vector<128x128xf32> to vector<32x128xf32>
    %48 = arith.negf %47 : vector<32x128xf32>
    %49 = math.exp %48 : vector<32x128xf32>
    %cst_17 = arith.constant 1.000000e+00 : f32
    %50 = vector.broadcast %cst_17 : f32 to vector<32x128xf32>
    %51 = arith.addf %50, %49 : vector<32x128xf32>
    %52 = arith.divf %50, %51 : vector<32x128xf32>
    %53 = vector.extract_strided_slice %40 {offsets = [64, 0], sizes = [32, 128], strides = [1, 1]} : vector<128x128xf32> to vector<32x128xf32>
    %54 = math.tanh %53 : vector<32x128xf32>
    %55 = vector.extract_strided_slice %40 {offsets = [96, 0], sizes = [32, 128], strides = [1, 1]} : vector<128x128xf32> to vector<32x128xf32>
    %56 = arith.negf %55 : vector<32x128xf32>
    %57 = math.exp %56 : vector<32x128xf32>
    %cst_18 = arith.constant 1.000000e+00 : f32
    %58 = vector.broadcast %cst_18 : f32 to vector<32x128xf32>
    %59 = arith.addf %58, %57 : vector<32x128xf32>
    %60 = arith.divf %58, %59 : vector<32x128xf32>
    %61 = arith.mulf %52, %34 : vector<32x128xf32>
    %62 = arith.mulf %46, %54 : vector<32x128xf32>
    %63 = arith.addf %61, %62 : vector<32x128xf32>
    %64 = math.tanh %63 : vector<32x128xf32>
    %65 = arith.mulf %60, %64 : vector<32x128xf32>
    %66 = vector.extract_strided_slice %5 {offsets = [0, 256], sizes = [128, 128], strides = [1, 1]} : vector<128x1024xf32> to vector<128x128xf32>
    %c0_19 = arith.constant 0 : index
    %c0_20 = arith.constant 0 : index
    %67 = vector.load %arg3[%c0_19, %c0_20] : memref<128x32xf32, #tpu.memory_space<vmem>>, vector<128x32xf32>
    %cst_21 = arith.constant dense<0.000000e+00> : vector<128x128xf32>
    %68 = tpu.matmul %67, %65, %cst_21 {dimension_numbers = #tpu.dot_dimension_numbers<[1], [0], [0], [1], [0, 0, 1, 1], [], []>} : vector<128x32xf32>, vector<32x128xf32>, vector<128x128xf32> -> vector<128x128xf32>
    %69 = arith.addf %66, %68 : vector<128x128xf32>
    %70 = vector.extract_strided_slice %69 {offsets = [0, 0], sizes = [32, 128], strides = [1, 1]} : vector<128x128xf32> to vector<32x128xf32>
    %71 = arith.negf %70 : vector<32x128xf32>
    %72 = math.exp %71 : vector<32x128xf32>
    %cst_22 = arith.constant 1.000000e+00 : f32
    %73 = vector.broadcast %cst_22 : f32 to vector<32x128xf32>
    %74 = arith.addf %73, %72 : vector<32x128xf32>
    %75 = arith.divf %73, %74 : vector<32x128xf32>
    %76 = vector.extract_strided_slice %69 {offsets = [32, 0], sizes = [32, 128], strides = [1, 1]} : vector<128x128xf32> to vector<32x128xf32>
    %77 = arith.negf %76 : vector<32x128xf32>
    %78 = math.exp %77 : vector<32x128xf32>
    %cst_23 = arith.constant 1.000000e+00 : f32
    %79 = vector.broadcast %cst_23 : f32 to vector<32x128xf32>
    %80 = arith.addf %79, %78 : vector<32x128xf32>
    %81 = arith.divf %79, %80 : vector<32x128xf32>
    %82 = vector.extract_strided_slice %69 {offsets = [64, 0], sizes = [32, 128], strides = [1, 1]} : vector<128x128xf32> to vector<32x128xf32>
    %83 = math.tanh %82 : vector<32x128xf32>
    %84 = vector.extract_strided_slice %69 {offsets = [96, 0], sizes = [32, 128], strides = [1, 1]} : vector<128x128xf32> to vector<32x128xf32>
    %85 = arith.negf %84 : vector<32x128xf32>
    %86 = math.exp %85 : vector<32x128xf32>
    %cst_24 = arith.constant 1.000000e+00 : f32
    %87 = vector.broadcast %cst_24 : f32 to vector<32x128xf32>
    %88 = arith.addf %87, %86 : vector<32x128xf32>
    %89 = arith.divf %87, %88 : vector<32x128xf32>
    %90 = arith.mulf %81, %63 : vector<32x128xf32>
    %91 = arith.mulf %75, %83 : vector<32x128xf32>
    %92 = arith.addf %90, %91 : vector<32x128xf32>
    %93 = math.tanh %92 : vector<32x128xf32>
    %94 = arith.mulf %89, %93 : vector<32x128xf32>
    %95 = vector.extract_strided_slice %5 {offsets = [0, 384], sizes = [128, 128], strides = [1, 1]} : vector<128x1024xf32> to vector<128x128xf32>
    %c0_25 = arith.constant 0 : index
    %c0_26 = arith.constant 0 : index
    %96 = vector.load %arg3[%c0_25, %c0_26] : memref<128x32xf32, #tpu.memory_space<vmem>>, vector<128x32xf32>
    %cst_27 = arith.constant dense<0.000000e+00> : vector<128x128xf32>
    %97 = tpu.matmul %96, %94, %cst_27 {dimension_numbers = #tpu.dot_dimension_numbers<[1], [0], [0], [1], [0, 0, 1, 1], [], []>} : vector<128x32xf32>, vector<32x128xf32>, vector<128x128xf32> -> vector<128x128xf32>
    %98 = arith.addf %95, %97 : vector<128x128xf32>
    %99 = vector.extract_strided_slice %98 {offsets = [0, 0], sizes = [32, 128], strides = [1, 1]} : vector<128x128xf32> to vector<32x128xf32>
    %100 = arith.negf %99 : vector<32x128xf32>
    %101 = math.exp %100 : vector<32x128xf32>
    %cst_28 = arith.constant 1.000000e+00 : f32
    %102 = vector.broadcast %cst_28 : f32 to vector<32x128xf32>
    %103 = arith.addf %102, %101 : vector<32x128xf32>
    %104 = arith.divf %102, %103 : vector<32x128xf32>
    %105 = vector.extract_strided_slice %98 {offsets = [32, 0], sizes = [32, 128], strides = [1, 1]} : vector<128x128xf32> to vector<32x128xf32>
    %106 = arith.negf %105 : vector<32x128xf32>
    %107 = math.exp %106 : vector<32x128xf32>
    %cst_29 = arith.constant 1.000000e+00 : f32
    %108 = vector.broadcast %cst_29 : f32 to vector<32x128xf32>
    %109 = arith.addf %108, %107 : vector<32x128xf32>
    %110 = arith.divf %108, %109 : vector<32x128xf32>
    %111 = vector.extract_strided_slice %98 {offsets = [64, 0], sizes = [32, 128], strides = [1, 1]} : vector<128x128xf32> to vector<32x128xf32>
    %112 = math.tanh %111 : vector<32x128xf32>
    %113 = vector.extract_strided_slice %98 {offsets = [96, 0], sizes = [32, 128], strides = [1, 1]} : vector<128x128xf32> to vector<32x128xf32>
    %114 = arith.negf %113 : vector<32x128xf32>
    %115 = math.exp %114 : vector<32x128xf32>
    %cst_30 = arith.constant 1.000000e+00 : f32
    %116 = vector.broadcast %cst_30 : f32 to vector<32x128xf32>
    %117 = arith.addf %116, %115 : vector<32x128xf32>
    %118 = arith.divf %116, %117 : vector<32x128xf32>
    %119 = arith.mulf %110, %92 : vector<32x128xf32>
    %120 = arith.mulf %104, %112 : vector<32x128xf32>
    %121 = arith.addf %119, %120 : vector<32x128xf32>
    %122 = math.tanh %121 : vector<32x128xf32>
    %123 = arith.mulf %118, %122 : vector<32x128xf32>
    %124 = vector.extract_strided_slice %5 {offsets = [0, 512], sizes = [128, 128], strides = [1, 1]} : vector<128x1024xf32> to vector<128x128xf32>
    %c0_31 = arith.constant 0 : index
    %c0_32 = arith.constant 0 : index
    %125 = vector.load %arg3[%c0_31, %c0_32] : memref<128x32xf32, #tpu.memory_space<vmem>>, vector<128x32xf32>
    %cst_33 = arith.constant dense<0.000000e+00> : vector<128x128xf32>
    %126 = tpu.matmul %125, %123, %cst_33 {dimension_numbers = #tpu.dot_dimension_numbers<[1], [0], [0], [1], [0, 0, 1, 1], [], []>} : vector<128x32xf32>, vector<32x128xf32>, vector<128x128xf32> -> vector<128x128xf32>
    %127 = arith.addf %124, %126 : vector<128x128xf32>
    %128 = vector.extract_strided_slice %127 {offsets = [0, 0], sizes = [32, 128], strides = [1, 1]} : vector<128x128xf32> to vector<32x128xf32>
    %129 = arith.negf %128 : vector<32x128xf32>
    %130 = math.exp %129 : vector<32x128xf32>
    %cst_34 = arith.constant 1.000000e+00 : f32
    %131 = vector.broadcast %cst_34 : f32 to vector<32x128xf32>
    %132 = arith.addf %131, %130 : vector<32x128xf32>
    %133 = arith.divf %131, %132 : vector<32x128xf32>
    %134 = vector.extract_strided_slice %127 {offsets = [32, 0], sizes = [32, 128], strides = [1, 1]} : vector<128x128xf32> to vector<32x128xf32>
    %135 = arith.negf %134 : vector<32x128xf32>
    %136 = math.exp %135 : vector<32x128xf32>
    %cst_35 = arith.constant 1.000000e+00 : f32
    %137 = vector.broadcast %cst_35 : f32 to vector<32x128xf32>
    %138 = arith.addf %137, %136 : vector<32x128xf32>
    %139 = arith.divf %137, %138 : vector<32x128xf32>
    %140 = vector.extract_strided_slice %127 {offsets = [64, 0], sizes = [32, 128], strides = [1, 1]} : vector<128x128xf32> to vector<32x128xf32>
    %141 = math.tanh %140 : vector<32x128xf32>
    %142 = vector.extract_strided_slice %127 {offsets = [96, 0], sizes = [32, 128], strides = [1, 1]} : vector<128x128xf32> to vector<32x128xf32>
    %143 = arith.negf %142 : vector<32x128xf32>
    %144 = math.exp %143 : vector<32x128xf32>
    %cst_36 = arith.constant 1.000000e+00 : f32
    %145 = vector.broadcast %cst_36 : f32 to vector<32x128xf32>
    %146 = arith.addf %145, %144 : vector<32x128xf32>
    %147 = arith.divf %145, %146 : vector<32x128xf32>
    %148 = arith.mulf %139, %121 : vector<32x128xf32>
    %149 = arith.mulf %133, %141 : vector<32x128xf32>
    %150 = arith.addf %148, %149 : vector<32x128xf32>
    %151 = math.tanh %150 : vector<32x128xf32>
    %152 = arith.mulf %147, %151 : vector<32x128xf32>
    %153 = vector.extract_strided_slice %5 {offsets = [0, 640], sizes = [128, 128], strides = [1, 1]} : vector<128x1024xf32> to vector<128x128xf32>
    %c0_37 = arith.constant 0 : index
    %c0_38 = arith.constant 0 : index
    %154 = vector.load %arg3[%c0_37, %c0_38] : memref<128x32xf32, #tpu.memory_space<vmem>>, vector<128x32xf32>
    %cst_39 = arith.constant dense<0.000000e+00> : vector<128x128xf32>
    %155 = tpu.matmul %154, %152, %cst_39 {dimension_numbers = #tpu.dot_dimension_numbers<[1], [0], [0], [1], [0, 0, 1, 1], [], []>} : vector<128x32xf32>, vector<32x128xf32>, vector<128x128xf32> -> vector<128x128xf32>
    %156 = arith.addf %153, %155 : vector<128x128xf32>
    %157 = vector.extract_strided_slice %156 {offsets = [0, 0], sizes = [32, 128], strides = [1, 1]} : vector<128x128xf32> to vector<32x128xf32>
    %158 = arith.negf %157 : vector<32x128xf32>
    %159 = math.exp %158 : vector<32x128xf32>
    %cst_40 = arith.constant 1.000000e+00 : f32
    %160 = vector.broadcast %cst_40 : f32 to vector<32x128xf32>
    %161 = arith.addf %160, %159 : vector<32x128xf32>
    %162 = arith.divf %160, %161 : vector<32x128xf32>
    %163 = vector.extract_strided_slice %156 {offsets = [32, 0], sizes = [32, 128], strides = [1, 1]} : vector<128x128xf32> to vector<32x128xf32>
    %164 = arith.negf %163 : vector<32x128xf32>
    %165 = math.exp %164 : vector<32x128xf32>
    %cst_41 = arith.constant 1.000000e+00 : f32
    %166 = vector.broadcast %cst_41 : f32 to vector<32x128xf32>
    %167 = arith.addf %166, %165 : vector<32x128xf32>
    %168 = arith.divf %166, %167 : vector<32x128xf32>
    %169 = vector.extract_strided_slice %156 {offsets = [64, 0], sizes = [32, 128], strides = [1, 1]} : vector<128x128xf32> to vector<32x128xf32>
    %170 = math.tanh %169 : vector<32x128xf32>
    %171 = vector.extract_strided_slice %156 {offsets = [96, 0], sizes = [32, 128], strides = [1, 1]} : vector<128x128xf32> to vector<32x128xf32>
    %172 = arith.negf %171 : vector<32x128xf32>
    %173 = math.exp %172 : vector<32x128xf32>
    %cst_42 = arith.constant 1.000000e+00 : f32
    %174 = vector.broadcast %cst_42 : f32 to vector<32x128xf32>
    %175 = arith.addf %174, %173 : vector<32x128xf32>
    %176 = arith.divf %174, %175 : vector<32x128xf32>
    %177 = arith.mulf %168, %150 : vector<32x128xf32>
    %178 = arith.mulf %162, %170 : vector<32x128xf32>
    %179 = arith.addf %177, %178 : vector<32x128xf32>
    %180 = math.tanh %179 : vector<32x128xf32>
    %181 = arith.mulf %176, %180 : vector<32x128xf32>
    %182 = vector.extract_strided_slice %5 {offsets = [0, 768], sizes = [128, 128], strides = [1, 1]} : vector<128x1024xf32> to vector<128x128xf32>
    %c0_43 = arith.constant 0 : index
    %c0_44 = arith.constant 0 : index
    %183 = vector.load %arg3[%c0_43, %c0_44] : memref<128x32xf32, #tpu.memory_space<vmem>>, vector<128x32xf32>
    %cst_45 = arith.constant dense<0.000000e+00> : vector<128x128xf32>
    %184 = tpu.matmul %183, %181, %cst_45 {dimension_numbers = #tpu.dot_dimension_numbers<[1], [0], [0], [1], [0, 0, 1, 1], [], []>} : vector<128x32xf32>, vector<32x128xf32>, vector<128x128xf32> -> vector<128x128xf32>
    %185 = arith.addf %182, %184 : vector<128x128xf32>
    %186 = vector.extract_strided_slice %185 {offsets = [0, 0], sizes = [32, 128], strides = [1, 1]} : vector<128x128xf32> to vector<32x128xf32>
    %187 = arith.negf %186 : vector<32x128xf32>
    %188 = math.exp %187 : vector<32x128xf32>
    %cst_46 = arith.constant 1.000000e+00 : f32
    %189 = vector.broadcast %cst_46 : f32 to vector<32x128xf32>
    %190 = arith.addf %189, %188 : vector<32x128xf32>
    %191 = arith.divf %189, %190 : vector<32x128xf32>
    %192 = vector.extract_strided_slice %185 {offsets = [32, 0], sizes = [32, 128], strides = [1, 1]} : vector<128x128xf32> to vector<32x128xf32>
    %193 = arith.negf %192 : vector<32x128xf32>
    %194 = math.exp %193 : vector<32x128xf32>
    %cst_47 = arith.constant 1.000000e+00 : f32
    %195 = vector.broadcast %cst_47 : f32 to vector<32x128xf32>
    %196 = arith.addf %195, %194 : vector<32x128xf32>
    %197 = arith.divf %195, %196 : vector<32x128xf32>
    %198 = vector.extract_strided_slice %185 {offsets = [64, 0], sizes = [32, 128], strides = [1, 1]} : vector<128x128xf32> to vector<32x128xf32>
    %199 = math.tanh %198 : vector<32x128xf32>
    %200 = vector.extract_strided_slice %185 {offsets = [96, 0], sizes = [32, 128], strides = [1, 1]} : vector<128x128xf32> to vector<32x128xf32>
    %201 = arith.negf %200 : vector<32x128xf32>
    %202 = math.exp %201 : vector<32x128xf32>
    %cst_48 = arith.constant 1.000000e+00 : f32
    %203 = vector.broadcast %cst_48 : f32 to vector<32x128xf32>
    %204 = arith.addf %203, %202 : vector<32x128xf32>
    %205 = arith.divf %203, %204 : vector<32x128xf32>
    %206 = arith.mulf %197, %179 : vector<32x128xf32>
    %207 = arith.mulf %191, %199 : vector<32x128xf32>
    %208 = arith.addf %206, %207 : vector<32x128xf32>
    %209 = math.tanh %208 : vector<32x128xf32>
    %210 = arith.mulf %205, %209 : vector<32x128xf32>
    %211 = vector.extract_strided_slice %5 {offsets = [0, 896], sizes = [128, 128], strides = [1, 1]} : vector<128x1024xf32> to vector<128x128xf32>
    %c0_49 = arith.constant 0 : index
    %c0_50 = arith.constant 0 : index
    %212 = vector.load %arg3[%c0_49, %c0_50] : memref<128x32xf32, #tpu.memory_space<vmem>>, vector<128x32xf32>
    %cst_51 = arith.constant dense<0.000000e+00> : vector<128x128xf32>
    %213 = tpu.matmul %212, %210, %cst_51 {dimension_numbers = #tpu.dot_dimension_numbers<[1], [0], [0], [1], [0, 0, 1, 1], [], []>} : vector<128x32xf32>, vector<32x128xf32>, vector<128x128xf32> -> vector<128x128xf32>
    %214 = arith.addf %211, %213 : vector<128x128xf32>
    %215 = vector.extract_strided_slice %214 {offsets = [0, 0], sizes = [32, 128], strides = [1, 1]} : vector<128x128xf32> to vector<32x128xf32>
    %216 = arith.negf %215 : vector<32x128xf32>
    %217 = math.exp %216 : vector<32x128xf32>
    %cst_52 = arith.constant 1.000000e+00 : f32
    %218 = vector.broadcast %cst_52 : f32 to vector<32x128xf32>
    %219 = arith.addf %218, %217 : vector<32x128xf32>
    %220 = arith.divf %218, %219 : vector<32x128xf32>
    %221 = vector.extract_strided_slice %214 {offsets = [32, 0], sizes = [32, 128], strides = [1, 1]} : vector<128x128xf32> to vector<32x128xf32>
    %222 = arith.negf %221 : vector<32x128xf32>
    %223 = math.exp %222 : vector<32x128xf32>
    %cst_53 = arith.constant 1.000000e+00 : f32
    %224 = vector.broadcast %cst_53 : f32 to vector<32x128xf32>
    %225 = arith.addf %224, %223 : vector<32x128xf32>
    %226 = arith.divf %224, %225 : vector<32x128xf32>
    %227 = vector.extract_strided_slice %214 {offsets = [64, 0], sizes = [32, 128], strides = [1, 1]} : vector<128x128xf32> to vector<32x128xf32>
    %228 = math.tanh %227 : vector<32x128xf32>
    %229 = vector.extract_strided_slice %214 {offsets = [96, 0], sizes = [32, 128], strides = [1, 1]} : vector<128x128xf32> to vector<32x128xf32>
    %230 = arith.negf %229 : vector<32x128xf32>
    %231 = math.exp %230 : vector<32x128xf32>
    %cst_54 = arith.constant 1.000000e+00 : f32
    %232 = vector.broadcast %cst_54 : f32 to vector<32x128xf32>
    %233 = arith.addf %232, %231 : vector<32x128xf32>
    %234 = arith.divf %232, %233 : vector<32x128xf32>
    %235 = arith.mulf %226, %208 : vector<32x128xf32>
    %236 = arith.mulf %220, %228 : vector<32x128xf32>
    %237 = arith.addf %235, %236 : vector<32x128xf32>
    %238 = math.tanh %237 : vector<32x128xf32>
    %239 = arith.mulf %234, %238 : vector<32x128xf32>
    %c0_55 = arith.constant 0 : index
    %c0_56 = arith.constant 0 : index
    %240 = vector.load %arg5[%c0_55, %c0_56] : memref<128x32xf32, #tpu.memory_space<vmem>>, vector<128x32xf32>
    %cst_57 = arith.constant dense<0.000000e+00> : vector<128x128xf32>
    %241 = tpu.matmul %240, %239, %cst_57 {dimension_numbers = #tpu.dot_dimension_numbers<[1], [0], [0], [1], [0, 0, 1, 1], [], []>} : vector<128x32xf32>, vector<32x128xf32>, vector<128x128xf32> -> vector<128x128xf32>
    %c0_58 = arith.constant 0 : index
    %c0_59 = arith.constant 0 : index
    %242 = vector.load %arg6[%c0_58, %c0_59] : memref<128x1xf32, #tpu.memory_space<vmem>>, vector<128x1xf32>
    %243 = vector.broadcast %242 : vector<128x1xf32> to vector<128x128xf32>
    %244 = arith.addf %241, %243 : vector<128x128xf32>
    %c0_60 = arith.constant 0 : index
    %c0_61 = arith.constant 0 : index
    %245 = vector.load %arg7[%c0_60, %c0_61] : memref<128x128xf32, #tpu.memory_space<vmem>>, vector<128x128xf32>
    tpu.vector_store %arg7[%c0_60, %c0_61], %244 {strides = array<i32>} : memref<128x128xf32, #tpu.memory_space<vmem>>, vector<128x128xf32>,
    return
  }
  func.func @transform_0(%arg0: i32) -> (i32, i32) {
    %c0_i32 = arith.constant 0 : i32
    %c0_i32_0 = arith.constant 0 : i32
    return %c0_i32, %arg0 : i32, i32
  }
  func.func @transform_1(%arg0: i32) -> (i32, i32) {
    %c0_i32 = arith.constant 0 : i32
    %c0_i32_0 = arith.constant 0 : i32
    %c0_i32_1 = arith.constant 0 : i32
    return %c0_i32, %c0_i32_0 : i32, i32
  }
  func.func @transform_2(%arg0: i32) -> (i32, i32) {
    %c0_i32 = arith.constant 0 : i32
    %c0_i32_0 = arith.constant 0 : i32
    %c0_i32_1 = arith.constant 0 : i32
    return %c0_i32, %c0_i32_0 : i32, i32
  }
  func.func @transform_3(%arg0: i32) -> (i32, i32) {
    %c0_i32 = arith.constant 0 : i32
    %c0_i32_0 = arith.constant 0 : i32
    %c0_i32_1 = arith.constant 0 : i32
    return %c0_i32, %c0_i32_0 : i32, i32
  }
  func.func @transform_4(%arg0: i32) -> (i32, i32) {
    %c0_i32 = arith.constant 0 : i32
    %c0_i32_0 = arith.constant 0 : i32
    %c0_i32_1 = arith.constant 0 : i32
    return %c0_i32, %c0_i32_0 : i32, i32
  }
  func.func @transform_5(%arg0: i32) -> (i32, i32) {
    %c0_i32 = arith.constant 0 : i32
    %c0_i32_0 = arith.constant 0 : i32
    %c0_i32_1 = arith.constant 0 : i32
    return %c0_i32, %c0_i32_0 : i32, i32
  }
  func.func @transform_6(%arg0: i32) -> (i32, i32) {
    %c0_i32 = arith.constant 0 : i32
    %c0_i32_0 = arith.constant 0 : i32
    return %c0_i32, %arg0 : i32, i32
  }
}

</mosaic_0001>

<bundles_post_ra>
// kernel: tpu_custom_call.1
= control target key start
LH: loop header
LB: loop body
LE: loop exit
PB: predicated region body
PF: predicated region fallthrough
CT: control target
= control target key end

     0   :  { %vm197_vm0 = vcmask 1043456   ;;  %v4666_v2 = vmov 0.0   ;;  %vm148_vm1 = vcmask 31744   ;;  %v4667_v5 = vmov 0   ;;  %s6314_s0 = inlined_call_operand.vmem [shape: f32[4,1024], index: 0, kind: input, shape index: {}]   ;;  %s6315_s1 = inlined_call_operand.vmem [shape: f32[128,4], index: 1, kind: input, shape index: {}]   ;;  %s6316_s2 = inlined_call_operand.vmem [shape: f32[128,32], index: 2, kind: input, shape index: {}]   ;;  %s6317_s3 = inlined_call_operand.vmem [shape: f32[128,1], index: 3, kind: input, shape index: {}]   ;;  %s6318_s4 = inlined_call_operand.vmem [shape: f32[128,32], index: 4, kind: input, shape index: {}]   ;;  %s6319_s5 = inlined_call_operand.vmem [shape: f32[128,1], index: 5, kind: input, shape index: {}]   ;;  %s6320_s6 = inlined_call_operand.hbm [shape: f32[128,128], index: 6, kind: output, shape index: {}]  }
   0x1   :  { %v40_v0 = vld [vmem:[%s6314_s0] sm:$0xff]  ;;  %278 = vmatprep.mubr.f32.mxu0 %v4666_v2  ;;  %350 = vmatprep.mubr.f32.mxu1 %v4666_v2  ;;  %v41_v6 = vld [vmem:[%s6314_s0 + $0x8] sm:$0xff]  ;;  %v42_v10 = vld [vmem:[%s6314_s0 + $0x10] sm:$0xff] }
   0x2   :  { %v144_v1 = vcombine.high %v40_v0, %v40_v0  ;;  %v4714_v3 = vld [vmem:[%s6315_s1] sm:$0xff]  ;;  %4094 = vset.pattern.permute.xlu0 %v4667_v5  ;;  %4095 = vset.pattern.permute.xlu1 %v4667_v5  ;;  %v145_v7 = vcombine.high %v41_v6, %v41_v6  ;;  %v4735_v8 = vld [vmem:[%s6315_s1 + $0x8] sm:$0xff]  ;;  %v47_v11 = vld [vmem:[%s6317_s3 + $0x18] sm:$0xff]  ;;  %v146_v12 = vcombine.high %v42_v10, %v42_v10 }
   0x3   :  { %v4719_v4 = vld [vmem:[%s6315_s1 + $0x60] sm:$0xff]  ;;  %v4742_v9 = vld [vmem:[%s6315_s1 + $0x68] sm:$0xff]  ;;  %77 = vperm.xlu0 %4094, %v47_v11   ;;  %v46_v13 = vld [vmem:[%s6317_s3 + $0x10] sm:$0xff] }
   0x4   :  { %3316 = vmatprep.subr.msk.mxu0 %vm197_vm0, %v144_v1  ;;  %4087 = vmatprep.subr.msk.mxu1 %vm197_vm0, %v144_v1  ;;  %v51_v14 = vld [vmem:[%s6317_s3 + $0x38] sm:$0xff]  ;;  %v50_v16 = vld [vmem:[%s6317_s3 + $0x30] sm:$0xff]  ;;  %v45_v20 = vld [vmem:[%s6317_s3 + $0x8] sm:$0xff] }
   0x5   :  { %3317 = vmatpush1.msk.msra.mxu0 %vm197_vm0, %v40_v0  ;;  %4088 = vmatpush1.msk.msra.mxu1 %vm197_vm0, %v40_v0  ;;  %v43_v15 = vld [vmem:[%s6314_s0 + $0x18] sm:$0xff]  ;;  %v4773_v17 = vld [vmem:[%s6315_s1 + $0x10] sm:$0xff]  ;;  %v49_v21 = vld [vmem:[%s6317_s3 + $0x28] sm:$0xff] }
   0x6   :  { %3318 = vmatmul.mubr.msk.f32.vlgmr.msra.gmra.mxu0 %vm148_vm1, %v4714_v3  ;;  %3330 = vmatmul.mubr.msk.f32.vlgmr.msra.gmra.mxu1 %vm148_vm1, %v4719_v4  ;;  %v4778_v18 = vld [vmem:[%s6315_s1 + $0x70] sm:$0xff]  ;;  %v147_v19 = vcombine.high %v43_v15, %v43_v15  ;;  %v4797_v22 = vld [vmem:[%s6315_s1 + $0x18] sm:$0xff] }
   0x7   :  { %284 = vmatprep.mubr.f32.mxu0 %v4666_v2  ;;  %356 = vmatprep.mubr.f32.mxu1 %v4666_v2  ;;  %v4802_v23 = vld [vmem:[%s6315_s1 + $0x78] sm:$0xff] }
   0x8   :  { %3334 = vmatprep.subr.msk.mxu1 %vm197_vm0, %v145_v7  ;;  %72 = vperm.xlu1 %4095, %v46_v13  }
   0x9   :  { %3335 = vmatpush1.msk.msra.mxu1 %vm197_vm0, %v41_v6  ;;  %3352 = vmatprep.subr.msk.mxu0 %vm197_vm0, %v146_v12 }
   0xa   :  { %3319 = vmatmul.mubr.msk.f32.gmra.mxu0 %vm148_vm1, %v4735_v8  ;;  %3331 = vmatmul.mubr.msk.f32.gmra.mxu1 %vm148_vm1, %v4742_v9 }
   0xb   :  { %290 = vmatprep.mubr.f32.mxu0 %v4666_v2  ;;  %362 = vmatprep.mubr.f32.mxu1 %v4666_v2 }
   0xc   :  { %97 = vperm.xlu0 %4094, %v51_v14   ;;  %3353 = vmatpush1.msk.msra.mxu0 %vm197_vm0, %v42_v10 }
   0xd   :  { %92 = vperm.xlu1 %4095, %v50_v16   ;;  %3370 = vmatprep.subr.msk.mxu1 %vm197_vm0, %v147_v19 }
   0xe   :  { %3320 = vmatmul.mubr.msk.f32.gmra.mxu0 %vm148_vm1, %v4773_v17  ;;  %3332 = vmatmul.mubr.msk.f32.gmra.mxu1 %vm148_vm1, %v4778_v18 }
   0xf   :  { %296 = vmatprep.mubr.f32.mxu0 %v4666_v2  ;;  %368 = vmatprep.mubr.f32.mxu1 %v4666_v2 }
  0x10   :  { %67 = vperm.xlu0 %4094, %v45_v20  }
  0x11   :  { %11 = vsyncpa [#allocation3], 0  ;;  %v44_v24 = vld [vmem:[%s6317_s3] sm:$0xff]  ;;  %87 = vperm.xlu1 %4095, %v49_v21   ;;  %3805 = vmatprep.subr.mxu0 %v4666_v2  ;;  %v55_v27 = vld [vmem:[%s6317_s3 + $0x58] sm:$0xff]  ;;  %vm874_vm2 = vcmask 261120  }
  0x12   :  { %3321 = vmatmul.mubr.msk.f32.gmra.mxu0 %vm148_vm1, %v4797_v22  ;;  %3333 = vmatmul.mubr.msk.f32.gmra.mxu1 %vm148_vm1, %v4802_v23  ;;  %v48_v25 = vld [vmem:[%s6317_s3 + $0x20] sm:$0xff]  ;;  %v59_v28 = vld [vmem:[%s6317_s3 + $0x78] sm:$0xff]  ;;  %v4838_v29 = vld [vmem:[%s6315_s1 + $0x28] sm:$0xff] }
  0x13   :  { %302 = vmatprep.mubr.f32.mxu0 %v4666_v2  ;;  %439 = vmatprep.mubr.f32.mxu1 %v4666_v2  ;;  %v4821_v26 = vld [vmem:[%s6315_s1 + $0x20] sm:$0xff]  ;;  %v54_v30 = vld [vmem:[%s6317_s3 + $0x50] sm:$0xff]  ;;  %v53_v33 = vld [vmem:[%s6317_s3 + $0x48] sm:$0xff] }
  0x14   :  { %62 = vperm.xlu0 %4094, %v44_v24   ;;  %v58_v31 = vld [vmem:[%s6317_s3 + $0x70] sm:$0xff]  ;;  %v57_v34 = vld [vmem:[%s6317_s3 + $0x68] sm:$0xff]  ;;  %v4873_v35 = vld [vmem:[%s6315_s1 + $0x38] sm:$0xff] }
  0x15   :  { %82 = vperm.xlu1 %4095, %v48_v25   ;;  %v4856_v32 = vld [vmem:[%s6315_s1 + $0x30] sm:$0xff]  ;;  %v52_v36 = vld [vmem:[%s6317_s3 + $0x40] sm:$0xff]  ;;  %v2996_v40 = vld [vmem:[%s6319_s5 + $0x8] sm:$0xff] }
  0x16   :  { %3322 = vmatmul.mubr.msk.f32.gmra.mxu0 %vm148_vm1, %v4821_v26  ;;  %3336 = vmatmul.mubr.msk.f32.vlgmr.msra.gmra.mxu1 %vm148_vm1, %v4714_v3  ;;  %v56_v37 = vld [vmem:[%s6317_s3 + $0x60] sm:$0xff]  ;;  %v4907_v41 = vld [vmem:[%s6315_s1 + $0x48] sm:$0xff]  ;;  %v2997_v42 = vld [vmem:[%s6319_s5 + $0x10] sm:$0xff] }
  0x17   :  { %308 = vmatprep.mubr.f32.mxu0 %v4666_v2  ;;  %445 = vmatprep.mubr.f32.mxu1 %v4666_v2  ;;  %v4890_v38 = vld [vmem:[%s6315_s1 + $0x40] sm:$0xff]  ;;  %v2998_v43 = vld [vmem:[%s6319_s5 + $0x18] sm:$0xff]  ;;  %v4924_v44 = vld [vmem:[%s6315_s1 + $0x50] sm:$0xff] }
  0x18   :  { %3371 = vmatpush1.msk.msra.mxu1 %vm197_vm0, %v43_v15  ;;  %117 = vperm.xlu0 %4094, %v55_v27   ;;  %v2995_v39 = vld [vmem:[%s6319_s5] sm:$0xff]  ;;  %v3000_v46 = vld [vmem:[%s6319_s5 + $0x28] sm:$0xff]  ;;  %v4941_v47 = vld [vmem:[%s6315_s1 + $0x58] sm:$0xff] }
  0x19   :  { %137 = vperm.xlu1 %4095, %v59_v28   ;;  %v2999_v45 = vld [vmem:[%s6319_s5 + $0x20] sm:$0xff]  ;;  %v3001_v48 = vld [vmem:[%s6319_s5 + $0x30] sm:$0xff]  ;;  %v3002_v49 = vld [vmem:[%s6319_s5 + $0x38] sm:$0xff] }
  0x1a   :  { %3323 = vmatmul.mubr.msk.f32.gmra.mxu0 %vm148_vm1, %v4838_v29  ;;  %3337 = vmatmul.mubr.msk.f32.gmra.mxu1 %vm148_vm1, %v4735_v8  ;;  %v3003_v50 = vld [vmem:[%s6319_s5 + $0x40] sm:$0xff]  ;;  %v3004_v51 = vld [vmem:[%s6319_s5 + $0x48] sm:$0xff]  ;;  %v3005_v52 = vld [vmem:[%s6319_s5 + $0x50] sm:$0xff] }
  0x1b   :  { %314 = vmatprep.mubr.f32.mxu0 %v4666_v2  ;;  %451 = vmatprep.mubr.f32.mxu1 %v4666_v2  ;;  %v3006_v53 = vld [vmem:[%s6319_s5 + $0x58] sm:$0xff]  ;;  %v3007_v54 = vld [vmem:[%s6319_s5 + $0x60] sm:$0xff]  ;;  %v3008_v55 = vld [vmem:[%s6319_s5 + $0x68] sm:$0xff] }
  0x1c   :  { %112 = vperm.xlu0 %4094, %v54_v30   ;;  %v3009_v56 = vld [vmem:[%s6319_s5 + $0x70] sm:$0xff]  ;;  %v3010_v57 = vld [vmem:[%s6319_s5 + $0x78] sm:$0xff]  ;;  %v5073_v58 = vld [vmem:[%s6316_s2] sm:$0xff] }
  0x1d   :  { %132 = vperm.xlu1 %4095, %v58_v31   ;;  %v5085_v59 = vld [vmem:[%s6316_s2 + $0x8] sm:$0xff]  ;;  %v5090_v60 = vld [vmem:[%s6316_s2 + $0x10] sm:$0xff]  ;;  %v5102_v61 = vld [vmem:[%s6316_s2 + $0x18] sm:$0xff] }
  0x1e   :  { %3324 = vmatmul.mubr.msk.f32.gmra.mxu0 %vm148_vm1, %v4856_v32  ;;  %3338 = vmatmul.mubr.msk.f32.gmra.mxu1 %vm148_vm1, %v4773_v17  ;;  %v5107_v62 = vld [vmem:[%s6316_s2 + $0x20] sm:$0xff]  ;;  %v5119_v63 = vld [vmem:[%s6316_s2 + $0x28] sm:$0xff]  ;;  %v5124_v0 = vld [vmem:[%s6316_s2 + $0x30] sm:$0xff] }
  0x1f   :  { %320 = vmatprep.mubr.f32.mxu0 %v4666_v2  ;;  %457 = vmatprep.mubr.f32.mxu1 %v4666_v2  ;;  %v5136_v1 = vld [vmem:[%s6316_s2 + $0x38] sm:$0xff]  ;;  %v5153_v5 = vld [vmem:[%s6316_s2 + $0x48] sm:$0xff]  ;;  %v5158_v6 = vld [vmem:[%s6316_s2 + $0x50] sm:$0xff] }
  0x20   :  { %107 = vperm.xlu0 %4094, %v53_v33   ;;  %v5170_v7 = vld [vmem:[%s6316_s2 + $0x58] sm:$0xff]  ;;  %v5192_v10 = vld [vmem:[%s6316_s2 + $0x70] sm:$0xff] }
  0x21   :  { %127 = vperm.xlu1 %4095, %v57_v34  }
  0x22   :  { %3325 = vmatmul.mubr.msk.f32.gmra.mxu0 %vm148_vm1, %v4873_v35  ;;  %3339 = vmatmul.mubr.msk.f32.gmra.mxu1 %vm148_vm1, %v4797_v22 }
  0x23   :  { %326 = vmatprep.mubr.f32.mxu0 %v4666_v2  ;;  %463 = vmatprep.mubr.f32.mxu1 %v4666_v2 }
  0x24   :  { %102 = vperm.xlu0 %4094, %v52_v36  }
  0x25   :  { %122 = vperm.xlu1 %4095, %v56_v37  }
  0x26   :  { %3326 = vmatmul.mubr.msk.f32.gmra.mxu0 %vm148_vm1, %v4890_v38  ;;  %3340 = vmatmul.mubr.msk.f32.gmra.mxu1 %vm148_vm1, %v4821_v26 }
  0x27   :  { %332 = vmatprep.mubr.f32.mxu0 %v4666_v2  ;;  %469 = vmatprep.mubr.f32.mxu1 %v4666_v2 }
  0x28   :  { %3013 = vperm.xlu0 %4094, %v2995_v39  }
  0x29   :  { %3018 = vperm.xlu1 %4095, %v2996_v40  }
  0x2a   :  { %3327 = vmatmul.mubr.msk.f32.gmra.mxu0 %vm148_vm1, %v4907_v41  ;;  %3341 = vmatmul.mubr.msk.f32.gmra.mxu1 %vm148_vm1, %v4838_v29 }
  0x2b   :  { %338 = vmatprep.mubr.f32.mxu0 %v4666_v2  ;;  %475 = vmatprep.mubr.f32.mxu1 %v4666_v2 }
  0x2c   :  { %3023 = vperm.xlu0 %4094, %v2997_v42  }
  0x2d   :  { %3028 = vperm.xlu1 %4095, %v2998_v43  }
  0x2e   :  { %3328 = vmatmul.mubr.msk.f32.gmra.mxu0 %vm148_vm1, %v4924_v44  ;;  %3342 = vmatmul.mubr.msk.f32.gmra.mxu1 %vm148_vm1, %v4856_v32 }
  0x2f   :  { %344 = vmatprep.mubr.f32.mxu0 %v4666_v2  ;;  %481 = vmatprep.mubr.f32.mxu1 %v4666_v2 }
  0x30   :  { %3033 = vperm.xlu0 %4094, %v2999_v45  }
  0x31   :  { %3038 = vperm.xlu1 %4095, %v3000_v46  }
  0x32   :  { %3329 = vmatmul.mubr.msk.f32.gmra.mxu0 %vm148_vm1, %v4941_v47  ;;  %3343 = vmatmul.mubr.msk.f32.gmra.mxu1 %vm148_vm1, %v4873_v35 }
  0x33   :  { %487 = vmatprep.mubr.f32.mxu1 %v4666_v2  ;;  %600 = vmatprep.mubr.f32.mxu0 %v4666_v2 }
  0x34   :  { %3043 = vperm.xlu0 %4094, %v3001_v48  }
  0x35   :  { %3048 = vperm.xlu1 %4095, %v3002_v49  }
  0x36   :  { %3344 = vmatmul.mubr.msk.f32.gmra.mxu1 %vm148_vm1, %v4890_v38  ;;  %3354 = vmatmul.mubr.msk.f32.vlgmr.msra.gmra.mxu0 %vm148_vm1, %v4714_v3 }
  0x37   :  { %493 = vmatprep.mubr.f32.mxu1 %v4666_v2  ;;  %606 = vmatprep.mubr.f32.mxu0 %v4666_v2 }
  0x38   :  { %3806 = vmatpush3.msra.mxu0 %v4666_v2  ;;  %3053 = vperm.xlu0 %4094, %v3003_v50  }
  0x39   :  { %3058 = vperm.xlu1 %4095, %v3004_v51  }
  0x3a   :  { %3345 = vmatmul.mubr.msk.f32.gmra.mxu1 %vm148_vm1, %v4907_v41  ;;  %3355 = vmatmul.mubr.msk.f32.gmra.mxu0 %vm148_vm1, %v4735_v8 }
  0x3b   :  { %499 = vmatprep.mubr.f32.mxu1 %v4666_v2  ;;  %612 = vmatprep.mubr.f32.mxu0 %v4666_v2 }
  0x3c   :  { %3063 = vperm.xlu0 %4094, %v3005_v52  }
  0x3d   :  { %3068 = vperm.xlu1 %4095, %v3006_v53  }
  0x3e   :  { %3346 = vmatmul.mubr.msk.f32.gmra.mxu1 %vm148_vm1, %v4924_v44  ;;  %3356 = vmatmul.mubr.msk.f32.gmra.mxu0 %vm148_vm1, %v4773_v17 }
  0x3f   :  { %505 = vmatprep.mubr.f32.mxu1 %v4666_v2  ;;  %618 = vmatprep.mubr.f32.mxu0 %v4666_v2 }
  0x40   :  { %3073 = vperm.xlu0 %4094, %v3007_v54  }
  0x41   :  { %3078 = vperm.xlu1 %4095, %v3008_v55  }
  0x42   :  { %3347 = vmatmul.mubr.msk.f32.gmra.mxu1 %vm148_vm1, %v4941_v47  ;;  %3357 = vmatmul.mubr.msk.f32.gmra.mxu0 %vm148_vm1, %v4797_v22 }
  0x43   :  { %511 = vmatprep.mubr.f32.mxu1 %v4666_v2  ;;  %624 = vmatprep.mubr.f32.mxu0 %v4666_v2 }
  0x44   :  { %3083 = vperm.xlu0 %4094, %v3009_v56  }
  0x45   :  { %3088 = vperm.xlu1 %4095, %v3010_v57  }
  0x46   :  { %3348 = vmatmul.mubr.msk.f32.gmra.mxu1 %vm148_vm1, %v4719_v4  ;;  %3358 = vmatmul.mubr.msk.f32.gmra.mxu0 %vm148_vm1, %v4821_v26 }
  0x47   :  { %517 = vmatprep.mubr.f32.mxu1 %v4666_v2  ;;  %630 = vmatprep.mubr.f32.mxu0 %v4666_v2 }
  0x4a   :  { %3349 = vmatmul.mubr.msk.f32.gmra.mxu1 %vm148_vm1, %v4742_v9  ;;  %3359 = vmatmul.mubr.msk.f32.gmra.mxu0 %vm148_vm1, %v4838_v29 }
  0x4b   :  { %523 = vmatprep.mubr.f32.mxu1 %v4666_v2  ;;  %636 = vmatprep.mubr.f32.mxu0 %v4666_v2 }
  0x4e   :  { %3350 = vmatmul.mubr.msk.f32.gmra.mxu1 %vm148_vm1, %v4778_v18  ;;  %3360 = vmatmul.mubr.msk.f32.gmra.mxu0 %vm148_vm1, %v4856_v32 }
  0x4f   :  { %529 = vmatprep.mubr.f32.mxu1 %v4666_v2  ;;  %642 = vmatprep.mubr.f32.mxu0 %v4666_v2 }
  0x52   :  { %3351 = vmatmul.mubr.msk.f32.gmra.mxu1 %vm148_vm1, %v4802_v23  ;;  %3361 = vmatmul.mubr.msk.f32.gmra.mxu0 %vm148_vm1, %v4873_v35 }
  0x53   :  { %648 = vmatprep.mubr.f32.mxu0 %v4666_v2  ;;  %761 = vmatprep.mubr.f32.mxu1 %v4666_v2 }
  0x56   :  { %3362 = vmatmul.mubr.msk.f32.gmra.mxu0 %vm148_vm1, %v4890_v38  ;;  %3372 = vmatmul.mubr.msk.f32.vlgmr.msra.gmra.mxu1 %vm148_vm1, %v4714_v3  ;;  %v5141_v3 = vld [vmem:[%s6316_s2 + $0x40] sm:$0xff] }
  0x57   :  { %654 = vmatprep.mubr.f32.mxu0 %v4666_v2  ;;  %767 = vmatprep.mubr.f32.mxu1 %v4666_v2 }
  0x5a   :  { %3363 = vmatmul.mubr.msk.f32.gmra.mxu0 %vm148_vm1, %v4907_v41  ;;  %3373 = vmatmul.mubr.msk.f32.gmra.mxu1 %vm148_vm1, %v4735_v8  ;;  %v5175_v8 = vld [vmem:[%s6316_s2 + $0x60] sm:$0xff] }
  0x5b   :  { %660 = vmatprep.mubr.f32.mxu0 %v4666_v2  ;;  %773 = vmatprep.mubr.f32.mxu1 %v4666_v2 }
  0x5e   :  { %3364 = vmatmul.mubr.msk.f32.gmra.mxu0 %vm148_vm1, %v4924_v44  ;;  %3374 = vmatmul.mubr.msk.f32.gmra.mxu1 %vm148_vm1, %v4773_v17 }
  0x5f   :  { %666 = vmatprep.mubr.f32.mxu0 %v4666_v2  ;;  %779 = vmatprep.mubr.f32.mxu1 %v4666_v2 }
  0x62   :  { %3365 = vmatmul.mubr.msk.f32.gmra.mxu0 %vm148_vm1, %v4941_v47  ;;  %3375 = vmatmul.mubr.msk.f32.gmra.mxu1 %vm148_vm1, %v4797_v22 }
  0x63   :  { %672 = vmatprep.mubr.f32.mxu0 %v4666_v2  ;;  %785 = vmatprep.mubr.f32.mxu1 %v4666_v2 }
  0x66   :  { %3366 = vmatmul.mubr.msk.f32.gmra.mxu0 %vm148_vm1, %v4719_v4  ;;  %3376 = vmatmul.mubr.msk.f32.gmra.mxu1 %vm148_vm1, %v4821_v26 }
  0x67   :  { %678 = vmatprep.mubr.f32.mxu0 %v4666_v2  ;;  %791 = vmatprep.mubr.f32.mxu1 %v4666_v2 }
  0x6a   :  { %3367 = vmatmul.mubr.msk.f32.gmra.mxu0 %vm148_vm1, %v4742_v9  ;;  %3377 = vmatmul.mubr.msk.f32.gmra.mxu1 %vm148_vm1, %v4838_v29 }
  0x6b   :  { %684 = vmatprep.mubr.f32.mxu0 %v4666_v2  ;;  %797 = vmatprep.mubr.f32.mxu1 %v4666_v2 }
  0x6e   :  { %3368 = vmatmul.mubr.msk.f32.gmra.mxu0 %vm148_vm1, %v4778_v18  ;;  %3378 = vmatmul.mubr.msk.f32.gmra.mxu1 %vm148_vm1, %v4856_v32 }
  0x6f   :  { %690 = vmatprep.mubr.f32.mxu0 %v4666_v2  ;;  %803 = vmatprep.mubr.f32.mxu1 %v4666_v2 }
  0x72   :  { %3369 = vmatmul.mubr.msk.f32.gmra.mxu0 %vm148_vm1, %v4802_v23  ;;  %3379 = vmatmul.mubr.msk.f32.gmra.mxu1 %vm148_vm1, %v4873_v35 }
  0x73   :  { %809 = vmatprep.mubr.f32.mxu1 %v4666_v2  ;;  %3807 = vmatprep.mubr.msk.f32.mxu0 %vm874_vm2, %v5073_v58 }
  0x76   :  { %3380 = vmatmul.mubr.msk.f32.gmra.mxu1 %vm148_vm1, %v4890_v38  ;;  %3808 = vmatmul.mubr.msk.f32.vlgmr.msra.gmra.mxu0 %vm874_vm2, %v5085_v59 }
  0x77   :  { %815 = vmatprep.mubr.f32.mxu1 %v4666_v2  ;;  %3810 = vmatprep.mubr.msk.f32.mxu0 %vm874_vm2, %v5090_v60 }
  0x7a   :  { %3381 = vmatmul.mubr.msk.f32.gmra.mxu1 %vm148_vm1, %v4907_v41  ;;  %3811 = vmatmul.mubr.msk.f32.gmra.mxu0 %vm874_vm2, %v5102_v61 }
  0x7b   :  { %821 = vmatprep.mubr.f32.mxu1 %v4666_v2  ;;  %3813 = vmatprep.mubr.msk.f32.mxu0 %vm874_vm2, %v5107_v62 }
  0x7e   :  { %3382 = vmatmul.mubr.msk.f32.gmra.mxu1 %vm148_vm1, %v4924_v44  ;;  %3814 = vmatmul.mubr.msk.f32.gmra.mxu0 %vm874_vm2, %v5119_v63  ;;  %v5300_v53 = vpop.permute.xlu0 %77 }
  0x7f   :  { %827 = vmatprep.mubr.f32.mxu1 %v4666_v2  ;;  %3816 = vmatprep.mubr.msk.f32.mxu0 %vm874_vm2, %v5124_v0 }
  0x82   :  { %3383 = vmatmul.mubr.msk.f32.gmra.mxu1 %vm148_vm1, %v4941_v47  ;;  %3817 = vmatmul.mubr.msk.f32.gmra.mxu0 %vm874_vm2, %v5136_v1 }
  0x83   :  { %833 = vmatprep.mubr.f32.mxu1 %v4666_v2  ;;  %3819 = vmatprep.mubr.msk.f32.mxu0 %vm874_vm2, %v5141_v3 }
  0x86   :  { %3384 = vmatmul.mubr.msk.f32.gmra.mxu1 %vm148_vm1, %v4719_v4  ;;  %3820 = vmatmul.mubr.msk.f32.gmra.mxu0 %vm874_vm2, %v5153_v5  ;;  %v5187_v4 = vld [vmem:[%s6316_s2 + $0x68] sm:$0xff] }
  0x87   :  { %839 = vmatprep.mubr.f32.mxu1 %v4666_v2  ;;  %3822 = vmatprep.mubr.msk.f32.mxu0 %vm874_vm2, %v5158_v6  ;;  %v5308_v57 = vpop.permute.xlu0 %97 }
  0x8a   :  { %3385 = vmatmul.mubr.msk.f32.gmra.mxu1 %vm148_vm1, %v4742_v9  ;;  %3823 = vmatmul.mubr.msk.f32.gmra.mxu0 %vm874_vm2, %v5170_v7  ;;  %v5204_v9 = vld [vmem:[%s6316_s2 + $0x78] sm:$0xff] }
  0x8b   :  { %845 = vmatprep.mubr.f32.mxu1 %v4666_v2  ;;  %3825 = vmatprep.mubr.msk.f32.mxu0 %vm874_vm2, %v5175_v8 }
  0x8e   :  { %3386 = vmatmul.mubr.msk.f32.gmra.mxu1 %vm148_vm1, %v4778_v18  ;;  %3826 = vmatmul.mubr.msk.f32.gmra.mxu0 %vm874_vm2, %v5187_v4 }
  0x8f   :  { %851 = vmatprep.mubr.f32.mxu1 %v4666_v2  ;;  %3828 = vmatprep.mubr.msk.f32.mxu0 %vm874_vm2, %v5192_v10 }
  0x92   :  { %3387 = vmatmul.mubr.msk.f32.gmra.mxu1 %vm148_vm1, %v4802_v23  ;;  %3829 = vmatmul.mubr.msk.f32.gmra.mxu0 %vm874_vm2, %v5204_v9 }
  0x93   :  { %3839 = vmatprep.mubr.msk.f32.mxu1 %vm874_vm2, %v5073_v58  ;;  %3871 = vmatprep.mubr.msk.f32.mxu0 %vm874_vm2, %v5073_v58 }
  0xc6   :  { %v5214_v2 = vpop.f32.mrf.mxu0 }
  0xc8   :  { %v5216_v11 = vpop.f32.mrf.mxu0 }
  0xca   :  { %v5218_v12 = vpop.f32.mrf.mxu0 }
  0xcc   :  { %v5220_v13 = vpop.f32.mrf.mxu0 }
  0xce   :  { %v5222_v14 = vpop.f32.mrf.mxu0 }
  0xd0   :  { %v5224_v15 = vpop.f32.mrf.mxu0 }
  0xd2   :  { %v5226_v16 = vpop.f32.mrf.mxu0 }
  0xd4   :  { %v5228_v17 = vpop.f32.mrf.mxu0 }
  0xd6   :  { %v5230_v18 = vpop.f32.mrf.mxu0 }
  0xd8   :  { %v5232_v19 = vpop.f32.mrf.mxu0 }
  0xda   :  { %v5234_v20 = vpop.f32.mrf.mxu0 }
  0xdc   :  { %v5236_v21 = vpop.f32.mrf.mxu0 }
  0xde   :  { %v5238_v22 = vpop.f32.mrf.mxu0 }
  0xe0   :  { %v5240_v23 = vpop.f32.mrf.mxu0 }
  0xe2   :  { %v5242_v24 = vpop.f32.mrf.mxu0 }
  0xe4   :  { %v5244_v25 = vpop.f32.mrf.mxu0 }
  0xe6   :  { %v5246_v26 = vpop.f32.mrf.mxu0 }
  0xe8   :  { %v5248_v27 = vpop.f32.mrf.mxu0 }
  0xea   :  { %v5250_v28 = vpop.f32.mrf.mxu0 }
  0xec   :  { %v5252_v29 = vpop.f32.mrf.mxu0 }
  0xee   :  { %v5254_v30 = vpop.f32.mrf.mxu0 }
  0xf0   :  { %v5256_v31 = vpop.f32.mrf.mxu0 }
  0xf1   :  { %6321 = vst [vmem:[#allocation5_spill] sm:$0xff] %v5256_v31 }
  0xf2   :  { %v5258_v32 = vpop.f32.mrf.mxu0 }
  0xf4   :  { %v5260_v33 = vpop.f32.mrf.mxu0 }
  0xf5   :  { %6322 = vst [vmem:[#allocation6_spill] sm:$0xff] %v5260_v33 }
  0xf6   :  { %v5262_v34 = vpop.f32.mrf.mxu0 }
  0xf7   :  { %6323 = vst [vmem:[#allocation7_spill] sm:$0xff] %v5262_v34 }
  0xf8   :  { %v5264_v35 = vpop.f32.mrf.mxu0 }
  0xf9   :  { %6324 = vst [vmem:[#allocation8_spill] sm:$0xff] %v5264_v35 }
  0xfa   :  { %v5266_v36 = vpop.f32.mrf.mxu0 }
  0xfb   :  { %6325 = vst [vmem:[#allocation9_spill] sm:$0xff] %v5266_v36 }
  0xfc   :  { %v5268_v37 = vpop.f32.mrf.mxu0 }
  0xfd   :  { %6326 = vst [vmem:[#allocation10_spill] sm:$0xff] %v5268_v37 }
  0xfe   :  { %v5270_v38 = vpop.f32.mrf.mxu0 }
  0xff   :  { %6327 = vst [vmem:[#allocation11_spill] sm:$0xff] %v5270_v38 }
 0x100   :  { %v5272_v39 = vpop.f32.mrf.mxu0 }
 0x101   :  { %6328 = vst [vmem:[#allocation12_spill] sm:$0xff] %v5272_v39  ;;  %v5320_v39 = vpop.permute.xlu1 %72 }
 0x102   :  { %v5274_v40 = vpop.f32.mrf.mxu0 }
 0x103   :  { %6329 = vst [vmem:[#allocation13_spill] sm:$0xff] %v5274_v40 }
 0x104   :  { %v5276_v41 = vpop.f32.mrf.mxu0 }
 0x105   :  { %6330 = vst [vmem:[#allocation14_spill] sm:$0xff] %v5276_v41  ;;  %v5322_v41 = vpop.permute.xlu0 %67 }
 0x106   :  { %v5278_v42 = vpop.f32.mrf.mxu0 }
 0x107   :  { %6331 = vst [vmem:[#allocation15_spill] sm:$0xff] %v5278_v42 }
 0x108   :  { %v5280_v43 = vpop.f32.mrf.mxu0 }
 0x109   :  { %6332 = vst [vmem:[#allocation16_spill] sm:$0xff] %v5280_v43  ;;  %v5312_v43 = vpop.f32.mrf.mxu1 }
 0x10a   :  { %v5282_v44 = vpop.f32.mrf.mxu0 }
 0x10b   :  { %6333 = vst [vmem:[#allocation17_spill] sm:$0xff] %v5282_v44 }
 0x10c   :  { %v5284_v45 = vpop.f32.mrf.mxu0 }
 0x10d   :  { %6334 = vst [vmem:[#allocation18_spill] sm:$0xff] %v5284_v45 }
 0x10e   :  { %v5286_v46 = vpop.f32.mrf.mxu0 }
 0x10f   :  { %6335 = vst [vmem:[#allocation19_spill] sm:$0xff] %v5286_v46 }
 0x110   :  { %v5288_v47 = vpop.f32.mrf.mxu0 }
 0x111   :  { %6336 = vst [vmem:[#allocation20_spill] sm:$0xff] %v5288_v47 }
 0x112   :  { %v5290_v48 = vpop.f32.mrf.mxu0 }
 0x113   :  { %6337 = vst [vmem:[#allocation21_spill] sm:$0xff] %v5290_v48 }
 0x114   :  { %v5292_v49 = vpop.f32.mrf.mxu0 }
 0x115   :  { %6338 = vst [vmem:[#allocation22_spill] sm:$0xff] %v5292_v49 }
 0x116   :  { %v5294_v50 = vpop.f32.mrf.mxu0 }
 0x117   :  { %6339 = vst [vmem:[#allocation23_spill] sm:$0xff] %v5294_v50 }
 0x118   :  { %v5296_v51 = vpop.f32.mrf.mxu0 }
 0x119   :  { %6340 = vst [vmem:[#allocation24_spill] sm:$0xff] %v5296_v51  ;;  %v5318_v51 = vpop.f32.mrf.mxu1 }
 0x11a   :  { %v5298_v52 = vpop.f32.mrf.mxu0  ;;  %6348 = vst [vmem:[#allocation32_spill] sm:$0xff] %v5318_v51 }
 0x11b   :  { %6341 = vst [vmem:[#allocation25_spill] sm:$0xff] %v5298_v52 }
 0x11c   :  { %v5302_v54 = vpop.f32.mrf.mxu0 }
 0x11d   :  { %6342 = vst [vmem:[#allocation26_spill] sm:$0xff] %v5302_v54 }
 0x11e   :  { %v5304_v55 = vpop.f32.mrf.mxu0 }
 0x11f   :  { %6343 = vst [vmem:[#allocation27_spill] sm:$0xff] %v5304_v55  ;;  %v5332_v55 = vpop.permute.xlu1 %92 }
 0x120   :  { %v5306_v56 = vpop.f32.mrf.mxu0 }
 0x121   :  { %6344 = vst [vmem:[#allocation28_spill] sm:$0xff] %v5306_v56  ;;  %v5328_v56 = vpop.f32.mrf.mxu1 }
 0x122   :  { %v5310_v47 = vpop.f32.mrf.mxu0 }
 0x123   :  { %6345 = vst [vmem:[#allocation29_spill] sm:$0xff] %v5310_v47  ;;  %v5334_v47 = vpop.permute.xlu0 %62 }
 0x124   :  { %v5314_v49 = vpop.f32.mrf.mxu0 }
 0x125   :  { %6346 = vst [vmem:[#allocation30_spill] sm:$0xff] %v5314_v49 }
 0x126   :  { %v5316_v45 = vpop.f32.mrf.mxu0 }
 0x127   :  { %6347 = vst [vmem:[#allocation31_spill] sm:$0xff] %v5316_v45  ;;  %v5338_v45 = vpop.f32.mrf.mxu1  ;;  %v5342_v52 = vpop.permute.xlu0 %117 }
 0x128   :  { %v5324_v54 = vpop.f32.mrf.mxu0  ;;  %6353 = vst [vmem:[#allocation37_spill] sm:$0xff] %v5338_v45 }
 0x129   :  { %6349 = vst [vmem:[#allocation33_spill] sm:$0xff] %v5324_v54  ;;  %v5346_v54 = vpop.f32.mrf.mxu1 }
 0x12a   :  { %v5326_v35 = vpop.f32.mrf.mxu0 }
 0x12b   :  { %6350 = vst [vmem:[#allocation34_spill] sm:$0xff] %v5326_v35  ;;  %v5348_v35 = vpop.permute.xlu1 %87  ;;  %v5356_v44 = vpop.f32.mrf.mxu1 }
 0x12c   :  { %v5330_v37 = vpop.f32.mrf.mxu0  ;;  %6357 = vst [vmem:[#allocation41_spill] sm:$0xff] %v5356_v44  ;;  %v5358_v38 = vpop.permute.xlu0 %112 }
 0x12d   :  { %6351 = vst [vmem:[#allocation35_spill] sm:$0xff] %v5330_v37  ;;  %v287_v37 = vadd.f32 %v5218_v12, %v5322_v41  ;;  %v293_v12 = vadd.f32 %v5222_v14, %v5320_v39  ;;  %v5366_v45 = vpop.f32.mrf.mxu1 }
 0x12e   :  { %v5336_v49 = vpop.f32.mrf.mxu0 }
 0x12f   :  { %6352 = vst [vmem:[#allocation36_spill] sm:$0xff] %v5336_v49  ;;  %v281_v49 = vadd.f32 %v5214_v2, %v5334_v47  ;;  %v5362_v34 = vpop.permute.xlu1 %82 }
 0x130   :  { %v5340_v50 = vpop.f32.mrf.mxu0  ;;  %v305_v14 = vadd.f32 %v5230_v18, %v5362_v34 }
 0x131   :  { %6354 = vst [vmem:[#allocation38_spill] sm:$0xff] %v5340_v50 }
 0x132   :  { %v5344_v46 = vpop.f32.mrf.mxu0 }
 0x133   :  { %6355 = vst [vmem:[#allocation39_spill] sm:$0xff] %v5344_v46  ;;  %v299_v46 = vadd.f32 %v5226_v16, %v5300_v53  ;;  %v5370_v31 = vpop.permute.xlu1 %137 }
 0x134   :  { %v5350_v48 = vpop.f32.mrf.mxu0 }
 0x135   :  { %6356 = vst [vmem:[#allocation40_spill] sm:$0xff] %v5350_v48 }
 0x136   :  { %v3809_v42 = vpop.f32.mrf.mxu0 }
 0x137   :  { %v1069_v50 = vadd.f32 %v3809_v42, %v287_v37  ;;  %v311_v42 = vadd.f32 %v5234_v20, %v5348_v35  ;;  %v323_v20 = vadd.f32 %v5242_v24, %v5308_v57 }
 0x138   :  { %v989_v40 = vpop.f32.mrf.mxu0 }
 0x139   :  { %v3405_v36 = vmul.f32 -1.442695, %v1069_v50  ;;  %v1068_v48 = vadd.f32 %v989_v40, %v281_v49  ;;  %v5372_v50 = vpop.permute.xlu0 %107  ;;  %v5374_v49 = vpop.f32.mrf.mxu1 }
 0x13a   :  { %v3812_v51 = vpop.f32.mrf.mxu0  ;;  %6358 = vst [vmem:[#allocation42_spill] sm:$0xff] %v5374_v49  ;;  %v5384_v49 = vpop.permute.xlu1 %132  ;;  %v335_v24 = vadd.f32 %v5250_v28, %v5372_v50 }
 0x13b   :  { %4100 = vpow2.f32 %v3405_v36  ;;  %v3404_v2 = vmul.f32 -1.442695, %v1068_v48  ;;  %v1071_v44 = vadd.f32 %v3812_v51, %v299_v46 }
 0x13c   :  { %v999_v37 = vpop.f32.mrf.mxu0 }
 0x13d   :  { %4102 = vpow2.f32 %v3404_v2  ;;  %v3407_v16 = vmul.f32 -1.442695, %v1071_v44  ;;  %v1070_v33 = vadd.f32 %v999_v37, %v293_v12  ;;  %v5380_v12 = vpop.f32.mrf.mxu1  ;;  %v317_v37 = vadd.f32 %v5238_v22, %v5332_v55 }
 0x13e   :  { %v3815_v40 = vpop.f32.mrf.mxu0  ;;  %6359 = vst [vmem:[#allocation43_spill] sm:$0xff] %v5380_v12 }
 0x13f   :  { %4104 = vpow2.f32 %v3407_v16  ;;  %v3406_v36 = vmul.f32 -1.442695, %v1070_v33  ;;  %v1073_v46 = vadd.f32 %v3815_v40, %v311_v42  ;;  %v5386_v33 = vpop.permute.xlu0 %102 }
 0x140   :  { %v1009_v48 = vpop.f32.mrf.mxu0  ;;  %v329_v22 = vadd.f32 %v5246_v26, %v5386_v33  ;;  %v341_v26 = vadd.f32 %v5254_v30, %v5358_v38 }
 0x141   :  { %4106 = vpow2.f32 %v3406_v36  ;;  %v3409_v51 = vmul.f32 -1.442695, %v1073_v46  ;;  %v1072_v2 = vadd.f32 %v1009_v48, %v305_v14  ;;  %v5390_v46 = vpop.f32.mrf.mxu1 }
 0x142   :  { %v3818_v44 = vpop.f32.mrf.mxu0  ;;  %6360 = vst [vmem:[#allocation44_spill] sm:$0xff] %v5390_v46 }
 0x143   :  { %4108 = vpow2.f32 %v3409_v51  ;;  %v3408_v18 = vmul.f32 -1.442695, %v1072_v2  ;;  %v1075_v16 = vadd.f32 %v3818_v44, %v323_v20  ;;  %v347_v44 = vadd.f32 %v5258_v32, %v5342_v52 }
 0x144   :  { %v1019_v42 = vpop.f32.mrf.mxu0 }
 0x145   :  { %4110 = vpow2.f32 %v3408_v18  ;;  %v3411_v40 = vmul.f32 -1.442695, %v1075_v16  ;;  %v1074_v14 = vadd.f32 %v1019_v42, %v317_v37  ;;  %v5396_v16 = vpop.permute.xlu1 %127  ;;  %v5398_v42 = vpop.f32.mrf.mxu1 }
 0x146   :  { %v3821_v36 = vpop.f32.mrf.mxu0  ;;  %6361 = vst [vmem:[#allocation45_spill] sm:$0xff] %v5398_v42 }
 0x147   :  { %4112 = vpow2.f32 %v3411_v40  ;;  %v3410_v48 = vmul.f32 -1.442695, %v1074_v14  ;;  %v1077_v51 = vadd.f32 %v3821_v36, %v335_v24 }
 0x148   :  { %v4101_v2 = vpop.eup %4100  ;;  %v1029_v20 = vpop.f32.mrf.mxu0 }
 0x149   :  { %v1097_v12 = vadd.f32 1.0, %v4101_v2  ;;  %4114 = vpow2.f32 %v3410_v48  ;;  %v1076_v28 = vadd.f32 %v1029_v20, %v329_v22  ;;  %v359_v22 = vadd.f32 %v5328_v56, %v5396_v16  ;;  %v5404_v20 = vpop.f32.mrf.mxu1 }
 0x14a   :  { %v4103_v18 = vpop.eup %4102  ;;  %4116 = vtanh.f32 %v1077_v51  ;;  %v3824_v37 = vpop.f32.mrf.mxu0  ;;  %6362 = vst [vmem:[#allocation46_spill] sm:$0xff] %v5404_v20  ;;  %v371_v56 = vadd.f32 %v5366_v45, %v5370_v31 }
 0x14b   :  { %4118 = vrcp.f32 %v1097_v12  ;;  %v1096_v24 = vadd.f32 1.0, %v4103_v18  ;;  %v1079_v40 = vadd.f32 %v3824_v37, %v347_v44  ;;  %v5406_v18 = vpop.permute.xlu1 %122 }
 0x14c   :  { %v4105_v14 = vpop.eup %4104  ;;  %4120 = vtanh.f32 %v1076_v28  ;;  %v1039_v36 = vpop.f32.mrf.mxu0  ;;  %v353_v37 = vadd.f32 %v5312_v43, %v5406_v18 }
 0x14d   :  { %4122 = vrcp.f32 %v1096_v24  ;;  %v1099_v32 = vadd.f32 1.0, %v4105_v14  ;;  %v1078_v48 = vadd.f32 %v1039_v36, %v341_v26  ;;  %v5412_v14 = vpop.f32.mrf.mxu1 }
 0x14e   :  { %v4107_v2 = vpop.eup %4106  ;;  %4124 = vtanh.f32 %v1079_v40  ;;  %v3827_v51 = vpop.f32.mrf.mxu0  ;;  %6363 = vst [vmem:[#allocation47_spill] sm:$0xff] %v5412_v14 }
 0x14f   :  { %4126 = vrcp.f32 %v1099_v32  ;;  %v1098_v46 = vadd.f32 1.0, %v4107_v2  ;;  %v1081_v30 = vadd.f32 %v3827_v51, %v359_v22 }
 0x150   :  { %v4109_v12 = vpop.eup %4108  ;;  %4128 = vtanh.f32 %v1078_v48  ;;  %v1049_v44 = vpop.f32.mrf.mxu0 }
 0x151   :  { %4130 = vrcp.f32 %v1098_v46  ;;  %v1121_v28 = vadd.f32 1.0, %v4109_v12  ;;  %v3413_v24 = vmul.f32 -1.442695, %v1081_v30  ;;  %v1080_v32 = vadd.f32 %v1049_v44, %v353_v37  ;;  %v5416_v30 = vpop.f32.mrf.mxu1 }
 0x152   :  { %v4111_v26 = vpop.eup %4110  ;;  %v3830_v40 = vpop.f32.mrf.mxu0  ;;  %v365_v46 = vadd.f32 %v5346_v54, %v5384_v49  ;;  %6364 = vst [vmem:[#allocation48_spill] sm:$0xff] %v5416_v30 }
 0x153   :  { %4132 = vrcp.f32 %v1121_v28  ;;  %v1120_v36 = vadd.f32 1.0, %v4111_v26  ;;  %v1083_v22 = vadd.f32 %v3830_v40, %v371_v56  ;;  %v3412_v28 = vmul.f32 -1.442695, %v1080_v32 }
 0x154   :  { %v4113_v2 = vpop.eup %4112  ;;  %v1059_v48 = vpop.f32.mrf.mxu0 }
 0x155   :  { %4134 = vrcp.f32 %v1120_v36  ;;  %v1123_v51 = vadd.f32 1.0, %v4113_v2  ;;  %v3415_v43 = vmul.f32 -1.442695, %v1083_v22  ;;  %v1082_v45 = vadd.f32 %v1059_v48, %v365_v46  ;;  %v5418_v36 = vpop.f32.mrf.mxu1 }
 0x156   :  { %v4115_v12 = vpop.eup %4114  ;;  %4136 = vpow2.f32 %v3413_v24  ;;  %6365 = vst [vmem:[#allocation49_spill] sm:$0xff] %v5418_v36 }
 0x157   :  { %v4117_v20 = vpop.eup %4116  ;;  %4138 = vrcp.f32 %v1123_v51  ;;  %v1122_v14 = vadd.f32 1.0, %v4115_v12  ;;  %v3414_v44 = vmul.f32 -1.442695, %v1082_v45  ;;  %v5420_v51 = vpop.f32.mrf.mxu1 }
 0x158   :  { %v4119_v26 = vpop.eup %4118  ;;  %4140 = vpow2.f32 %v3415_v43  ;;  %6366 = vst [vmem:[#allocation50_spill] sm:$0xff] %v5420_v51 }
 0x159   :  { %v4121_v37 = vpop.eup %4120  ;;  %4142 = vrcp.f32 %v1122_v14  ;;  %v1165_v56 = vmul.f32 %v4119_v26, %v4117_v20  ;;  %v5422_v14 = vpop.f32.mrf.mxu1 }
 0x15a   :  { %v4123_v54 = vpop.eup %4122  ;;  %4144 = vpow2.f32 %v3414_v44 }
 0x15b   :  { %v4125_v40 = vpop.eup %4124  ;;  %v1164_v22 = vmul.f32 %v4123_v54, %v4121_v37  ;;  %4146 = vpow2.f32 %v3412_v28  ;;  %v5428_v42 = vpop.f32.mrf.mxu1 }
 0x15c   :  { %v4127_v24 = vpop.eup %4126  ;;  %6367 = vst [vmem:[#allocation51_spill] sm:$0xff] %v5428_v42 }
 0x15d   :  { %v4129_v2 = vpop.eup %4128  ;;  %v1167_v46 = vmul.f32 %v4127_v24, %v4125_v40 }
 0x15e   :  { %v4131_v48 = vpop.eup %4130 }
 0x15f   :  { %v1166_v32 = vmul.f32 %v4131_v48, %v4129_v2 }
 0x160   :  { %v4133_v12 = vpop.eup %4132 }
 0x161   :  { %v1161_v43 = vmul.f32 0.0, %v4133_v12 }
 0x162   :  { %v4135_v45 = vpop.eup %4134 }
 0x163   :  { %v4137_v30 = vpop.eup %4136  ;;  %v1160_v20 = vmul.f32 0.0, %v4135_v45  ;;  %v5424_v26 = vadd.f32 %v1165_v56, %v1161_v43 }
 0x164   :  { %v4139_v44 = vpop.eup %4138  ;;  %v1149_v51 = vadd.f32 1.0, %v4137_v30 }
 0x165   :  { %v4141_v36 = vpop.eup %4140  ;;  %v1163_v37 = vmul.f32 0.0, %v4139_v44  ;;  %v5426_v28 = vadd.f32 %v1164_v22, %v1160_v20  ;;  %4148 = vtanh.f32 %v5424_v26  ;;  %v5436_v22 = vpop.f32.mrf.mxu1 }
 0x166   :  { %v4143_v54 = vpop.eup %4142  ;;  %v1151_v40 = vadd.f32 1.0, %v4141_v36 }
 0x167   :  { %v4145_v24 = vpop.eup %4144  ;;  %v1162_v2 = vmul.f32 0.0, %v4143_v54  ;;  %v5430_v48 = vadd.f32 %v1167_v46, %v1163_v37  ;;  %v5440_v46 = vpop.f32.mrf.mxu1 }
 0x168   :  { %v4147_v12 = vpop.eup %4146  ;;  %4150 = vrcp.f32 %v1151_v40  ;;  %v1150_v56 = vadd.f32 1.0, %v4145_v24  ;;  %6368 = vst [vmem:[#allocation52_spill] sm:$0xff] %v5440_v46 }
 0x169   :  { %v5433_v43 = vadd.f32 %v1166_v32, %v1162_v2  ;;  %4152 = vtanh.f32 %v5430_v48  ;;  %v1148_v36 = vadd.f32 1.0, %v4147_v12  ;;  %v5442_v45 = vpop.f32.mrf.mxu1 }
 0x16a   :  { %4154 = vrcp.f32 %v1150_v56 }
 0x16b   :  { %4156 = vtanh.f32 %v5433_v43  ;;  %v5444_v37 = vpop.f32.mrf.mxu1 }
 0x16c   :  { %4158 = vrcp.f32 %v1149_v51  ;;  %6369 = vst [vmem:[#allocation53_spill] sm:$0xff] %v5444_v37 }
 0x16d   :  { %4160 = vtanh.f32 %v5426_v28  ;;  %v5446_v51 = vpop.f32.mrf.mxu1 }
 0x16e   :  { %4162 = vrcp.f32 %v1148_v36 }
 0x16f   :  { %v5448_v46 = vpop.f32.mrf.mxu1 }
 0x172   :  { %v4149_v30 = vpop.eup %4148 }
 0x175   :  { %v4151_v20 = vpop.eup %4150 }
 0x176   :  { %v4153_v32 = vpop.eup %4152 }
 0x177   :  { %v4155_v44 = vpop.eup %4154  ;;  %v1179_v54 = vmul.f32 %v4153_v32, %v4151_v20  ;;  %v5454_v20 = vpop.f32.mrf.mxu1 }
 0x178   :  { %v4157_v40 = vpop.eup %4156 }
 0x179   :  { %v4159_v24 = vpop.eup %4158  ;;  %3831 = vmatprep.subr.mxu1 %v1179_v54  ;;  %v1178_v2 = vmul.f32 %v4157_v40, %v4155_v44 }
 0x17a   :  { %v4161_v12 = vpop.eup %4160  ;;  %3832 = vmatpush3.msra.mxu1 %v1179_v54  ;;  %v1177_v56 = vmul.f32 %v4159_v24, %v4149_v30  ;;  %v5460_v30 = vpop.f32.mrf.mxu1 }
 0x17b   :  { %3833 = vmatprep.subr.mxu1 %v1178_v2  ;;  %v4163_v36 = vpop.eup %4162  ;;  %6370 = vst [vmem:[#allocation54_spill] sm:$0xff] %v5460_v30 }
 0x17c   :  { %3834 = vmatpush3.msra.mxu1 %v1178_v2  ;;  %v1176_v42 = vmul.f32 %v4163_v36, %v4161_v12 }
 0x17d   :  { %3835 = vmatprep.subr.mxu1 %v1177_v56 }
 0x17e   :  { %3836 = vmatpush3.msra.mxu1 %v1177_v56 }
 0x17f   :  { %3837 = vmatprep.subr.mxu1 %v1176_v42 }
 0x180   :  { %3838 = vmatpush3.msra.mxu1 %v1176_v42 }
 0x181   :  { %3840 = vmatmul.mubr.msk.f32.vlgmr.msra.gmra.mxu1 %vm874_vm2, %v5085_v59  ;;  %v5466_v59 = vpop.f32.mrf.mxu1 }
 0x182   :  { %3842 = vmatprep.mubr.msk.f32.mxu1 %vm874_vm2, %v5090_v60 }
 0x183   :  { %v5472_v60 = vpop.f32.mrf.mxu1 }
 0x184   :  { %6371 = vst [vmem:[#allocation55_spill] sm:$0xff] %v5472_v60 }
 0x185   :  { %3843 = vmatmul.mubr.msk.f32.gmra.mxu1 %vm874_vm2, %v5102_v61  ;;  %v5478_v61 = vpop.f32.mrf.mxu1 }
 0x186   :  { %3845 = vmatprep.mubr.msk.f32.mxu1 %vm874_vm2, %v5107_v62 }
 0x187   :  { %v5484_v62 = vpop.f32.mrf.mxu1 }
 0x188   :  { %6372 = vst [vmem:[#allocation56_spill] sm:$0xff] %v5484_v62 }
 0x189   :  { %3846 = vmatmul.mubr.msk.f32.gmra.mxu1 %vm874_vm2, %v5119_v63  ;;  %v5490_v63 = vpop.f32.mrf.mxu1 }
 0x18a   :  { %3848 = vmatprep.mubr.msk.f32.mxu1 %vm874_vm2, %v5124_v0 }
 0x18b   :  { %v5496_v0 = vpop.f32.mrf.mxu1 }
 0x18c   :  { %6373 = vst [vmem:[#allocation57_spill] sm:$0xff] %v5496_v0 }
 0x18d   :  { %3849 = vmatmul.mubr.msk.f32.gmra.mxu1 %vm874_vm2, %v5136_v1  ;;  %v5498_v1 = vpop.f32.mrf.mxu1 }
 0x18e   :  { %3851 = vmatprep.mubr.msk.f32.mxu1 %vm874_vm2, %v5141_v3 }
 0x18f   :  { %v5500_v3 = vpop.f32.mrf.mxu1 }
 0x190   :  { %6374 = vst [vmem:[#allocation58_spill] sm:$0xff] %v5500_v3 }
 0x191   :  { %3852 = vmatmul.mubr.msk.f32.gmra.mxu1 %vm874_vm2, %v5153_v5  ;;  %v5502_v42 = vpop.f32.mrf.mxu1 }
 0x192   :  { %3854 = vmatprep.mubr.msk.f32.mxu1 %vm874_vm2, %v5158_v6 }
 0x193   :  { %v5504_v32 = vpop.f32.mrf.mxu1 }
 0x194   :  { %6375 = vst [vmem:[#allocation59_spill] sm:$0xff] %v5504_v32 }
 0x195   :  { %3855 = vmatmul.mubr.msk.f32.gmra.mxu1 %vm874_vm2, %v5170_v7  ;;  %v5506_v44 = vpop.f32.mrf.mxu1 }
 0x196   :  { %3857 = vmatprep.mubr.msk.f32.mxu1 %vm874_vm2, %v5175_v8 }
 0x197   :  { %v5508_v54 = vpop.f32.mrf.mxu1 }
 0x198   :  { %6376 = vst [vmem:[#allocation60_spill] sm:$0xff] %v5508_v54 }
 0x199   :  { %3858 = vmatmul.mubr.msk.f32.gmra.mxu1 %vm874_vm2, %v5187_v4  ;;  %v5510_v40 = vpop.f32.mrf.mxu1 }
 0x19a   :  { %3860 = vmatprep.mubr.msk.f32.mxu1 %vm874_vm2, %v5192_v10 }
 0x19b   :  { %v5512_v24 = vpop.f32.mrf.mxu1 }
 0x19c   :  { %6377 = vst [vmem:[#allocation61_spill] sm:$0xff] %v5512_v24 }
 0x19d   :  { %3861 = vmatmul.mubr.msk.f32.gmra.mxu1 %vm874_vm2, %v5204_v9  ;;  %v5514_v2 = vpop.f32.mrf.mxu1 }
 0x19e   :  { %3903 = vmatprep.mubr.msk.f32.mxu1 %vm874_vm2, %v5073_v58  ;;  %6378 = vst [vmem:[#allocation62_spill] sm:$0xff] %v5514_v2 }
 0x19f   :  { %v5516_v58 = vpop.f32.mrf.mxu1 }
 0x1a0   :  { %6379 = vst [vmem:[#allocation63_spill] sm:$0xff] %v5516_v58 }
 0x1a1   :  { %v5518_v12 = vpop.f32.mrf.mxu1 }
 0x1a2   :  { %6380 = vst [vmem:[#allocation64_spill] sm:$0xff] %v5518_v12 }
 0x1a3   :  { %v5520_v56 = vpop.f32.mrf.mxu1 }
 0x1a4   :  { %6381 = vst [vmem:[#allocation65_spill] sm:$0xff] %v5520_v56 }
 0x1a5   :  { %v5522_v36 = vpop.f32.mrf.mxu1 }
 0x1a6   :  { %6382 = vst [vmem:[#allocation66_spill] sm:$0xff] %v5522_v36 }
 0x1a7   :  { %v5524_v3 = vpop.f32.mrf.mxu1 }
 0x1a8   :  { %6383 = vst [vmem:[#allocation67_spill] sm:$0xff] %v5524_v3 }
 0x1a9   :  { %v5526_v32 = vpop.f32.mrf.mxu1 }
 0x1aa   :  { %6384 = vst [vmem:[#allocation68_spill] sm:$0xff] %v5526_v32 }
 0x1ab   :  { %v5528_v62 = vpop.f32.mrf.mxu1 }
 0x1ac   :  { %6385 = vst [vmem:[#allocation69_spill] sm:$0xff] %v5528_v62 }
 0x1ad   :  { %v5530_v54 = vpop.f32.mrf.mxu1 }
 0x1ae   :  { %6386 = vst [vmem:[#allocation70_spill] sm:$0xff] %v5530_v54 }
 0x1af   :  { %v5532_v0 = vpop.f32.mrf.mxu1 }
 0x1b0   :  { %6387 = vst [vmem:[#allocation71_spill] sm:$0xff] %v5532_v0 }
 0x1b1   :  { %v5534_v24 = vpop.f32.mrf.mxu1 }
 0x1b2   :  { %6388 = vst [vmem:[#allocation72_spill] sm:$0xff] %v5534_v24 }
 0x1b3   :  { %v5536_v2 = vpop.f32.mrf.mxu1 }
 0x1b4   :  { %6389 = vst [vmem:[#allocation73_spill] sm:$0xff] %v5536_v2 }
 0x1b5   :  { %v5538_v58 = vpop.f32.mrf.mxu1 }
 0x1b6   :  { %6390 = vst [vmem:[#allocation74_spill] sm:$0xff] %v5538_v58 }
 0x1b7   :  { %v5540_v12 = vpop.f32.mrf.mxu1 }
 0x1b8   :  { %6391 = vst [vmem:[#allocation75_spill] sm:$0xff] %v5540_v12 }
 0x1b9   :  { %v5542_v56 = vpop.f32.mrf.mxu1 }
 0x1ba   :  { %6392 = vst [vmem:[#allocation76_spill] sm:$0xff] %v5542_v56 }
 0x1bb   :  { %v5544_v36 = vpop.f32.mrf.mxu1 }
 0x1bc   :  { %6393 = vst [vmem:[#allocation77_spill] sm:$0xff] %v5544_v36 }
 0x1bd   :  { %v5546_v3 = vpop.f32.mrf.mxu1 }
 0x1be   :  { %6394 = vst [vmem:[#allocation78_spill] sm:$0xff] %v5546_v3 }
 0x1bf   :  { %v5548_v32 = vpop.f32.mrf.mxu1 }
 0x1c0   :  { %6395 = vst [vmem:[#allocation79_spill] sm:$0xff] %v5548_v32 }
 0x1c1   :  { %v5550_v62 = vpop.f32.mrf.mxu1 }
 0x1c2   :  { %6396 = vst [vmem:[#allocation80_spill] sm:$0xff] %v5550_v62 }
 0x1c3   :  { %v5552_v54 = vpop.f32.mrf.mxu1 }
 0x1c4   :  { %6397 = vst [vmem:[#allocation81_spill] sm:$0xff] %v5552_v54 }
 0x1c5   :  { %v5554_v0 = vpop.f32.mrf.mxu1 }
 0x1c6   :  { %6398 = vst [vmem:[#allocation82_spill] sm:$0xff] %v5554_v0 }
 0x1c7   :  { %v5556_v24 = vpop.f32.mrf.mxu1 }
 0x1c8   :  { %6399 = vst [vmem:[#allocation83_spill] sm:$0xff] %v5556_v24  ;;  %v289_v24 = vadd.f32 %v5220_v13, %v5322_v41  ;;  %v313_v13 = vadd.f32 %v5236_v21, %v5348_v35  ;;  %v319_v21 = vadd.f32 %v5240_v23, %v5332_v55 }
 0x1c9   :  { %v5558_v2 = vpop.f32.mrf.mxu1 }
 0x1ca   :  { %6400 = vst [vmem:[#allocation84_spill] sm:$0xff] %v5558_v2 }
 0x1cb   :  { %v5560_v58 = vpop.f32.mrf.mxu1 }
 0x1cc   :  { %6401 = vst [vmem:[#allocation85_spill] sm:$0xff] %v5560_v58 }
 0x1cd   :  { %v5562_v12 = vpop.f32.mrf.mxu1 }
 0x1ce   :  { %6402 = vst [vmem:[#allocation86_spill] sm:$0xff] %v5562_v12  ;;  %v283_v12 = vadd.f32 %v5216_v11, %v5334_v47 }
 0x1cf   :  { %v5564_v56 = vpop.f32.mrf.mxu1 }
 0x1d0   :  { %6403 = vst [vmem:[#allocation87_spill] sm:$0xff] %v5564_v56 }
 0x1d1   :  { %v5566_v36 = vpop.f32.mrf.mxu1 }
 0x1d2   :  { %6404 = vst [vmem:[#allocation88_spill] sm:$0xff] %v5566_v36 }
 0x1d3   :  { %v5568_v3 = vpop.f32.mrf.mxu1 }
 0x1d4   :  { %6405 = vst [vmem:[#allocation89_spill] sm:$0xff] %v5568_v3  ;;  %v301_v3 = vadd.f32 %v5228_v17, %v5300_v53  ;;  %v307_v17 = vadd.f32 %v5232_v19, %v5362_v34 }
 0x1d5   :  { %v5570_v32 = vpop.f32.mrf.mxu1 }
 0x1d6   :  { %6406 = vst [vmem:[#allocation90_spill] sm:$0xff] %v5570_v32 }
 0x1d7   :  { %v5572_v62 = vpop.f32.mrf.mxu1 }
 0x1d8   :  { %6407 = vst [vmem:[#allocation91_spill] sm:$0xff] %v5572_v62  ;;  %v295_v62 = vadd.f32 %v5224_v15, %v5320_v39  ;;  %v325_v15 = vadd.f32 %v5244_v25, %v5308_v57 }
 0x1d9   :  { %v5574_v54 = vpop.f32.mrf.mxu1 }
 0x1da   :  { %6408 = vst [vmem:[#allocation92_spill] sm:$0xff] %v5574_v54 }
 0x1db   :  { %v5576_v0 = vpop.f32.mrf.mxu1 }
 0x1dc   :  { %6409 = vst [vmem:[#allocation93_spill] sm:$0xff] %v5576_v0 }
 0x241   :  { %v3841_v58 = vpop.f32.mrf.mxu1 }
 0x242   :  { %v1326_v56 = vadd.f32 %v3841_v58, %v289_v24 }
 0x243   :  { %v1246_v2 = vpop.f32.mrf.mxu1 }
 0x244   :  { %v3433_v36 = vmul.f32 -1.442695, %v1326_v56  ;;  %v1325_v32 = vadd.f32 %v1246_v2, %v283_v12 }
 0x245   :  { %v3844_v30 = vpop.f32.mrf.mxu1 }
 0x246   :  { %4164 = vpow2.f32 %v3433_v36  ;;  %v3432_v0 = vmul.f32 -1.442695, %v1325_v32  ;;  %v1328_v54 = vadd.f32 %v3844_v30, %v301_v3  ;;  %v337_v36 = vadd.f32 %v5252_v29, %v5372_v50  ;;  %v6411_v29 = vld [vmem:[#allocation5_spill] sm:$0xff] }
 0x247   :  { %v1256_v60 = vpop.f32.mrf.mxu1 }
 0x248   :  { %4166 = vpow2.f32 %v3432_v0  ;;  %v3435_v11 = vmul.f32 -1.442695, %v1328_v54  ;;  %v1327_v24 = vadd.f32 %v1256_v60, %v295_v62 }
 0x249   :  { %v3847_v58 = vpop.f32.mrf.mxu1 }
 0x24a   :  { %4168 = vpow2.f32 %v3435_v11  ;;  %v3434_v2 = vmul.f32 -1.442695, %v1327_v24  ;;  %v1330_v12 = vadd.f32 %v3847_v58, %v313_v13  ;;  %v331_v24 = vadd.f32 %v5248_v27, %v5386_v33 }
 0x24b   :  { %v1266_v56 = vpop.f32.mrf.mxu1 }
 0x24c   :  { %4170 = vpow2.f32 %v3434_v2  ;;  %v3437_v30 = vmul.f32 -1.442695, %v1330_v12  ;;  %v1329_v3 = vadd.f32 %v1266_v56, %v307_v17  ;;  %v6410_v12 = vld [vmem:[#allocation6_spill] sm:$0xff] }
 0x24d   :  { %v3850_v32 = vpop.f32.mrf.mxu1  ;;  %v349_v56 = vadd.f32 %v6410_v12, %v5342_v52 }
 0x24e   :  { %4172 = vpow2.f32 %v3437_v30  ;;  %v3436_v60 = vmul.f32 -1.442695, %v1329_v3  ;;  %v1332_v62 = vadd.f32 %v3850_v32, %v325_v15 }
 0x24f   :  { %v1276_v0 = vpop.f32.mrf.mxu1 }
 0x250   :  { %4174 = vpow2.f32 %v3436_v60  ;;  %v3439_v19 = vmul.f32 -1.442695, %v1332_v62  ;;  %v1331_v54 = vadd.f32 %v1276_v0, %v319_v21  ;;  %v343_v21 = vadd.f32 %v6411_v29, %v5358_v38  ;;  %v6412_v0 = vld [vmem:[#allocation37_spill] sm:$0xff] }
 0x251   :  { %v3853_v13 = vpop.f32.mrf.mxu1  ;;  %v6415_v29 = vld [vmem:[#allocation41_spill] sm:$0xff] }
 0x252   :  { %4176 = vpow2.f32 %v3439_v19  ;;  %v3438_v25 = vmul.f32 -1.442695, %v1331_v54  ;;  %v1334_v58 = vadd.f32 %v3853_v13, %v337_v36  ;;  %v361_v19 = vadd.f32 %v6412_v0, %v5396_v16 }
 0x253   :  { %v4165_v11 = vpop.eup %4164  ;;  %v1286_v17 = vpop.f32.mrf.mxu1 }
 0x254   :  { %v1354_v23 = vadd.f32 1.0, %v4165_v11  ;;  %4178 = vpow2.f32 %v3438_v25  ;;  %v1333_v15 = vadd.f32 %v1286_v17, %v331_v24 }
 0x255   :  { %v4167_v2 = vpop.eup %4166  ;;  %v3856_v30 = vpop.f32.mrf.mxu1  ;;  %4180 = vtanh.f32 %v1334_v58  ;;  %v6413_v58 = vld [vmem:[#allocation32_spill] sm:$0xff] }
 0x256   :  { %v1353_v3 = vadd.f32 1.0, %v4167_v2  ;;  %v1336_v60 = vadd.f32 %v3856_v30, %v349_v56  ;;  %4182 = vrcp.f32 %v1354_v23  ;;  %v355_v12 = vadd.f32 %v6413_v58, %v5406_v18  ;;  %v6414_v23 = vld [vmem:[#allocation42_spill] sm:$0xff] }
 0x257   :  { %v4169_v32 = vpop.eup %4168  ;;  %v1296_v62 = vpop.f32.mrf.mxu1  ;;  %4184 = vtanh.f32 %v1333_v15  ;;  %v373_v56 = vadd.f32 %v6414_v23, %v5370_v31 }
 0x258   :  { %v1356_v27 = vadd.f32 1.0, %v4169_v32  ;;  %v1335_v36 = vadd.f32 %v1296_v62, %v343_v21  ;;  %4186 = vrcp.f32 %v1353_v3  ;;  %v367_v3 = vadd.f32 %v6415_v29, %v5384_v49 }
 0x259   :  { %v4171_v54 = vpop.eup %4170  ;;  %v3859_v13 = vpop.f32.mrf.mxu1  ;;  %4188 = vtanh.f32 %v1336_v60 }
 0x25a   :  { %v1338_v25 = vadd.f32 %v3859_v13, %v361_v19  ;;  %v1355_v24 = vadd.f32 1.0, %v4171_v54  ;;  %4190 = vrcp.f32 %v1356_v27 }
 0x25b   :  { %v4173_v11 = vpop.eup %4172  ;;  %v1306_v17 = vpop.f32.mrf.mxu1  ;;  %4192 = vtanh.f32 %v1335_v36 }
 0x25c   :  { %v1378_v2 = vadd.f32 1.0, %v4173_v11  ;;  %v3441_v32 = vmul.f32 -1.442695, %v1338_v25  ;;  %v1337_v62 = vadd.f32 %v1306_v17, %v355_v12 }
 0x25d   :  { %v4175_v30 = vpop.eup %4174  ;;  %v3862_v15 = vpop.f32.mrf.mxu1 }
 0x25e   :  { %4194 = vrcp.f32 %v1378_v2  ;;  %v1377_v21 = vadd.f32 1.0, %v4175_v30  ;;  %v1340_v60 = vadd.f32 %v3862_v15, %v373_v56  ;;  %v3440_v25 = vmul.f32 -1.442695, %v1337_v62 }
 0x25f   :  { %v4177_v0 = vpop.eup %4176  ;;  %4196 = vrcp.f32 %v1355_v24  ;;  %v1316_v27 = vpop.f32.mrf.mxu1 }
 0x260   :  { %4198 = vrcp.f32 %v1377_v21  ;;  %v1380_v19 = vadd.f32 1.0, %v4177_v0  ;;  %v3443_v54 = vmul.f32 -1.442695, %v1340_v60  ;;  %v1339_v13 = vadd.f32 %v1316_v27, %v367_v3 }
 0x261   :  { %v4179_v11 = vpop.eup %4178  ;;  %4200 = vpow2.f32 %v3441_v32 }
 0x262   :  { %4202 = vrcp.f32 %v1380_v19  ;;  %v1379_v36 = vadd.f32 1.0, %v4179_v11  ;;  %v3442_v58 = vmul.f32 -1.442695, %v1339_v13  ;;  %v4181_v23 = vpop.eup %4180 }
 0x263   :  { %4204 = vpow2.f32 %v3443_v54  ;;  %v4183_v2 = vpop.eup %4182 }
 0x264   :  { %4206 = vrcp.f32 %v1379_v36  ;;  %v4185_v17 = vpop.eup %4184  ;;  %v1422_v32 = vmul.f32 %v4183_v2, %v4181_v23 }
 0x265   :  { %4208 = vpow2.f32 %v3442_v58  ;;  %v4187_v12 = vpop.eup %4186 }
 0x266   :  { %4210 = vpow2.f32 %v3440_v25  ;;  %v4189_v24 = vpop.eup %4188  ;;  %v1421_v36 = vmul.f32 %v4187_v12, %v4185_v17 }
 0x267   :  { %v4191_v56 = vpop.eup %4190 }
 0x268   :  { %v4193_v30 = vpop.eup %4192  ;;  %v1424_v13 = vmul.f32 %v4191_v56, %v4189_v24 }
 0x26b   :  { %v4195_v15 = vpop.eup %4194 }
 0x26c   :  { %v4197_v29 = vpop.eup %4196  ;;  %v1418_v3 = vmul.f32 %v4195_v15, %v5424_v26 }
 0x26d   :  { %v4199_v21 = vpop.eup %4198  ;;  %v1423_v23 = vmul.f32 %v4197_v29, %v4193_v30 }
 0x26e   :  { %v4201_v60 = vpop.eup %4200  ;;  %v5611_v62 = vadd.f32 %v1422_v32, %v1418_v3  ;;  %v1417_v19 = vmul.f32 %v4199_v21, %v5426_v28 }
 0x26f   :  { %v4203_v0 = vpop.eup %4202  ;;  %v1406_v15 = vadd.f32 1.0, %v4201_v60 }
 0x270   :  { %v4205_v27 = vpop.eup %4204  ;;  %v1420_v54 = vmul.f32 %v4203_v0, %v5430_v48  ;;  %4212 = vtanh.f32 %v5611_v62  ;;  %v5619_v32 = vadd.f32 %v1421_v36, %v1417_v19  ;;  %v5650_v36 = vld [vmem:[%s6316_s2 + $0x20] sm:$0xff] }
 0x271   :  { %v4207_v11 = vpop.eup %4206  ;;  %v1408_v25 = vadd.f32 1.0, %v4205_v27 }
 0x272   :  { %v4209_v58 = vpop.eup %4208  ;;  %v5615_v37 = vadd.f32 %v1424_v13, %v1420_v54  ;;  %v1419_v26 = vmul.f32 %v4207_v11, %v5433_v43  ;;  %v5629_v54 = vld [vmem:[%s6316_s2 + $0x8] sm:$0xff]  ;;  %v5636_v13 = vld [vmem:[%s6316_s2 + $0x10] sm:$0xff]  ;;  %v5643_v11 = vld [vmem:[%s6316_s2 + $0x18] sm:$0xff] }
 0x273   :  { %v4211_v2 = vpop.eup %4210  ;;  %4214 = vrcp.f32 %v1408_v25  ;;  %v1407_v3 = vadd.f32 1.0, %v4209_v58  ;;  %v5657_v25 = vld [vmem:[%s6316_s2 + $0x28] sm:$0xff]  ;;  %v5664_v58 = vld [vmem:[%s6316_s2 + $0x30] sm:$0xff] }
 0x274   :  { %v5621_v28 = vadd.f32 %v1423_v23, %v1419_v26  ;;  %4216 = vtanh.f32 %v5615_v37  ;;  %v1405_v48 = vadd.f32 1.0, %v4211_v2  ;;  %v5671_v26 = vld [vmem:[%s6316_s2 + $0x38] sm:$0xff]  ;;  %v5678_v23 = vld [vmem:[%s6316_s2 + $0x40] sm:$0xff] }
 0x275   :  { %4218 = vrcp.f32 %v1407_v3  ;;  %v6418_v3 = vld [vmem:[#allocation49_spill] sm:$0xff] }
 0x276   :  { %4220 = vtanh.f32 %v5621_v28 }
 0x277   :  { %4222 = vrcp.f32 %v1406_v15 }
 0x278   :  { %4224 = vtanh.f32 %v5619_v32 }
 0x279   :  { %4226 = vrcp.f32 %v1405_v48 }
 0x27d   :  { %v4213_v43 = vpop.eup %4212 }
 0x280   :  { %v4215_v17 = vpop.eup %4214 }
 0x281   :  { %v4217_v12 = vpop.eup %4216 }
 0x282   :  { %v4219_v24 = vpop.eup %4218  ;;  %v1436_v56 = vmul.f32 %v4217_v12, %v4215_v17  ;;  %v6419_v12 = vld [vmem:[#allocation47_spill] sm:$0xff] }
 0x283   :  { %v4221_v30 = vpop.eup %4220 }
 0x284   :  { %v4223_v29 = vpop.eup %4222  ;;  %3863 = vmatprep.subr.mxu0 %v1436_v56  ;;  %v1435_v21 = vmul.f32 %v4221_v30, %v4219_v24  ;;  %v454_v24 = vadd.f32 %v6419_v12, %v5320_v39 }
 0x285   :  { %v4225_v60 = vpop.eup %4224  ;;  %3864 = vmatpush3.msra.mxu0 %v1436_v56  ;;  %v1434_v0 = vmul.f32 %v4223_v29, %v4213_v43 }
 0x286   :  { %3865 = vmatprep.subr.mxu0 %v1435_v21  ;;  %v4227_v27 = vpop.eup %4226 }
 0x287   :  { %3866 = vmatpush3.msra.mxu0 %v1435_v21  ;;  %v1433_v19 = vmul.f32 %v4227_v27, %v4225_v60  ;;  %v472_v21 = vadd.f32 %v5436_v22, %v5348_v35  ;;  %v478_v22 = vadd.f32 %v5442_v45, %v5332_v55  ;;  %v508_v45 = vadd.f32 %v5490_v63, %v5342_v52 }
 0x288   :  { %3867 = vmatprep.subr.mxu0 %v1434_v0  ;;  %v520_v63 = vadd.f32 %v5502_v42, %v5396_v16 }
 0x289   :  { %3868 = vmatpush3.msra.mxu0 %v1434_v0 }
 0x28a   :  { %3869 = vmatprep.subr.mxu0 %v1433_v19 }
 0x28b   :  { %3870 = vmatpush3.msra.mxu0 %v1433_v19  ;;  %v466_v19 = vadd.f32 %v5422_v14, %v5362_v34  ;;  %v496_v14 = vadd.f32 %v5466_v59, %v5372_v50 }
 0x28c   :  { %3872 = vmatmul.mubr.msk.f32.vlgmr.msra.gmra.mxu0 %vm874_vm2, %v5629_v54 }
 0x28d   :  { %3874 = vmatprep.mubr.msk.f32.mxu0 %vm874_vm2, %v5636_v13 }
 0x290   :  { %3875 = vmatmul.mubr.msk.f32.gmra.mxu0 %vm874_vm2, %v5643_v11 }
 0x291   :  { %3877 = vmatprep.mubr.msk.f32.mxu0 %vm874_vm2, %v5650_v36 }
 0x294   :  { %3878 = vmatmul.mubr.msk.f32.gmra.mxu0 %vm874_vm2, %v5657_v25 }
 0x295   :  { %3880 = vmatprep.mubr.msk.f32.mxu0 %vm874_vm2, %v5664_v58 }
 0x298   :  { %3881 = vmatmul.mubr.msk.f32.gmra.mxu0 %vm874_vm2, %v5671_v26 }
 0x299   :  { %3883 = vmatprep.mubr.msk.f32.mxu0 %vm874_vm2, %v5678_v23 }
 0x29c   :  { %3884 = vmatmul.mubr.msk.f32.gmra.mxu0 %vm874_vm2, %v5153_v5  ;;  %v5699_v5 = vld [vmem:[%s6316_s2] sm:$0xff] }
 0x29d   :  { %3886 = vmatprep.mubr.msk.f32.mxu0 %vm874_vm2, %v5158_v6  ;;  %v6416_v6 = vld [vmem:[#allocation45_spill] sm:$0xff] }
 0x2a0   :  { %3887 = vmatmul.mubr.msk.f32.gmra.mxu0 %vm874_vm2, %v5170_v7  ;;  %v448_v7 = vadd.f32 %v6416_v6, %v5322_v41 }
 0x2a1   :  { %3889 = vmatprep.mubr.msk.f32.mxu0 %vm874_vm2, %v5175_v8 }
 0x2a4   :  { %3890 = vmatmul.mubr.msk.f32.gmra.mxu0 %vm874_vm2, %v5187_v4  ;;  %v6417_v4 = vld [vmem:[#allocation43_spill] sm:$0xff] }
 0x2a5   :  { %3892 = vmatprep.mubr.msk.f32.mxu0 %vm874_vm2, %v5192_v10  ;;  %v442_v2 = vadd.f32 %v6417_v4, %v5334_v47  ;;  %v484_v4 = vadd.f32 %v5446_v51, %v5308_v57  ;;  %v490_v51 = vadd.f32 %v5454_v20, %v5386_v33 }
 0x2a8   :  { %3893 = vmatmul.mubr.msk.f32.gmra.mxu0 %vm874_vm2, %v5204_v9  ;;  %v460_v9 = vadd.f32 %v6418_v3, %v5300_v53 }
 0x2a9   :  { %3935 = vmatprep.mubr.msk.f32.mxu0 %vm874_vm2, %v5699_v5 }
 0x34c   :  { %v3873_v8 = vpop.f32.mrf.mxu0 }
 0x34d   :  { %v1583_v15 = vadd.f32 %v3873_v8, %v448_v7 }
 0x34e   :  { %v1503_v10 = vpop.f32.mrf.mxu0 }
 0x34f   :  { %v3461_v48 = vmul.f32 -1.442695, %v1583_v15  ;;  %v1582_v43 = vadd.f32 %v1503_v10, %v442_v2 }
 0x350   :  { %v3876_v17 = vpop.f32.mrf.mxu0 }
 0x351   :  { %4228 = vpow2.f32 %v3461_v48  ;;  %v3460_v56 = vmul.f32 -1.442695, %v1582_v43  ;;  %v1585_v30 = vadd.f32 %v3876_v17, %v460_v9 }
 0x352   :  { %v1513_v29 = vpop.f32.mrf.mxu0 }
 0x353   :  { %4230 = vpow2.f32 %v3460_v56  ;;  %v3463_v60 = vmul.f32 -1.442695, %v1585_v30  ;;  %v1584_v0 = vadd.f32 %v1513_v29, %v454_v24 }
 0x354   :  { %v3879_v27 = vpop.f32.mrf.mxu0 }
 0x355   :  { %4232 = vpow2.f32 %v3463_v60  ;;  %v3462_v6 = vmul.f32 -1.442695, %v1584_v0  ;;  %v1587_v7 = vadd.f32 %v3879_v27, %v472_v21  ;;  %v502_v27 = vadd.f32 %v5478_v61, %v5358_v38 }
 0x356   :  { %v1523_v8 = vpop.f32.mrf.mxu0 }
 0x357   :  { %4234 = vpow2.f32 %v3462_v6  ;;  %v3465_v2 = vmul.f32 -1.442695, %v1587_v7  ;;  %v1586_v15 = vadd.f32 %v1523_v8, %v466_v19 }
 0x358   :  { %v3882_v10 = vpop.f32.mrf.mxu0 }
 0x359   :  { %4236 = vpow2.f32 %v3465_v2  ;;  %v3464_v3 = vmul.f32 -1.442695, %v1586_v15  ;;  %v1589_v9 = vadd.f32 %v3882_v10, %v484_v4 }
 0x35a   :  { %v1533_v48 = vpop.f32.mrf.mxu0 }
 0x35b   :  { %4238 = vpow2.f32 %v3464_v3  ;;  %v3467_v43 = vmul.f32 -1.442695, %v1589_v9  ;;  %v1588_v17 = vadd.f32 %v1533_v48, %v478_v22  ;;  %v514_v48 = vadd.f32 %v5498_v1, %v5406_v18 }
 0x35c   :  { %v3885_v12 = vpop.f32.mrf.mxu0 }
 0x35d   :  { %4240 = vpow2.f32 %v3467_v43  ;;  %v3466_v24 = vmul.f32 -1.442695, %v1588_v17  ;;  %v1591_v56 = vadd.f32 %v3885_v12, %v496_v14  ;;  %v532_v14 = vadd.f32 %v5510_v40, %v5370_v31 }
 0x35e   :  { %v4229_v30 = vpop.eup %4228  ;;  %v1543_v29 = vpop.f32.mrf.mxu0  ;;  %v526_v12 = vadd.f32 %v5506_v44, %v5384_v49 }
 0x35f   :  { %v1611_v21 = vadd.f32 1.0, %v4229_v30  ;;  %4242 = vpow2.f32 %v3466_v24  ;;  %v1590_v60 = vadd.f32 %v1543_v29, %v490_v51 }
 0x360   :  { %v4231_v0 = vpop.eup %4230  ;;  %4244 = vtanh.f32 %v1591_v56  ;;  %v3888_v59 = vpop.f32.mrf.mxu0 }
 0x361   :  { %4246 = vrcp.f32 %v1611_v21  ;;  %v1610_v19 = vadd.f32 1.0, %v4231_v0  ;;  %v1593_v20 = vadd.f32 %v3888_v59, %v508_v45 }
 0x362   :  { %v4233_v6 = vpop.eup %4232  ;;  %4248 = vtanh.f32 %v1590_v60  ;;  %v1553_v7 = vpop.f32.mrf.mxu0 }
 0x363   :  { %4250 = vrcp.f32 %v1610_v19  ;;  %v1613_v8 = vadd.f32 1.0, %v4233_v6  ;;  %v1592_v4 = vadd.f32 %v1553_v7, %v502_v27 }
 0x364   :  { %v4235_v2 = vpop.eup %4234  ;;  %4252 = vtanh.f32 %v1593_v20  ;;  %v3891_v15 = vpop.f32.mrf.mxu0 }
 0x365   :  { %4254 = vrcp.f32 %v1613_v8  ;;  %v1612_v10 = vadd.f32 1.0, %v4235_v2  ;;  %v1595_v22 = vadd.f32 %v3891_v15, %v520_v63 }
 0x366   :  { %v4237_v3 = vpop.eup %4236  ;;  %4256 = vtanh.f32 %v1592_v4  ;;  %v1563_v61 = vpop.f32.mrf.mxu0 }
 0x367   :  { %4258 = vrcp.f32 %v1612_v10  ;;  %v1635_v9 = vadd.f32 1.0, %v4237_v3  ;;  %v3469_v17 = vmul.f32 -1.442695, %v1595_v22  ;;  %v1594_v24 = vadd.f32 %v1563_v61, %v514_v48 }
 0x368   :  { %v4239_v43 = vpop.eup %4238  ;;  %v3894_v42 = vpop.f32.mrf.mxu0 }
 0x369   :  { %4260 = vrcp.f32 %v1635_v9  ;;  %v1634_v51 = vadd.f32 1.0, %v4239_v43  ;;  %v1597_v56 = vadd.f32 %v3894_v42, %v532_v14  ;;  %v3468_v59 = vmul.f32 -1.442695, %v1594_v24 }
 0x36a   :  { %v4241_v30 = vpop.eup %4240  ;;  %v1573_v29 = vpop.f32.mrf.mxu0 }
 0x36b   :  { %4262 = vrcp.f32 %v1634_v51  ;;  %v1637_v45 = vadd.f32 1.0, %v4241_v30  ;;  %v3471_v21 = vmul.f32 -1.442695, %v1597_v56  ;;  %v1596_v60 = vadd.f32 %v1573_v29, %v526_v12 }
 0x36c   :  { %v4243_v1 = vpop.eup %4242  ;;  %4264 = vpow2.f32 %v3469_v17 }
 0x36d   :  { %v4245_v0 = vpop.eup %4244  ;;  %4266 = vrcp.f32 %v1637_v45  ;;  %v1636_v40 = vadd.f32 1.0, %v4243_v1  ;;  %v3470_v27 = vmul.f32 -1.442695, %v1596_v60 }
 0x36e   :  { %v4247_v19 = vpop.eup %4246  ;;  %4268 = vpow2.f32 %v3471_v21 }
 0x36f   :  { %v4249_v44 = vpop.eup %4248  ;;  %4270 = vrcp.f32 %v1636_v40  ;;  %v1679_v20 = vmul.f32 %v4247_v19, %v4245_v0 }
 0x370   :  { %v4251_v6 = vpop.eup %4250  ;;  %4272 = vpow2.f32 %v3470_v27 }
 0x371   :  { %v4253_v7 = vpop.eup %4252  ;;  %v1678_v8 = vmul.f32 %v4251_v6, %v4249_v44  ;;  %4274 = vpow2.f32 %v3468_v59 }
 0x372   :  { %v4255_v4 = vpop.eup %4254 }
 0x373   :  { %v4257_v63 = vpop.eup %4256  ;;  %v1681_v2 = vmul.f32 %v4255_v4, %v4253_v7  ;;  %v5777_v4 = vld [vmem:[%s6316_s2 + $0x50] sm:$0xff] }
 0x374   :  { %v4259_v15 = vpop.eup %4258 }
 0x375   :  { %v1680_v10 = vmul.f32 %v4259_v15, %v4257_v63  ;;  %v5784_v63 = vld [vmem:[%s6316_s2 + $0x58] sm:$0xff]  ;;  %v5798_v15 = vld [vmem:[%s6316_s2 + $0x68] sm:$0xff] }
 0x376   :  { %v4261_v22 = vpop.eup %4260 }
 0x377   :  { %v1675_v3 = vmul.f32 %v4261_v22, %v5611_v62  ;;  %v5812_v22 = vld [vmem:[%s6316_s2 + $0x78] sm:$0xff] }
 0x378   :  { %v4263_v61 = vpop.eup %4262 }
 0x379   :  { %v4265_v9 = vpop.eup %4264  ;;  %v5736_v48 = vadd.f32 %v1679_v20, %v1675_v3  ;;  %v1674_v14 = vmul.f32 %v4263_v61, %v5619_v32  ;;  %v6420_v3 = vld [vmem:[#allocation46_spill] sm:$0xff] }
 0x37a   :  { %v4267_v43 = vpop.eup %4266  ;;  %v1663_v45 = vadd.f32 1.0, %v4265_v9  ;;  %v450_v61 = vadd.f32 %v6420_v3, %v5322_v41  ;;  %v486_v3 = vadd.f32 %v5448_v46, %v5308_v57 }
 0x37b   :  { %v4269_v17 = vpop.eup %4268  ;;  %v5739_v42 = vadd.f32 %v1678_v8, %v1674_v14  ;;  %v1677_v12 = vmul.f32 %v4267_v43, %v5615_v37  ;;  %4276 = vtanh.f32 %v5736_v48  ;;  %v5770_v8 = vld [vmem:[%s6316_s2 + $0x48] sm:$0xff]  ;;  %v6421_v14 = vld [vmem:[#allocation44_spill] sm:$0xff] }
 0x37c   :  { %v4271_v51 = vpop.eup %4270  ;;  %v1665_v24 = vadd.f32 1.0, %v4269_v17  ;;  %v444_v43 = vadd.f32 %v6421_v14, %v5334_v47 }
 0x37d   :  { %v4273_v56 = vpop.eup %4272  ;;  %v5742_v30 = vadd.f32 %v1681_v2, %v1677_v12  ;;  %v1676_v29 = vmul.f32 %v4271_v51, %v5621_v28  ;;  %v5791_v2 = vld [vmem:[%s6316_s2 + $0x60] sm:$0xff]  ;;  %v6422_v51 = vld [vmem:[#allocation50_spill] sm:$0xff] }
 0x37e   :  { %v4275_v62 = vpop.eup %4274  ;;  %4278 = vrcp.f32 %v1665_v24  ;;  %v1664_v21 = vadd.f32 1.0, %v4273_v56  ;;  %v462_v24 = vadd.f32 %v6422_v51, %v5300_v53 }
 0x37f   :  { %v5746_v32 = vadd.f32 %v1680_v10, %v1676_v29  ;;  %4280 = vtanh.f32 %v5742_v30  ;;  %v1662_v60 = vadd.f32 1.0, %v4275_v62  ;;  %v5805_v10 = vld [vmem:[%s6316_s2 + $0x70] sm:$0xff] }
 0x380   :  { %4282 = vrcp.f32 %v1664_v21 }
 0x381   :  { %4284 = vtanh.f32 %v5746_v32 }
 0x382   :  { %4286 = vrcp.f32 %v1663_v45  ;;  %v6423_v45 = vld [vmem:[#allocation48_spill] sm:$0xff] }
 0x383   :  { %4288 = vtanh.f32 %v5739_v42  ;;  %v456_v21 = vadd.f32 %v6423_v45, %v5320_v39 }
 0x384   :  { %4290 = vrcp.f32 %v1662_v60 }
 0x388   :  { %v4277_v37 = vpop.eup %4276 }
 0x38b   :  { %v4279_v28 = vpop.eup %4278 }
 0x38c   :  { %v4281_v1 = vpop.eup %4280 }
 0x38d   :  { %v4283_v0 = vpop.eup %4282  ;;  %v1693_v40 = vmul.f32 %v4281_v1, %v4279_v28  ;;  %v6424_v1 = vld [vmem:[#allocation52_spill] sm:$0xff] }
 0x38e   :  { %v4285_v59 = vpop.eup %4284 }
 0x38f   :  { %v4287_v27 = vpop.eup %4286  ;;  %3895 = vmatprep.subr.mxu1 %v1693_v40  ;;  %v1692_v19 = vmul.f32 %v4285_v59, %v4283_v0  ;;  %v474_v0 = vadd.f32 %v6424_v1, %v5348_v35 }
 0x390   :  { %v4289_v44 = vpop.eup %4288  ;;  %3896 = vmatpush3.msra.mxu1 %v1693_v40  ;;  %v1691_v20 = vmul.f32 %v4287_v27, %v4277_v37 }
 0x391   :  { %3897 = vmatprep.subr.mxu1 %v1692_v19  ;;  %v4291_v6 = vpop.eup %4290 }
 0x392   :  { %3898 = vmatpush3.msra.mxu1 %v1692_v19  ;;  %v1690_v7 = vmul.f32 %v4291_v6, %v4289_v44  ;;  %v6425_v19 = vld [vmem:[#allocation51_spill] sm:$0xff] }
 0x393   :  { %3899 = vmatprep.subr.mxu1 %v1691_v20  ;;  %v468_v44 = vadd.f32 %v6425_v19, %v5362_v34 }
 0x394   :  { %3900 = vmatpush3.msra.mxu1 %v1691_v20 }
 0x395   :  { %3901 = vmatprep.subr.mxu1 %v1690_v7 }
 0x396   :  { %3902 = vmatpush3.msra.mxu1 %v1690_v7 }
 0x397   :  { %3904 = vmatmul.mubr.msk.f32.vlgmr.msra.gmra.mxu1 %vm874_vm2, %v5629_v54 }
 0x398   :  { %3906 = vmatprep.mubr.msk.f32.mxu1 %vm874_vm2, %v5636_v13 }
 0x39b   :  { %3907 = vmatmul.mubr.msk.f32.gmra.mxu1 %vm874_vm2, %v5643_v11 }
 0x39c   :  { %3909 = vmatprep.mubr.msk.f32.mxu1 %vm874_vm2, %v5650_v36 }
 0x39f   :  { %3910 = vmatmul.mubr.msk.f32.gmra.mxu1 %vm874_vm2, %v5657_v25 }
 0x3a0   :  { %3912 = vmatprep.mubr.msk.f32.mxu1 %vm874_vm2, %v5664_v58 }
 0x3a3   :  { %3913 = vmatmul.mubr.msk.f32.gmra.mxu1 %vm874_vm2, %v5671_v26 }
 0x3a4   :  { %3915 = vmatprep.mubr.msk.f32.mxu1 %vm874_vm2, %v5678_v23 }
 0x3a7   :  { %3916 = vmatmul.mubr.msk.f32.gmra.mxu1 %vm874_vm2, %v5770_v8 }
 0x3a8   :  { %3918 = vmatprep.mubr.msk.f32.mxu1 %vm874_vm2, %v5777_v4 }
 0x3ab   :  { %3919 = vmatmul.mubr.msk.f32.gmra.mxu1 %vm874_vm2, %v5784_v63 }
 0x3ac   :  { %3921 = vmatprep.mubr.msk.f32.mxu1 %vm874_vm2, %v5791_v2 }
 0x3af   :  { %3922 = vmatmul.mubr.msk.f32.gmra.mxu1 %vm874_vm2, %v5798_v15 }
 0x3b0   :  { %3924 = vmatprep.mubr.msk.f32.mxu1 %vm874_vm2, %v5805_v10 }
 0x3b3   :  { %3925 = vmatmul.mubr.msk.f32.gmra.mxu1 %vm874_vm2, %v5812_v22 }
 0x3b4   :  { %3967 = vmatprep.mubr.msk.f32.mxu1 %vm874_vm2, %v5699_v5 }
 0x457   :  { %v3905_v9 = vpop.f32.mrf.mxu1 }
 0x458   :  { %v1840_v17 = vadd.f32 %v3905_v9, %v450_v61 }
 0x459   :  { %v1760_v12 = vpop.f32.mrf.mxu1 }
 0x45a   :  { %v3489_v56 = vmul.f32 -1.442695, %v1840_v17  ;;  %v1839_v29 = vadd.f32 %v1760_v12, %v444_v43  ;;  %v6426_v43 = vld [vmem:[#allocation53_spill] sm:$0xff] }
 0x45b   :  { %v3908_v62 = vpop.f32.mrf.mxu1  ;;  %v480_v17 = vadd.f32 %v6426_v43, %v5332_v55 }
 0x45c   :  { %4292 = vpow2.f32 %v3489_v56  ;;  %v3488_v60 = vmul.f32 -1.442695, %v1839_v29  ;;  %v1842_v37 = vadd.f32 %v3908_v62, %v462_v24  ;;  %v6427_v62 = vld [vmem:[#allocation55_spill] sm:$0xff] }
 0x45d   :  { %v1770_v28 = vpop.f32.mrf.mxu1  ;;  %v498_v45 = vadd.f32 %v6427_v62, %v5372_v50 }
 0x45e   :  { %4294 = vpow2.f32 %v3488_v60  ;;  %v3491_v40 = vmul.f32 -1.442695, %v1842_v37  ;;  %v1841_v59 = vadd.f32 %v1770_v28, %v456_v21  ;;  %v6428_v37 = vld [vmem:[#allocation54_spill] sm:$0xff] }
 0x45f   :  { %v3911_v27 = vpop.f32.mrf.mxu1  ;;  %v492_v28 = vadd.f32 %v6428_v37, %v5386_v33 }
 0x460   :  { %4296 = vpow2.f32 %v3491_v40  ;;  %v3490_v20 = vmul.f32 -1.442695, %v1841_v59  ;;  %v1844_v6 = vadd.f32 %v3911_v27, %v474_v0  ;;  %v6429_v27 = vld [vmem:[#allocation57_spill] sm:$0xff] }
 0x461   :  { %v1780_v7 = vpop.f32.mrf.mxu1  ;;  %v510_v19 = vadd.f32 %v6429_v27, %v5342_v52  ;;  %v6434_v27 = vld [vmem:[#allocation60_spill] sm:$0xff] }
 0x462   :  { %4298 = vpow2.f32 %v3490_v20  ;;  %v3493_v61 = vmul.f32 -1.442695, %v1844_v6  ;;  %v1843_v9 = vadd.f32 %v1780_v7, %v468_v44 }
 0x463   :  { %v3914_v14 = vpop.f32.mrf.mxu1 }
 0x464   :  { %4300 = vpow2.f32 %v3493_v61  ;;  %v3492_v12 = vmul.f32 -1.442695, %v1843_v9  ;;  %v1846_v51 = vadd.f32 %v3914_v14, %v486_v3  ;;  %v6430_v3 = vld [vmem:[#allocation56_spill] sm:$0xff] }
 0x465   :  { %v1790_v24 = vpop.f32.mrf.mxu1  ;;  %v504_v61 = vadd.f32 %v6430_v3, %v5358_v38 }
 0x466   :  { %4302 = vpow2.f32 %v3492_v12  ;;  %v3495_v56 = vmul.f32 -1.442695, %v1846_v51  ;;  %v1845_v29 = vadd.f32 %v1790_v24, %v480_v17  ;;  %v6431_v17 = vld [vmem:[#allocation59_spill] sm:$0xff] }
 0x467   :  { %v3917_v21 = vpop.f32.mrf.mxu1  ;;  %v522_v12 = vadd.f32 %v6431_v17, %v5396_v16 }
 0x468   :  { %4304 = vpow2.f32 %v3495_v56  ;;  %v3494_v46 = vmul.f32 -1.442695, %v1845_v29  ;;  %v1848_v1 = vadd.f32 %v3917_v21, %v498_v45 }
 0x469   :  { %v4293_v60 = vpop.eup %4292  ;;  %v1800_v0 = vpop.f32.mrf.mxu1 }
 0x46a   :  { %v1868_v40 = vadd.f32 1.0, %v4293_v60  ;;  %4306 = vpow2.f32 %v3494_v46  ;;  %v1847_v44 = vadd.f32 %v1800_v0, %v492_v28  ;;  %v6432_v60 = vld [vmem:[#allocation58_spill] sm:$0xff]  ;;  %v6433_v28 = vld [vmem:[#allocation61_spill] sm:$0xff] }
 0x46b   :  { %v4295_v59 = vpop.eup %4294  ;;  %v3920_v20 = vpop.f32.mrf.mxu1  ;;  %4308 = vtanh.f32 %v1848_v1  ;;  %v516_v37 = vadd.f32 %v6432_v60, %v5406_v18  ;;  %v534_v1 = vadd.f32 %v6433_v28, %v5370_v31 }
 0x46c   :  { %v1867_v6 = vadd.f32 1.0, %v4295_v59  ;;  %v1850_v9 = vadd.f32 %v3920_v20, %v510_v19  ;;  %4310 = vrcp.f32 %v1868_v40  ;;  %v528_v19 = vadd.f32 %v6434_v27, %v5384_v49 }
 0x46d   :  { %v4297_v7 = vpop.eup %4296  ;;  %v1810_v14 = vpop.f32.mrf.mxu1  ;;  %4312 = vtanh.f32 %v1847_v44 }
 0x46e   :  { %v1870_v43 = vadd.f32 1.0, %v4297_v7  ;;  %v1849_v24 = vadd.f32 %v1810_v14, %v504_v61  ;;  %4314 = vrcp.f32 %v1867_v6 }
 0x46f   :  { %v4299_v51 = vpop.eup %4298  ;;  %v3923_v56 = vpop.f32.mrf.mxu1  ;;  %4316 = vtanh.f32 %v1850_v9 }
 0x470   :  { %v1852_v29 = vadd.f32 %v3923_v56, %v522_v12  ;;  %v1869_v45 = vadd.f32 1.0, %v4299_v51  ;;  %4318 = vrcp.f32 %v1870_v43 }
 0x471   :  { %v4301_v62 = vpop.eup %4300  ;;  %v1820_v21 = vpop.f32.mrf.mxu1  ;;  %4320 = vtanh.f32 %v1849_v24 }
 0x472   :  { %v1892_v46 = vadd.f32 1.0, %v4301_v62  ;;  %v3497_v40 = vmul.f32 -1.442695, %v1852_v29  ;;  %v1851_v20 = vadd.f32 %v1820_v21, %v516_v37 }
 0x473   :  { %v4303_v0 = vpop.eup %4302  ;;  %v3926_v59 = vpop.f32.mrf.mxu1 }
 0x474   :  { %4322 = vrcp.f32 %v1892_v46  ;;  %v1891_v44 = vadd.f32 1.0, %v4303_v0  ;;  %v1854_v6 = vadd.f32 %v3926_v59, %v534_v1  ;;  %v3496_v12 = vmul.f32 -1.442695, %v1851_v20 }
 0x475   :  { %v4305_v7 = vpop.eup %4304  ;;  %4324 = vrcp.f32 %v1869_v45  ;;  %v1830_v3 = vpop.f32.mrf.mxu1 }
 0x476   :  { %4326 = vrcp.f32 %v1891_v44  ;;  %v1894_v61 = vadd.f32 1.0, %v4305_v7  ;;  %v3499_v9 = vmul.f32 -1.442695, %v1854_v6  ;;  %v1853_v14 = vadd.f32 %v1830_v3, %v528_v19 }
 0x477   :  { %v4307_v43 = vpop.eup %4306  ;;  %4328 = vpow2.f32 %v3497_v40 }
 0x478   :  { %4330 = vrcp.f32 %v1894_v61  ;;  %v1893_v17 = vadd.f32 1.0, %v4307_v43  ;;  %v3498_v51 = vmul.f32 -1.442695, %v1853_v14  ;;  %v4309_v24 = vpop.eup %4308 }
 0x479   :  { %4332 = vpow2.f32 %v3499_v9  ;;  %v4311_v56 = vpop.eup %4310 }
 0x47a   :  { %4334 = vrcp.f32 %v1893_v17  ;;  %v4313_v29 = vpop.eup %4312  ;;  %v1936_v1 = vmul.f32 %v4311_v56, %v4309_v24 }
 0x47b   :  { %4336 = vpow2.f32 %v3498_v51  ;;  %v4315_v62 = vpop.eup %4314 }
 0x47c   :  { %4338 = vpow2.f32 %v3496_v12  ;;  %v4317_v45 = vpop.eup %4316  ;;  %v1935_v3 = vmul.f32 %v4315_v62, %v4313_v29 }
 0x47d   :  { %v4319_v21 = vpop.eup %4318 }
 0x47e   :  { %v4321_v46 = vpop.eup %4320  ;;  %v1938_v6 = vmul.f32 %v4319_v21, %v4317_v45 }
 0x481   :  { %v4323_v60 = vpop.eup %4322 }
 0x482   :  { %v4325_v37 = vpop.eup %4324  ;;  %v1932_v28 = vmul.f32 %v4323_v60, %v5736_v48 }
 0x483   :  { %v4327_v0 = vpop.eup %4326  ;;  %v1937_v43 = vmul.f32 %v4325_v37, %v4321_v46 }
 0x484   :  { %v4329_v40 = vpop.eup %4328  ;;  %v5851_v59 = vadd.f32 %v1936_v1, %v1932_v28  ;;  %v1931_v44 = vmul.f32 %v4327_v0, %v5739_v42 }
 0x485   :  { %v4331_v27 = vpop.eup %4330  ;;  %v1920_v12 = vadd.f32 1.0, %v4329_v40 }
 0x486   :  { %v4333_v19 = vpop.eup %4332  ;;  %v1934_v20 = vmul.f32 %v4331_v27, %v5742_v30  ;;  %4340 = vtanh.f32 %v5851_v59  ;;  %v5859_v24 = vadd.f32 %v1935_v3, %v1931_v44 }
 0x487   :  { %v4335_v7 = vpop.eup %4334  ;;  %v1922_v61 = vadd.f32 1.0, %v4333_v19 }
 0x488   :  { %v4337_v9 = vpop.eup %4336  ;;  %v5855_v14 = vadd.f32 %v1938_v6, %v1934_v20  ;;  %v1933_v48 = vmul.f32 %v4335_v7, %v5746_v32  ;;  %v6438_v20 = vld [vmem:[#allocation11_spill] sm:$0xff] }
 0x489   :  { %v4339_v17 = vpop.eup %4338  ;;  %4342 = vrcp.f32 %v1922_v61  ;;  %v1921_v51 = vadd.f32 1.0, %v4337_v9  ;;  %v615_v6 = vadd.f32 %v6438_v20, %v5320_v39  ;;  %v6439_v61 = vld [vmem:[#allocation17_spill] sm:$0xff] }
 0x48a   :  { %v5861_v42 = vadd.f32 %v1937_v43, %v1933_v48  ;;  %4344 = vtanh.f32 %v5855_v14  ;;  %v1919_v30 = vadd.f32 1.0, %v4339_v17  ;;  %v633_v9 = vadd.f32 %v6439_v61, %v5348_v35  ;;  %v6446_v61 = vld [vmem:[#allocation27_spill] sm:$0xff] }
 0x48b   :  { %4346 = vrcp.f32 %v1921_v51 }
 0x48c   :  { %4348 = vtanh.f32 %v5861_v42 }
 0x48d   :  { %4350 = vrcp.f32 %v1920_v12  ;;  %v6440_v12 = vld [vmem:[#allocation15_spill] sm:$0xff] }
 0x48e   :  { %4352 = vtanh.f32 %v5859_v24  ;;  %v627_v51 = vadd.f32 %v6440_v12, %v5362_v34 }
 0x48f   :  { %4354 = vrcp.f32 %v1919_v30 }
 0x493   :  { %v4341_v32 = vpop.eup %4340 }
 0x496   :  { %v4343_v56 = vpop.eup %4342 }
 0x497   :  { %v4345_v29 = vpop.eup %4344 }
 0x498   :  { %v4347_v62 = vpop.eup %4346  ;;  %v1950_v45 = vmul.f32 %v4345_v29, %v4343_v56  ;;  %v6441_v29 = vld [vmem:[#allocation21_spill] sm:$0xff] }
 0x499   :  { %v4349_v21 = vpop.eup %4348 }
 0x49a   :  { %v4351_v46 = vpop.eup %4350  ;;  %3927 = vmatprep.subr.mxu0 %v1950_v45  ;;  %v1949_v60 = vmul.f32 %v4349_v21, %v4347_v62  ;;  %v645_v62 = vadd.f32 %v6441_v29, %v5308_v57 }
 0x49b   :  { %v4353_v37 = vpop.eup %4352  ;;  %3928 = vmatpush3.msra.mxu0 %v1950_v45  ;;  %v1948_v28 = vmul.f32 %v4351_v46, %v4341_v32 }
 0x49c   :  { %3929 = vmatprep.subr.mxu0 %v1949_v60  ;;  %v4355_v1 = vpop.eup %4354 }
 0x49d   :  { %3930 = vmatpush3.msra.mxu0 %v1949_v60  ;;  %v1947_v0 = vmul.f32 %v4355_v1, %v4353_v37  ;;  %v6442_v60 = vld [vmem:[#allocation19_spill] sm:$0xff] }
 0x49e   :  { %3931 = vmatprep.subr.mxu0 %v1948_v28  ;;  %v639_v37 = vadd.f32 %v6442_v60, %v5332_v55 }
 0x49f   :  { %3932 = vmatpush3.msra.mxu0 %v1948_v28 }
 0x4a0   :  { %3933 = vmatprep.subr.mxu0 %v1947_v0 }
 0x4a1   :  { %3934 = vmatpush3.msra.mxu0 %v1947_v0 }
 0x4a2   :  { %3936 = vmatmul.mubr.msk.f32.vlgmr.msra.gmra.mxu0 %vm874_vm2, %v5629_v54  ;;  %v6435_v54 = vld [vmem:[#allocation9_spill] sm:$0xff] }
 0x4a3   :  { %3938 = vmatprep.mubr.msk.f32.mxu0 %vm874_vm2, %v5636_v13  ;;  %v609_v13 = vadd.f32 %v6435_v54, %v5322_v41  ;;  %v6443_v54 = vld [vmem:[#allocation25_spill] sm:$0xff] }
 0x4a6   :  { %3939 = vmatmul.mubr.msk.f32.gmra.mxu0 %vm874_vm2, %v5643_v11 }
 0x4a7   :  { %3941 = vmatprep.mubr.msk.f32.mxu0 %vm874_vm2, %v5650_v36  ;;  %v6436_v36 = vld [vmem:[#allocation7_spill] sm:$0xff] }
 0x4aa   :  { %3942 = vmatmul.mubr.msk.f32.gmra.mxu0 %vm874_vm2, %v5657_v25  ;;  %v603_v25 = vadd.f32 %v6436_v36, %v5334_v47 }
 0x4ab   :  { %3944 = vmatprep.mubr.msk.f32.mxu0 %vm874_vm2, %v5664_v58 }
 0x4ae   :  { %3945 = vmatmul.mubr.msk.f32.gmra.mxu0 %vm874_vm2, %v5671_v26 }
 0x4af   :  { %3947 = vmatprep.mubr.msk.f32.mxu0 %vm874_vm2, %v5678_v23  ;;  %v6437_v23 = vld [vmem:[#allocation13_spill] sm:$0xff] }
 0x4b0   :  { %v621_v40 = vadd.f32 %v6437_v23, %v5300_v53 }
 0x4b2   :  { %3948 = vmatmul.mubr.msk.f32.gmra.mxu0 %vm874_vm2, %v5770_v8 }
 0x4b3   :  { %3950 = vmatprep.mubr.msk.f32.mxu0 %vm874_vm2, %v5777_v4 }
 0x4b6   :  { %3951 = vmatmul.mubr.msk.f32.gmra.mxu0 %vm874_vm2, %v5784_v63 }
 0x4b7   :  { %3953 = vmatprep.mubr.msk.f32.mxu0 %vm874_vm2, %v5791_v2 }
 0x4ba   :  { %3954 = vmatmul.mubr.msk.f32.gmra.mxu0 %vm874_vm2, %v5798_v15 }
 0x4bb   :  { %3956 = vmatprep.mubr.msk.f32.mxu0 %vm874_vm2, %v5805_v10 }
 0x4be   :  { %3957 = vmatmul.mubr.msk.f32.gmra.mxu0 %vm874_vm2, %v5812_v22 }
 0x4bf   :  { %3999 = vmatprep.mubr.msk.f32.mxu0 %vm874_vm2, %v5699_v5 }
 0x562   :  { %v3937_v11 = vpop.f32.mrf.mxu0 }
 0x563   :  { %v2097_v58 = vadd.f32 %v3937_v11, %v609_v13  ;;  %v657_v13 = vadd.f32 %v6443_v54, %v5372_v50 }
 0x564   :  { %v2017_v26 = vpop.f32.mrf.mxu0 }
 0x565   :  { %v3517_v27 = vmul.f32 -1.442695, %v2097_v58  ;;  %v2096_v19 = vadd.f32 %v2017_v26, %v603_v25  ;;  %v6444_v58 = vld [vmem:[#allocation23_spill] sm:$0xff] }
 0x566   :  { %v3940_v44 = vpop.f32.mrf.mxu0  ;;  %v651_v26 = vadd.f32 %v6444_v58, %v5386_v33 }
 0x567   :  { %4356 = vpow2.f32 %v3517_v27  ;;  %v3516_v5 = vmul.f32 -1.442695, %v2096_v19  ;;  %v2099_v7 = vadd.f32 %v3940_v44, %v621_v40  ;;  %v6445_v44 = vld [vmem:[#allocation29_spill] sm:$0xff] }
 0x568   :  { %v2027_v3 = vpop.f32.mrf.mxu0  ;;  %v669_v20 = vadd.f32 %v6445_v44, %v5342_v52 }
 0x569   :  { %4358 = vpow2.f32 %v3516_v5  ;;  %v3519_v48 = vmul.f32 -1.442695, %v2099_v7  ;;  %v2098_v43 = vadd.f32 %v2027_v3, %v615_v6 }
 0x56a   :  { %v3943_v17 = vpop.f32.mrf.mxu0 }
 0x56b   :  { %4360 = vpow2.f32 %v3519_v48  ;;  %v3518_v30 = vmul.f32 -1.442695, %v2098_v43  ;;  %v2101_v32 = vadd.f32 %v3943_v17, %v633_v9  ;;  %v663_v9 = vadd.f32 %v6446_v61, %v5358_v38 }
 0x56c   :  { %v2037_v56 = vpop.f32.mrf.mxu0 }
 0x56d   :  { %4362 = vpow2.f32 %v3518_v30  ;;  %v3521_v45 = vmul.f32 -1.442695, %v2101_v32  ;;  %v2100_v21 = vadd.f32 %v2037_v56, %v627_v51  ;;  %v6447_v51 = vld [vmem:[#allocation34_spill] sm:$0xff] }
 0x56e   :  { %v3946_v46 = vpop.f32.mrf.mxu0  ;;  %v681_v30 = vadd.f32 %v6447_v51, %v5396_v16 }
 0x56f   :  { %4364 = vpow2.f32 %v3521_v45  ;;  %v3520_v28 = vmul.f32 -1.442695, %v2100_v21  ;;  %v2103_v1 = vadd.f32 %v3946_v46, %v645_v62 }
 0x570   :  { %v2047_v0 = vpop.f32.mrf.mxu0 }
 0x571   :  { %4366 = vpow2.f32 %v3520_v28  ;;  %v3523_v11 = vmul.f32 -1.442695, %v2103_v1  ;;  %v2102_v36 = vadd.f32 %v2047_v0, %v639_v37  ;;  %v6448_v37 = vld [vmem:[#allocation31_spill] sm:$0xff] }
 0x572   :  { %v3949_v25 = vpop.f32.mrf.mxu0  ;;  %v675_v28 = vadd.f32 %v6448_v37, %v5406_v18  ;;  %v6449_v1 = vld [vmem:[#allocation39_spill] sm:$0xff] }
 0x573   :  { %4368 = vpow2.f32 %v3523_v11  ;;  %v3522_v23 = vmul.f32 -1.442695, %v2102_v36  ;;  %v2105_v40 = vadd.f32 %v3949_v25, %v657_v13  ;;  %v693_v0 = vadd.f32 %v6449_v1, %v5370_v31  ;;  %v6450_v11 = vld [vmem:[#allocation36_spill] sm:$0xff] }
 0x574   :  { %v4357_v27 = vpop.eup %4356  ;;  %v2057_v19 = vpop.f32.mrf.mxu0  ;;  %v687_v36 = vadd.f32 %v6450_v11, %v5384_v49 }
 0x575   :  { %v2125_v6 = vadd.f32 1.0, %v4357_v27  ;;  %4370 = vpow2.f32 %v3522_v23  ;;  %v2104_v5 = vadd.f32 %v2057_v19, %v651_v26 }
 0x576   :  { %v4359_v7 = vpop.eup %4358  ;;  %4372 = vtanh.f32 %v2105_v40  ;;  %v3952_v3 = vpop.f32.mrf.mxu0 }
 0x577   :  { %4374 = vrcp.f32 %v2125_v6  ;;  %v2124_v48 = vadd.f32 1.0, %v4359_v7  ;;  %v2107_v43 = vadd.f32 %v3952_v3, %v669_v20 }
 0x578   :  { %v4361_v17 = vpop.eup %4360  ;;  %4376 = vtanh.f32 %v2104_v5  ;;  %v2067_v12 = vpop.f32.mrf.mxu0 }
 0x579   :  { %4378 = vrcp.f32 %v2124_v48  ;;  %v2127_v32 = vadd.f32 1.0, %v4361_v17  ;;  %v2106_v56 = vadd.f32 %v2067_v12, %v663_v9 }
 0x57a   :  { %v4363_v29 = vpop.eup %4362  ;;  %4380 = vtanh.f32 %v2107_v43  ;;  %v3955_v62 = vpop.f32.mrf.mxu0 }
 0x57b   :  { %4382 = vrcp.f32 %v2127_v32  ;;  %v2126_v45 = vadd.f32 1.0, %v4363_v29  ;;  %v2109_v21 = vadd.f32 %v3955_v62, %v681_v30 }
 0x57c   :  { %v4365_v46 = vpop.eup %4364  ;;  %4384 = vtanh.f32 %v2106_v56  ;;  %v2077_v60 = vpop.f32.mrf.mxu0 }
 0x57d   :  { %4386 = vrcp.f32 %v2126_v45  ;;  %v2149_v54 = vadd.f32 1.0, %v4365_v46  ;;  %v3525_v25 = vmul.f32 -1.442695, %v2109_v21  ;;  %v2108_v23 = vadd.f32 %v2077_v60, %v675_v28 }
 0x57e   :  { %v4367_v13 = vpop.eup %4366  ;;  %v3958_v58 = vpop.f32.mrf.mxu0 }
 0x57f   :  { %4388 = vrcp.f32 %v2149_v54  ;;  %v2148_v26 = vadd.f32 1.0, %v4367_v13  ;;  %v2111_v40 = vadd.f32 %v3958_v58, %v693_v0  ;;  %v3524_v61 = vmul.f32 -1.442695, %v2108_v23 }
 0x580   :  { %v4369_v27 = vpop.eup %4368  ;;  %v2087_v19 = vpop.f32.mrf.mxu0 }
 0x581   :  { %4390 = vrcp.f32 %v2148_v26  ;;  %v2151_v44 = vadd.f32 1.0, %v4369_v27  ;;  %v3527_v20 = vmul.f32 -1.442695, %v2111_v40  ;;  %v2110_v6 = vadd.f32 %v2087_v19, %v687_v36 }
 0x582   :  { %v4371_v5 = vpop.eup %4370  ;;  %4392 = vpow2.f32 %v3525_v25 }
 0x583   :  { %v4373_v7 = vpop.eup %4372  ;;  %4394 = vrcp.f32 %v2151_v44  ;;  %v2150_v3 = vadd.f32 1.0, %v4371_v5  ;;  %v3526_v9 = vmul.f32 -1.442695, %v2110_v6 }
 0x584   :  { %v4375_v48 = vpop.eup %4374  ;;  %4396 = vpow2.f32 %v3527_v20 }
 0x585   :  { %v4377_v43 = vpop.eup %4376  ;;  %4398 = vrcp.f32 %v2150_v3  ;;  %v2193_v17 = vmul.f32 %v4375_v48, %v4373_v7 }
 0x586   :  { %v4379_v12 = vpop.eup %4378  ;;  %4400 = vpow2.f32 %v3526_v9 }
 0x587   :  { %v4381_v51 = vpop.eup %4380  ;;  %v2192_v30 = vmul.f32 %v4379_v12, %v4377_v43  ;;  %4402 = vpow2.f32 %v3524_v61  ;;  %v5956_v12 = vld [vmem:[%s6316_s2 + $0x10] sm:$0xff] }
 0x588   :  { %v4383_v32 = vpop.eup %4382 }
 0x589   :  { %v4385_v56 = vpop.eup %4384  ;;  %v2195_v29 = vmul.f32 %v4383_v32, %v4381_v51  ;;  %v5963_v51 = vld [vmem:[%s6316_s2 + $0x18] sm:$0xff]  ;;  %v5977_v32 = vld [vmem:[%s6316_s2 + $0x28] sm:$0xff] }
 0x58a   :  { %v4387_v62 = vpop.eup %4386 }
 0x58b   :  { %v2194_v45 = vmul.f32 %v4387_v62, %v4385_v56  ;;  %v5984_v56 = vld [vmem:[%s6316_s2 + $0x30] sm:$0xff]  ;;  %v5998_v62 = vld [vmem:[%s6316_s2 + $0x40] sm:$0xff] }
 0x58c   :  { %v4389_v21 = vpop.eup %4388 }
 0x58d   :  { %v2189_v46 = vmul.f32 %v4389_v21, %v5851_v59 }
 0x58e   :  { %v4391_v60 = vpop.eup %4390 }
 0x58f   :  { %v4393_v37 = vpop.eup %4392  ;;  %v5931_v28 = vadd.f32 %v2193_v17, %v2189_v46  ;;  %v2188_v1 = vmul.f32 %v4391_v60, %v5859_v24  ;;  %v5949_v17 = vld [vmem:[%s6316_s2 + $0x8] sm:$0xff] }
 0x590   :  { %v4395_v0 = vpop.eup %4394  ;;  %v2177_v40 = vadd.f32 1.0, %v4393_v37 }
 0x591   :  { %v4397_v54 = vpop.eup %4396  ;;  %v5934_v13 = vadd.f32 %v2192_v30, %v2188_v1  ;;  %v2191_v11 = vmul.f32 %v4395_v0, %v5855_v14  ;;  %4404 = vtanh.f32 %v5931_v28  ;;  %v5970_v30 = vld [vmem:[%s6316_s2 + $0x20] sm:$0xff]  ;;  %v6454_v0 = vld [vmem:[#allocation12_spill] sm:$0xff] }
 0x592   :  { %v4399_v36 = vpop.eup %4398  ;;  %v2179_v25 = vadd.f32 1.0, %v4397_v54  ;;  %v617_v54 = vadd.f32 %v6454_v0, %v5320_v39  ;;  %v6461_v0 = vld [vmem:[#allocation30_spill] sm:$0xff] }
 0x593   :  { %v4401_v58 = vpop.eup %4400  ;;  %v5937_v26 = vadd.f32 %v2195_v29, %v2191_v11  ;;  %v2190_v23 = vmul.f32 %v4399_v36, %v5861_v42  ;;  %v5991_v29 = vld [vmem:[%s6316_s2 + $0x38] sm:$0xff] }
 0x594   :  { %v4403_v59 = vpop.eup %4402  ;;  %4406 = vrcp.f32 %v2179_v25  ;;  %v2178_v27 = vadd.f32 1.0, %v4401_v58  ;;  %v6455_v58 = vld [vmem:[#allocation18_spill] sm:$0xff] }
 0x595   :  { %v5941_v24 = vadd.f32 %v2194_v45, %v2190_v23  ;;  %4408 = vtanh.f32 %v5937_v26  ;;  %v2176_v19 = vadd.f32 1.0, %v4403_v59  ;;  %v635_v23 = vadd.f32 %v6455_v58, %v5348_v35 }
 0x596   :  { %4410 = vrcp.f32 %v2178_v27 }
 0x597   :  { %4412 = vtanh.f32 %v5941_v24 }
 0x598   :  { %4414 = vrcp.f32 %v2177_v40 }
 0x599   :  { %4416 = vtanh.f32 %v5934_v13 }
 0x59a   :  { %4418 = vrcp.f32 %v2176_v19  ;;  %v6456_v19 = vld [vmem:[#allocation16_spill] sm:$0xff] }
 0x59e   :  { %v4405_v14 = vpop.eup %4404 }
 0x5a1   :  { %v4407_v42 = vpop.eup %4406 }
 0x5a2   :  { %v4409_v44 = vpop.eup %4408 }
 0x5a3   :  { %v4411_v20 = vpop.eup %4410  ;;  %v2207_v6 = vmul.f32 %v4409_v44, %v4407_v42 }
 0x5a4   :  { %v4413_v5 = vpop.eup %4412 }
 0x5a5   :  { %v4415_v7 = vpop.eup %4414  ;;  %3959 = vmatprep.subr.mxu1 %v2207_v6  ;;  %v2206_v3 = vmul.f32 %v4413_v5, %v4411_v20 }
 0x5a6   :  { %v4417_v61 = vpop.eup %4416  ;;  %3960 = vmatpush3.msra.mxu1 %v2207_v6  ;;  %v2205_v9 = vmul.f32 %v4415_v7, %v4405_v14  ;;  %v629_v14 = vadd.f32 %v6456_v19, %v5362_v34  ;;  %v6457_v6 = vld [vmem:[#allocation22_spill] sm:$0xff] }
 0x5a7   :  { %3961 = vmatprep.subr.mxu1 %v2206_v3  ;;  %v4419_v48 = vpop.eup %4418  ;;  %v647_v5 = vadd.f32 %v6457_v6, %v5308_v57 }
 0x5a8   :  { %3962 = vmatpush3.msra.mxu1 %v2206_v3  ;;  %v2204_v43 = vmul.f32 %v4419_v48, %v4417_v61 }
 0x5a9   :  { %3963 = vmatprep.subr.mxu1 %v2205_v9 }
 0x5aa   :  { %3964 = vmatpush3.msra.mxu1 %v2205_v9  ;;  %v6458_v9 = vld [vmem:[#allocation20_spill] sm:$0xff] }
 0x5ab   :  { %3965 = vmatprep.subr.mxu1 %v2204_v43  ;;  %v641_v48 = vadd.f32 %v6458_v9, %v5332_v55 }
 0x5ac   :  { %3966 = vmatpush3.msra.mxu1 %v2204_v43 }
 0x5ad   :  { %3968 = vmatmul.mubr.msk.f32.vlgmr.msra.gmra.mxu1 %vm874_vm2, %v5949_v17 }
 0x5ae   :  { %3970 = vmatprep.mubr.msk.f32.mxu1 %vm874_vm2, %v5956_v12 }
 0x5b1   :  { %3971 = vmatmul.mubr.msk.f32.gmra.mxu1 %vm874_vm2, %v5963_v51 }
 0x5b2   :  { %3973 = vmatprep.mubr.msk.f32.mxu1 %vm874_vm2, %v5970_v30 }
 0x5b5   :  { %3974 = vmatmul.mubr.msk.f32.gmra.mxu1 %vm874_vm2, %v5977_v32 }
 0x5b6   :  { %3976 = vmatprep.mubr.msk.f32.mxu1 %vm874_vm2, %v5984_v56 }
 0x5b9   :  { %3977 = vmatmul.mubr.msk.f32.gmra.mxu1 %vm874_vm2, %v5991_v29 }
 0x5ba   :  { %3979 = vmatprep.mubr.msk.f32.mxu1 %vm874_vm2, %v5998_v62 }
 0x5bd   :  { %3980 = vmatmul.mubr.msk.f32.gmra.mxu1 %vm874_vm2, %v5770_v8  ;;  %v4636_v8 = vld [vmem:[%s6316_s2] sm:$0xff] }
 0x5be   :  { %3982 = vmatprep.mubr.msk.f32.mxu1 %vm874_vm2, %v5777_v4  ;;  %v6451_v4 = vld [vmem:[#allocation10_spill] sm:$0xff] }
 0x5c1   :  { %3983 = vmatmul.mubr.msk.f32.gmra.mxu1 %vm874_vm2, %v5784_v63  ;;  %v611_v63 = vadd.f32 %v6451_v4, %v5322_v41 }
 0x5c2   :  { %3985 = vmatprep.mubr.msk.f32.mxu1 %vm874_vm2, %v5791_v2  ;;  %v6452_v2 = vld [vmem:[#allocation8_spill] sm:$0xff] }
 0x5c3   :  { %v605_v21 = vadd.f32 %v6452_v2, %v5334_v47 }
 0x5c5   :  { %3986 = vmatmul.mubr.msk.f32.gmra.mxu1 %vm874_vm2, %v5798_v15 }
 0x5c6   :  { %3988 = vmatprep.mubr.msk.f32.mxu1 %vm874_vm2, %v5805_v10  ;;  %v6453_v10 = vld [vmem:[#allocation14_spill] sm:$0xff] }
 0x5c7   :  { %v623_v60 = vadd.f32 %v6453_v10, %v5300_v53 }
 0x5c9   :  { %3989 = vmatmul.mubr.msk.f32.gmra.mxu1 %vm874_vm2, %v5812_v22 }
 0x5ca   :  { %4031 = vmatprep.mubr.msk.f32.mxu1 %vm874_vm2, %v4636_v8 }
 0x66d   :  { %v3969_v45 = vpop.f32.mrf.mxu1 }
 0x66e   :  { %v2354_v15 = vadd.f32 %v3969_v45, %v611_v63  ;;  %v6459_v63 = vld [vmem:[#allocation26_spill] sm:$0xff] }
 0x66f   :  { %v2274_v46 = vpop.f32.mrf.mxu1  ;;  %v659_v45 = vadd.f32 %v6459_v63, %v5372_v50 }
 0x670   :  { %v3545_v37 = vmul.f32 -1.442695, %v2354_v15  ;;  %v2353_v22 = vadd.f32 %v2274_v46, %v605_v21  ;;  %v6460_v46 = vld [vmem:[#allocation24_spill] sm:$0xff] }
 0x671   :  { %v3972_v1 = vpop.f32.mrf.mxu1  ;;  %v653_v10 = vadd.f32 %v6460_v46, %v5386_v33 }
 0x672   :  { %4420 = vpow2.f32 %v3545_v37  ;;  %v3544_v11 = vmul.f32 -1.442695, %v2353_v22  ;;  %v2356_v36 = vadd.f32 %v3972_v1, %v623_v60 }
 0x673   :  { %v2284_v25 = vpop.f32.mrf.mxu1 }
 0x674   :  { %4422 = vpow2.f32 %v3544_v11  ;;  %v3547_v59 = vmul.f32 -1.442695, %v2356_v36  ;;  %v2355_v40 = vadd.f32 %v2284_v25, %v617_v54  ;;  %v671_v54 = vadd.f32 %v6461_v0, %v5342_v52 }
 0x675   :  { %v3975_v27 = vpop.f32.mrf.mxu1 }
 0x676   :  { %4424 = vpow2.f32 %v3547_v59  ;;  %v3546_v42 = vmul.f32 -1.442695, %v2355_v40  ;;  %v2358_v44 = vadd.f32 %v3975_v27, %v635_v23  ;;  %v6462_v23 = vld [vmem:[#allocation28_spill] sm:$0xff] }
 0x677   :  { %v2294_v20 = vpop.f32.mrf.mxu1  ;;  %v665_v59 = vadd.f32 %v6462_v23, %v5358_v38 }
 0x678   :  { %4426 = vpow2.f32 %v3546_v42  ;;  %v3549_v7 = vmul.f32 -1.442695, %v2358_v44  ;;  %v2357_v3 = vadd.f32 %v2294_v20, %v629_v14  ;;  %v6463_v42 = vld [vmem:[#allocation35_spill] sm:$0xff] }
 0x679   :  { %v3978_v61 = vpop.f32.mrf.mxu1  ;;  %v683_v44 = vadd.f32 %v6463_v42, %v5396_v16 }
 0x67a   :  { %4428 = vpow2.f32 %v3549_v7  ;;  %v3548_v43 = vmul.f32 -1.442695, %v2357_v3  ;;  %v2360_v8 = vadd.f32 %v3978_v61, %v647_v5 }
 0x67b   :  { %v2304_v4 = vpop.f32.mrf.mxu1 }
 0x67c   :  { %4430 = vpow2.f32 %v3548_v43  ;;  %v3551_v2 = vmul.f32 -1.442695, %v2360_v8  ;;  %v2359_v21 = vadd.f32 %v2304_v4, %v641_v48  ;;  %v6464_v43 = vld [vmem:[#allocation33_spill] sm:$0xff]  ;;  %v6465_v4 = vld [vmem:[#allocation40_spill] sm:$0xff] }
 0x67d   :  { %v3981_v15 = vpop.f32.mrf.mxu1  ;;  %v677_v8 = vadd.f32 %v6464_v43, %v5406_v18  ;;  %v695_v63 = vadd.f32 %v6465_v4, %v5370_v31 }
 0x67e   :  { %4432 = vpow2.f32 %v3551_v2  ;;  %v3550_v60 = vmul.f32 -1.442695, %v2359_v21  ;;  %v2362_v37 = vadd.f32 %v3981_v15, %v659_v45  ;;  %v6466_v21 = vld [vmem:[#allocation38_spill] sm:$0xff] }
 0x67f   :  { %v4421_v22 = vpop.eup %4420  ;;  %v2314_v1 = vpop.f32.mrf.mxu1  ;;  %v689_v15 = vadd.f32 %v6466_v21, %v5384_v49 }
 0x680   :  { %v2382_v11 = vadd.f32 1.0, %v4421_v22  ;;  %4434 = vpow2.f32 %v3550_v60  ;;  %v2361_v36 = vadd.f32 %v2314_v1, %v653_v10 }
 0x681   :  { %v4423_v25 = vpop.eup %4422  ;;  %4436 = vtanh.f32 %v2362_v37  ;;  %v3984_v58 = vpop.f32.mrf.mxu1 }
 0x682   :  { %4438 = vrcp.f32 %v2382_v11  ;;  %v2381_v40 = vadd.f32 1.0, %v4423_v25  ;;  %v2364_v27 = vadd.f32 %v3984_v58, %v671_v54 }
 0x683   :  { %v4425_v19 = vpop.eup %4424  ;;  %4440 = vtanh.f32 %v2361_v36  ;;  %v2324_v14 = vpop.f32.mrf.mxu1 }
 0x684   :  { %4442 = vrcp.f32 %v2381_v40  ;;  %v2384_v20 = vadd.f32 1.0, %v4425_v19  ;;  %v2363_v6 = vadd.f32 %v2324_v14, %v665_v59 }
 0x685   :  { %v4427_v5 = vpop.eup %4426  ;;  %4444 = vtanh.f32 %v2364_v27  ;;  %v3987_v7 = vpop.f32.mrf.mxu1 }
 0x686   :  { %4446 = vrcp.f32 %v2384_v20  ;;  %v2383_v3 = vadd.f32 1.0, %v4427_v5  ;;  %v2366_v61 = vadd.f32 %v3987_v7, %v683_v44 }
 0x687   :  { %v4429_v9 = vpop.eup %4428  ;;  %4448 = vtanh.f32 %v2363_v6  ;;  %v2334_v48 = vpop.f32.mrf.mxu1 }
 0x688   :  { %4450 = vrcp.f32 %v2383_v3  ;;  %v2406_v45 = vadd.f32 1.0, %v4429_v9  ;;  %v3553_v46 = vmul.f32 -1.442695, %v2366_v61  ;;  %v2365_v37 = vadd.f32 %v2334_v48, %v677_v8 }
 0x689   :  { %v4431_v2 = vpop.eup %4430  ;;  %v3990_v10 = vpop.f32.mrf.mxu1 }
 0x68a   :  { %4452 = vrcp.f32 %v2406_v45  ;;  %v2405_v60 = vadd.f32 1.0, %v4431_v2  ;;  %v2368_v22 = vadd.f32 %v3990_v10, %v695_v63  ;;  %v3552_v59 = vmul.f32 -1.442695, %v2365_v37 }
 0x68b   :  { %v4433_v1 = vpop.eup %4432  ;;  %v2344_v0 = vpop.f32.mrf.mxu1 }
 0x68c   :  { %4454 = vrcp.f32 %v2405_v60  ;;  %v2408_v54 = vadd.f32 1.0, %v4433_v1  ;;  %v3555_v11 = vmul.f32 -1.442695, %v2368_v22  ;;  %v2367_v36 = vadd.f32 %v2344_v0, %v689_v15 }
 0x68d   :  { %v4435_v25 = vpop.eup %4434  ;;  %4456 = vpow2.f32 %v3553_v46 }
 0x68e   :  { %v4437_v58 = vpop.eup %4436  ;;  %4458 = vrcp.f32 %v2408_v54  ;;  %v2407_v23 = vadd.f32 1.0, %v4435_v25  ;;  %v3554_v40 = vmul.f32 -1.442695, %v2367_v36 }
 0x68f   :  { %v4439_v27 = vpop.eup %4438  ;;  %4460 = vpow2.f32 %v3555_v11 }
 0x690   :  { %v4441_v19 = vpop.eup %4440  ;;  %4462 = vrcp.f32 %v2407_v23  ;;  %v2450_v14 = vmul.f32 %v4439_v27, %v4437_v58 }
 0x691   :  { %v4443_v42 = vpop.eup %4442  ;;  %4464 = vpow2.f32 %v3554_v40 }
 0x692   :  { %v4445_v44 = vpop.eup %4444  ;;  %v2449_v20 = vmul.f32 %v4443_v42, %v4441_v19  ;;  %4466 = vpow2.f32 %v3552_v59  ;;  %v6087_v42 = vld [vmem:[%s6316_s2 + $0x48] sm:$0xff] }
 0x693   :  { %v4447_v6 = vpop.eup %4446 }
 0x694   :  { %v4449_v5 = vpop.eup %4448  ;;  %v2452_v7 = vmul.f32 %v4447_v6, %v4445_v44  ;;  %v6094_v44 = vld [vmem:[%s6316_s2 + $0x50] sm:$0xff]  ;;  %v6108_v6 = vld [vmem:[%s6316_s2 + $0x60] sm:$0xff] }
 0x695   :  { %v4451_v3 = vpop.eup %4450 }
 0x696   :  { %v2451_v61 = vmul.f32 %v4451_v3, %v4449_v5  ;;  %v6115_v5 = vld [vmem:[%s6316_s2 + $0x68] sm:$0xff]  ;;  %v6129_v3 = vld [vmem:[%s6316_s2 + $0x78] sm:$0xff] }
 0x697   :  { %v4453_v9 = vpop.eup %4452 }
 0x698   :  { %v2446_v48 = vmul.f32 %v4453_v9, %v5931_v28 }
 0x699   :  { %v4455_v43 = vpop.eup %4454 }
 0x69a   :  { %v4457_v8 = vpop.eup %4456  ;;  %v6053_v4 = vadd.f32 %v2450_v14, %v2446_v48  ;;  %v2445_v63 = vmul.f32 %v4455_v43, %v5934_v13  ;;  %v6468_v43 = vld [vmem:[#allocation62_spill] sm:$0xff] }
 0x69b   :  { %v4459_v45 = vpop.eup %4458  ;;  %v2434_v1 = vadd.f32 1.0, %v4457_v8  ;;  %v764_v8 = vadd.f32 %v6468_v43, %v5334_v47  ;;  %v6474_v43 = vld [vmem:[#allocation74_spill] sm:$0xff] }
 0x69c   :  { %v4461_v2 = vpop.eup %4460  ;;  %v6056_v21 = vadd.f32 %v2449_v20, %v2445_v63  ;;  %v2448_v15 = vmul.f32 %v4459_v45, %v5937_v26  ;;  %4468 = vtanh.f32 %v6053_v4  ;;  %v6101_v20 = vld [vmem:[%s6316_s2 + $0x58] sm:$0xff] }
 0x69d   :  { %v4463_v46 = vpop.eup %4462  ;;  %v2436_v10 = vadd.f32 1.0, %v4461_v2  ;;  %v6469_v2 = vld [vmem:[#allocation68_spill] sm:$0xff] }
 0x69e   :  { %v4465_v60 = vpop.eup %4464  ;;  %v6059_v37 = vadd.f32 %v2452_v7, %v2448_v15  ;;  %v2447_v22 = vmul.f32 %v4463_v46, %v5941_v24  ;;  %v6122_v7 = vld [vmem:[%s6316_s2 + $0x70] sm:$0xff]  ;;  %v782_v15 = vadd.f32 %v6469_v2, %v5300_v53 }
 0x69f   :  { %v4467_v28 = vpop.eup %4466  ;;  %4470 = vrcp.f32 %v2436_v10  ;;  %v2435_v0 = vadd.f32 1.0, %v4465_v60 }
 0x6a0   :  { %v6063_v13 = vadd.f32 %v2451_v61, %v2447_v22  ;;  %4472 = vtanh.f32 %v6059_v37  ;;  %v2433_v54 = vadd.f32 1.0, %v4467_v28  ;;  %v6467_v61 = vld [vmem:[#allocation64_spill] sm:$0xff]  ;;  %v6470_v22 = vld [vmem:[#allocation66_spill] sm:$0xff] }
 0x6a1   :  { %4474 = vrcp.f32 %v2435_v0  ;;  %v770_v9 = vadd.f32 %v6467_v61, %v5322_v41  ;;  %v776_v28 = vadd.f32 %v6470_v22, %v5320_v39 }
 0x6a2   :  { %4476 = vtanh.f32 %v6063_v13 }
 0x6a3   :  { %4478 = vrcp.f32 %v2434_v1 }
 0x6a4   :  { %4480 = vtanh.f32 %v6056_v21 }
 0x6a5   :  { %4482 = vrcp.f32 %v2433_v54 }
 0x6a9   :  { %v4469_v26 = vpop.eup %4468 }
 0x6ac   :  { %v4471_v24 = vpop.eup %4470 }
 0x6ad   :  { %v4473_v11 = vpop.eup %4472 }
 0x6ae   :  { %v4475_v36 = vpop.eup %4474  ;;  %v2464_v25 = vmul.f32 %v4473_v11, %v4471_v24 }
 0x6af   :  { %v4477_v58 = vpop.eup %4476 }
 0x6b0   :  { %v4479_v23 = vpop.eup %4478  ;;  %3991 = vmatprep.subr.mxu0 %v2464_v25  ;;  %v2463_v59 = vmul.f32 %v4477_v58, %v4475_v36  ;;  %v6472_v58 = vld [vmem:[#allocation70_spill] sm:$0xff] }
 0x6b1   :  { %v4481_v40 = vpop.eup %4480  ;;  %3992 = vmatpush3.msra.mxu0 %v2464_v25  ;;  %v2462_v27 = vmul.f32 %v4479_v23, %v4469_v26  ;;  %v6471_v26 = vld [vmem:[#allocation72_spill] sm:$0xff]  ;;  %v788_v23 = vadd.f32 %v6472_v58, %v5362_v34 }
 0x6b2   :  { %3993 = vmatprep.subr.mxu0 %v2463_v59  ;;  %v4483_v19 = vpop.eup %4482  ;;  %v794_v24 = vadd.f32 %v6471_v26, %v5348_v35 }
 0x6b3   :  { %3994 = vmatpush3.msra.mxu0 %v2463_v59  ;;  %v2461_v14 = vmul.f32 %v4483_v19, %v4481_v40  ;;  %v6473_v19 = vld [vmem:[#allocation76_spill] sm:$0xff] }
 0x6b4   :  { %3995 = vmatprep.subr.mxu0 %v2462_v27 }
 0x6b5   :  { %3996 = vmatpush3.msra.mxu0 %v2462_v27 }
 0x6b6   :  { %3997 = vmatprep.subr.mxu0 %v2461_v14 }
 0x6b7   :  { %3998 = vmatpush3.msra.mxu0 %v2461_v14  ;;  %v806_v14 = vadd.f32 %v6473_v19, %v5308_v57 }
 0x6b8   :  { %4000 = vmatmul.mubr.msk.f32.vlgmr.msra.gmra.mxu0 %vm874_vm2, %v5949_v17 }
 0x6b9   :  { %4002 = vmatprep.mubr.msk.f32.mxu0 %vm874_vm2, %v5956_v12 }
 0x6bc   :  { %4003 = vmatmul.mubr.msk.f32.gmra.mxu0 %vm874_vm2, %v5963_v51 }
 0x6bd   :  { %4005 = vmatprep.mubr.msk.f32.mxu0 %vm874_vm2, %v5970_v30 }
 0x6c0   :  { %4006 = vmatmul.mubr.msk.f32.gmra.mxu0 %vm874_vm2, %v5977_v32 }
 0x6c1   :  { %4008 = vmatprep.mubr.msk.f32.mxu0 %vm874_vm2, %v5984_v56 }
 0x6c4   :  { %4009 = vmatmul.mubr.msk.f32.gmra.mxu0 %vm874_vm2, %v5991_v29 }
 0x6c5   :  { %4011 = vmatprep.mubr.msk.f32.mxu0 %vm874_vm2, %v5998_v62 }
 0x6c8   :  { %4012 = vmatmul.mubr.msk.f32.gmra.mxu0 %vm874_vm2, %v6087_v42 }
 0x6c9   :  { %4014 = vmatprep.mubr.msk.f32.mxu0 %vm874_vm2, %v6094_v44 }
 0x6cc   :  { %4015 = vmatmul.mubr.msk.f32.gmra.mxu0 %vm874_vm2, %v6101_v20 }
 0x6cd   :  { %4017 = vmatprep.mubr.msk.f32.mxu0 %vm874_vm2, %v6108_v6 }
 0x6d0   :  { %4018 = vmatmul.mubr.msk.f32.gmra.mxu0 %vm874_vm2, %v6115_v5 }
 0x6d1   :  { %4020 = vmatprep.mubr.msk.f32.mxu0 %vm874_vm2, %v6122_v7 }
 0x6d4   :  { %4021 = vmatmul.mubr.msk.f32.gmra.mxu0 %vm874_vm2, %v6129_v3 }
 0x778   :  { %v4001_v48 = vpop.f32.mrf.mxu0 }
 0x779   :  { %v2611_v63 = vadd.f32 %v4001_v48, %v770_v9 }
 0x77a   :  { %v2531_v45 = vpop.f32.mrf.mxu0 }
 0x77b   :  { %v3573_v46 = vmul.f32 -1.442695, %v2611_v63  ;;  %v2610_v10 = vadd.f32 %v2531_v45, %v764_v8  ;;  %v800_v8 = vadd.f32 %v6474_v43, %v5332_v55 }
 0x77c   :  { %v4004_v60 = vpop.f32.mrf.mxu0 }
 0x77d   :  { %4484 = vpow2.f32 %v3573_v46  ;;  %v3572_v1 = vmul.f32 -1.442695, %v2610_v10  ;;  %v2613_v0 = vadd.f32 %v4004_v60, %v782_v15  ;;  %v6475_v15 = vld [vmem:[#allocation80_spill] sm:$0xff] }
 0x77e   :  { %v2541_v54 = vpop.f32.mrf.mxu0  ;;  %v818_v46 = vadd.f32 %v6475_v15, %v5372_v50 }
 0x77f   :  { %4486 = vpow2.f32 %v3572_v1  ;;  %v3575_v11 = vmul.f32 -1.442695, %v2613_v0  ;;  %v2612_v36 = vadd.f32 %v2541_v54, %v776_v28  ;;  %v6476_v28 = vld [vmem:[#allocation78_spill] sm:$0xff] }
 0x780   :  { %v4007_v25 = vpop.f32.mrf.mxu0  ;;  %v812_v1 = vadd.f32 %v6476_v28, %v5386_v33 }
 0x781   :  { %4488 = vpow2.f32 %v3575_v11  ;;  %v3574_v59 = vmul.f32 -1.442695, %v2612_v36  ;;  %v2615_v40 = vadd.f32 %v4007_v25, %v794_v24  ;;  %v6477_v11 = vld [vmem:[#allocation84_spill] sm:$0xff] }
 0x782   :  { %v2551_v27 = vpop.f32.mrf.mxu0  ;;  %v830_v36 = vadd.f32 %v6477_v11, %v5342_v52 }
 0x783   :  { %4490 = vpow2.f32 %v3574_v59  ;;  %v3577_v61 = vmul.f32 -1.442695, %v2615_v40  ;;  %v2614_v9 = vadd.f32 %v2551_v27, %v788_v23  ;;  %v6478_v40 = vld [vmem:[#allocation82_spill] sm:$0xff] }
 0x784   :  { %v4010_v48 = vpop.f32.mrf.mxu0  ;;  %v824_v27 = vadd.f32 %v6478_v40, %v5358_v38 }
 0x785   :  { %4492 = vpow2.f32 %v3577_v61  ;;  %v3576_v63 = vmul.f32 -1.442695, %v2614_v9  ;;  %v2617_v45 = vadd.f32 %v4010_v48, %v806_v14  ;;  %v6479_v48 = vld [vmem:[#allocation88_spill] sm:$0xff] }
 0x786   :  { %v2561_v2 = vpop.f32.mrf.mxu0  ;;  %v842_v43 = vadd.f32 %v6479_v48, %v5396_v16 }
 0x787   :  { %4494 = vpow2.f32 %v3576_v63  ;;  %v3579_v10 = vmul.f32 -1.442695, %v2617_v45  ;;  %v2616_v60 = vadd.f32 %v2561_v2, %v800_v8 }
 0x788   :  { %v4013_v22 = vpop.f32.mrf.mxu0 }
 0x789   :  { %4496 = vpow2.f32 %v3579_v10  ;;  %v3578_v0 = vmul.f32 -1.442695, %v2616_v60  ;;  %v2619_v54 = vadd.f32 %v4013_v22, %v818_v46  ;;  %v6480_v22 = vld [vmem:[#allocation86_spill] sm:$0xff] }
 0x78a   :  { %v4485_v26 = vpop.eup %4484  ;;  %v2571_v24 = vpop.f32.mrf.mxu0  ;;  %v836_v28 = vadd.f32 %v6480_v22, %v5406_v18 }
 0x78b   :  { %v2639_v25 = vadd.f32 1.0, %v4485_v26  ;;  %4498 = vpow2.f32 %v3578_v0  ;;  %v2618_v58 = vadd.f32 %v2571_v24, %v812_v1  ;;  %v6481_v1 = vld [vmem:[#allocation92_spill] sm:$0xff]  ;;  %v6482_v24 = vld [vmem:[#allocation90_spill] sm:$0xff] }
 0x78c   :  { %v4487_v23 = vpop.eup %4486  ;;  %4500 = vtanh.f32 %v2619_v54  ;;  %v4016_v59 = vpop.f32.mrf.mxu0  ;;  %v854_v0 = vadd.f32 %v6481_v1, %v5370_v31  ;;  %v848_v11 = vadd.f32 %v6482_v24, %v5384_v49 }
 0x78d   :  { %4502 = vrcp.f32 %v2639_v25  ;;  %v2638_v19 = vadd.f32 1.0, %v4487_v23  ;;  %v2621_v14 = vadd.f32 %v4016_v59, %v830_v36 }
 0x78e   :  { %v4489_v61 = vpop.eup %4488  ;;  %4504 = vtanh.f32 %v2618_v58  ;;  %v2581_v9 = vpop.f32.mrf.mxu0 }
 0x78f   :  { %4506 = vrcp.f32 %v2638_v19  ;;  %v2641_v8 = vadd.f32 1.0, %v4489_v61  ;;  %v2620_v63 = vadd.f32 %v2581_v9, %v824_v27 }
 0x790   :  { %v4491_v45 = vpop.eup %4490  ;;  %4508 = vtanh.f32 %v2621_v14  ;;  %v4019_v2 = vpop.f32.mrf.mxu0 }
 0x791   :  { %4510 = vrcp.f32 %v2641_v8  ;;  %v2640_v15 = vadd.f32 1.0, %v4491_v45  ;;  %v2623_v46 = vadd.f32 %v4019_v2, %v842_v43 }
 0x792   :  { %v4493_v10 = vpop.eup %4492  ;;  %4512 = vtanh.f32 %v2620_v63  ;;  %v2591_v60 = vpop.f32.mrf.mxu0 }
 0x793   :  { %4514 = vrcp.f32 %v2640_v15  ;;  %v2663_v54 = vadd.f32 1.0, %v4493_v10  ;;  %v3581_v36 = vmul.f32 -1.442695, %v2623_v46  ;;  %v2622_v23 = vadd.f32 %v2591_v60, %v836_v28 }
 0x794   :  { %v4495_v26 = vpop.eup %4494  ;;  %v4022_v25 = vpop.f32.mrf.mxu0 }
 0x795   :  { %4516 = vrcp.f32 %v2663_v54  ;;  %v2662_v58 = vadd.f32 1.0, %v4495_v26  ;;  %v2625_v59 = vadd.f32 %v4022_v25, %v854_v0  ;;  %v3580_v8 = vmul.f32 -1.442695, %v2622_v23 }
 0x796   :  { %v4497_v40 = vpop.eup %4496  ;;  %v2601_v27 = vpop.f32.mrf.mxu0 }
 0x797   :  { %4518 = vrcp.f32 %v2662_v58  ;;  %v2665_v19 = vadd.f32 1.0, %v4497_v40  ;;  %v3583_v14 = vmul.f32 -1.442695, %v2625_v59  ;;  %v2624_v61 = vadd.f32 %v2601_v27, %v848_v11 }
 0x798   :  { %v4499_v9 = vpop.eup %4498  ;;  %4520 = vpow2.f32 %v3581_v36 }
 0x799   :  { %v4501_v48 = vpop.eup %4500  ;;  %4522 = vrcp.f32 %v2665_v19  ;;  %v2664_v43 = vadd.f32 1.0, %v4499_v9  ;;  %v3582_v63 = vmul.f32 -1.442695, %v2624_v61 }
 0x79a   :  { %v4503_v45 = vpop.eup %4502  ;;  %4524 = vpow2.f32 %v3583_v14 }
 0x79b   :  { %v4505_v2 = vpop.eup %4504  ;;  %4526 = vrcp.f32 %v2664_v43  ;;  %v2707_v15 = vmul.f32 %v4503_v45, %v4501_v48 }
 0x79c   :  { %v4507_v46 = vpop.eup %4506  ;;  %4528 = vpow2.f32 %v3582_v63 }
 0x79d   :  { %v4509_v10 = vpop.eup %4508  ;;  %v2706_v60 = vmul.f32 %v4507_v46, %v4505_v2  ;;  %4530 = vpow2.f32 %v3580_v8 }
 0x79e   :  { %v4511_v22 = vpop.eup %4510 }
 0x79f   :  { %v4513_v28 = vpop.eup %4512  ;;  %v2709_v1 = vmul.f32 %v4511_v22, %v4509_v10 }
 0x7a0   :  { %v4515_v0 = vpop.eup %4514 }
 0x7a1   :  { %v2708_v54 = vmul.f32 %v4515_v0, %v4513_v28 }
 0x7a2   :  { %v4517_v26 = vpop.eup %4516 }
 0x7a3   :  { %v2703_v24 = vmul.f32 %v4517_v26, %v6053_v4 }
 0x7a4   :  { %v4519_v11 = vpop.eup %4518 }
 0x7a5   :  { %v4521_v36 = vpop.eup %4520  ;;  %v6166_v25 = vadd.f32 %v2707_v15, %v2703_v24  ;;  %v2702_v58 = vmul.f32 %v4519_v11, %v6056_v21 }
 0x7a6   :  { %v4523_v23 = vpop.eup %4522  ;;  %v2691_v43 = vadd.f32 1.0, %v4521_v36 }
 0x7a7   :  { %v4525_v59 = vpop.eup %4524  ;;  %v6169_v40 = vadd.f32 %v2706_v60, %v2702_v58  ;;  %v2705_v27 = vmul.f32 %v4523_v23, %v6059_v37  ;;  %4532 = vtanh.f32 %v6166_v25  ;;  %v6488_v23 = vld [vmem:[#allocation71_spill] sm:$0xff] }
 0x7a8   :  { %v4527_v19 = vpop.eup %4526  ;;  %v2693_v14 = vadd.f32 1.0, %v4525_v59 }
 0x7a9   :  { %v4529_v61 = vpop.eup %4528  ;;  %v6172_v9 = vadd.f32 %v2709_v1, %v2705_v27  ;;  %v2704_v48 = vmul.f32 %v4527_v19, %v6063_v13 }
 0x7aa   :  { %v4531_v4 = vpop.eup %4530  ;;  %4534 = vrcp.f32 %v2693_v14  ;;  %v2692_v8 = vadd.f32 1.0, %v4529_v61 }
 0x7ab   :  { %v6176_v21 = vadd.f32 %v2708_v54, %v2704_v48  ;;  %4536 = vtanh.f32 %v6172_v9  ;;  %v2690_v63 = vadd.f32 1.0, %v4531_v4 }
 0x7ac   :  { %4538 = vrcp.f32 %v2692_v8 }
 0x7ad   :  { %4540 = vtanh.f32 %v6176_v21 }
 0x7ae   :  { %4542 = vrcp.f32 %v2691_v43 }
 0x7af   :  { %4544 = vtanh.f32 %v6169_v40 }
 0x7b0   :  { %4546 = vrcp.f32 %v2690_v63 }
 0x7b4   :  { %v4533_v37 = vpop.eup %4532 }
 0x7b7   :  { %v4535_v13 = vpop.eup %4534 }
 0x7b8   :  { %v4537_v45 = vpop.eup %4536 }
 0x7b9   :  { %v4539_v2 = vpop.eup %4538  ;;  %v2721_v15 = vmul.f32 %v4537_v45, %v4535_v13 }
 0x7ba   :  { %v4541_v46 = vpop.eup %4540 }
 0x7bb   :  { %v4543_v10 = vpop.eup %4542  ;;  %4023 = vmatprep.subr.mxu1 %v2721_v15  ;;  %v2720_v60 = vmul.f32 %v4541_v46, %v4539_v2 }
 0x7bc   :  { %v4545_v22 = vpop.eup %4544  ;;  %4024 = vmatpush3.msra.mxu1 %v2721_v15  ;;  %v2719_v28 = vmul.f32 %v4543_v10, %v4533_v37 }
 0x7bd   :  { %4025 = vmatprep.subr.mxu1 %v2720_v60  ;;  %v4547_v1 = vpop.eup %4546 }
 0x7be   :  { %4026 = vmatpush3.msra.mxu1 %v2720_v60  ;;  %v2718_v0 = vmul.f32 %v4547_v1, %v4545_v22 }
 0x7bf   :  { %4027 = vmatprep.subr.mxu1 %v2719_v28 }
 0x7c0   :  { %4028 = vmatpush3.msra.mxu1 %v2719_v28 }
 0x7c1   :  { %4029 = vmatprep.subr.mxu1 %v2718_v0 }
 0x7c2   :  { %4030 = vmatpush3.msra.mxu1 %v2718_v0 }
 0x7c3   :  { %4032 = vmatmul.mubr.msk.f32.vlgmr.msra.gmra.mxu1 %vm874_vm2, %v5949_v17  ;;  %v2979_v17 = vld [vmem:[%s6318_s4] sm:$0xff] }
 0x7c4   :  { %4034 = vmatprep.mubr.msk.f32.mxu1 %vm874_vm2, %v5956_v12  ;;  %4063 = vmatprep.mubr.msk.f32.mxu0 %vm874_vm2, %v2979_v17  ;;  %v6483_v12 = vld [vmem:[#allocation65_spill] sm:$0xff] }
 0x7c7   :  { %4035 = vmatmul.mubr.msk.f32.gmra.mxu1 %vm874_vm2, %v5963_v51  ;;  %v772_v51 = vadd.f32 %v6483_v12, %v5322_v41  ;;  %v6487_v41 = vld [vmem:[#allocation73_spill] sm:$0xff] }
 0x7c8   :  { %4037 = vmatprep.mubr.msk.f32.mxu1 %vm874_vm2, %v5970_v30  ;;  %v796_v11 = vadd.f32 %v6487_v41, %v5348_v35  ;;  %v6490_v35 = vld [vmem:[#allocation75_spill] sm:$0xff] }
 0x7c9   :  { %v802_v43 = vadd.f32 %v6490_v35, %v5332_v55  ;;  %v6493_v55 = vld [vmem:[#allocation85_spill] sm:$0xff] }
 0x7ca   :  { %v832_v1 = vadd.f32 %v6493_v55, %v5342_v52 }
 0x7cb   :  { %4038 = vmatmul.mubr.msk.f32.gmra.mxu1 %vm874_vm2, %v5977_v32  ;;  %v6484_v32 = vld [vmem:[#allocation63_spill] sm:$0xff] }
 0x7cc   :  { %4040 = vmatprep.mubr.msk.f32.mxu1 %vm874_vm2, %v5984_v56  ;;  %v766_v56 = vadd.f32 %v6484_v32, %v5334_v47 }
 0x7cf   :  { %4041 = vmatmul.mubr.msk.f32.gmra.mxu1 %vm874_vm2, %v5991_v29 }
 0x7d0   :  { %4043 = vmatprep.mubr.msk.f32.mxu1 %vm874_vm2, %v5998_v62 }
 0x7d3   :  { %4044 = vmatmul.mubr.msk.f32.gmra.mxu1 %vm874_vm2, %v6087_v42  ;;  %v6485_v42 = vld [vmem:[#allocation69_spill] sm:$0xff] }
 0x7d4   :  { %4046 = vmatprep.mubr.msk.f32.mxu1 %vm874_vm2, %v6094_v44  ;;  %v784_v44 = vadd.f32 %v6485_v42, %v5300_v53  ;;  %v790_v53 = vadd.f32 %v6488_v23, %v5362_v34  ;;  %v6491_v34 = vld [vmem:[#allocation81_spill] sm:$0xff] }
 0x7d5   :  { %v820_v13 = vadd.f32 %v6491_v34, %v5372_v50 }
 0x7d7   :  { %4047 = vmatmul.mubr.msk.f32.gmra.mxu1 %vm874_vm2, %v6101_v20 }
 0x7d8   :  { %4049 = vmatprep.mubr.msk.f32.mxu1 %vm874_vm2, %v6108_v6 }
 0x7db   :  { %4050 = vmatmul.mubr.msk.f32.gmra.mxu1 %vm874_vm2, %v6115_v5 }
 0x7dc   :  { %4052 = vmatprep.mubr.msk.f32.mxu1 %vm874_vm2, %v6122_v7  ;;  %v6486_v7 = vld [vmem:[#allocation67_spill] sm:$0xff] }
 0x7df   :  { %4053 = vmatmul.mubr.msk.f32.gmra.mxu1 %vm874_vm2, %v6129_v3  ;;  %v778_v3 = vadd.f32 %v6486_v7, %v5320_v39  ;;  %v6489_v39 = vld [vmem:[#allocation77_spill] sm:$0xff] }
 0x7e0   :  { %v808_v14 = vadd.f32 %v6489_v39, %v5308_v57  ;;  %v6492_v57 = vld [vmem:[#allocation79_spill] sm:$0xff] }
 0x7e1   :  { %v814_v46 = vadd.f32 %v6492_v57, %v5386_v33 }
 0x883   :  { %v4033_v30 = vpop.f32.mrf.mxu1 }
 0x884   :  { %v2868_v29 = vadd.f32 %v4033_v30, %v772_v51  ;;  %v6494_v51 = vld [vmem:[#allocation83_spill] sm:$0xff] }
 0x885   :  { %v2788_v62 = vpop.f32.mrf.mxu1  ;;  %v826_v30 = vadd.f32 %v6494_v51, %v5358_v38 }
 0x886   :  { %v3601_v20 = vmul.f32 -1.442695, %v2868_v29  ;;  %v2867_v6 = vadd.f32 %v2788_v62, %v766_v56  ;;  %v6495_v62 = vld [vmem:[#allocation89_spill] sm:$0xff] }
 0x887   :  { %v4036_v5 = vpop.f32.mrf.mxu1  ;;  %v844_v42 = vadd.f32 %v6495_v62, %v5396_v16 }
 0x888   :  { %4548 = vpow2.f32 %v3601_v20  ;;  %v3600_v54 = vmul.f32 -1.442695, %v2867_v6  ;;  %v2870_v26 = vadd.f32 %v4036_v5, %v784_v44  ;;  %v6496_v5 = vld [vmem:[#allocation87_spill] sm:$0xff] }
 0x889   :  { %v2798_v24 = vpop.f32.mrf.mxu1  ;;  %v838_v7 = vadd.f32 %v6496_v5, %v5406_v18 }
 0x88a   :  { %4550 = vpow2.f32 %v3600_v54  ;;  %v3603_v47 = vmul.f32 -1.442695, %v2870_v26  ;;  %v2869_v36 = vadd.f32 %v2798_v24, %v778_v3  ;;  %v6497_v26 = vld [vmem:[#allocation93_spill] sm:$0xff] }
 0x88b   :  { %v4039_v58 = vpop.f32.mrf.mxu1  ;;  %v856_v24 = vadd.f32 %v6497_v26, %v5370_v31 }
 0x88c   :  { %4552 = vpow2.f32 %v3603_v47  ;;  %v3602_v59 = vmul.f32 -1.442695, %v2869_v36  ;;  %v2872_v27 = vadd.f32 %v4039_v58, %v796_v11  ;;  %v6498_v58 = vld [vmem:[#allocation91_spill] sm:$0xff] }
 0x88d   :  { %v2808_v19 = vpop.f32.mrf.mxu1  ;;  %v850_v23 = vadd.f32 %v6498_v58, %v5384_v49  ;;  %v2986_v58 = vld [vmem:[%s6318_s4 + $0x38] sm:$0xff] }
 0x88e   :  { %4554 = vpow2.f32 %v3602_v59  ;;  %v3605_v61 = vmul.f32 -1.442695, %v2872_v27  ;;  %v2871_v48 = vadd.f32 %v2808_v19, %v790_v53 }
 0x88f   :  { %v4042_v4 = vpop.f32.mrf.mxu1 }
 0x890   :  { %4556 = vpow2.f32 %v3605_v61  ;;  %v3604_v8 = vmul.f32 -1.442695, %v2871_v48  ;;  %v2874_v63 = vadd.f32 %v4042_v4, %v808_v14 }
 0x891   :  { %v2818_v37 = vpop.f32.mrf.mxu1 }
 0x892   :  { %4558 = vpow2.f32 %v3604_v8  ;;  %v3607_v45 = vmul.f32 -1.442695, %v2874_v63  ;;  %v2873_v2 = vadd.f32 %v2818_v37, %v802_v43 }
 0x893   :  { %v4045_v15 = vpop.f32.mrf.mxu1 }
 0x894   :  { %4560 = vpow2.f32 %v3607_v45  ;;  %v3606_v10 = vmul.f32 -1.442695, %v2873_v2  ;;  %v2876_v60 = vadd.f32 %v4045_v15, %v820_v13 }
 0x895   :  { %v4549_v22 = vpop.eup %4548  ;;  %v2828_v28 = vpop.f32.mrf.mxu1 }
 0x896   :  { %v2896_v0 = vadd.f32 1.0, %v4549_v22  ;;  %4562 = vpow2.f32 %v3606_v10  ;;  %v2875_v17 = vadd.f32 %v2828_v28, %v814_v46 }
 0x897   :  { %v4551_v12 = vpop.eup %4550  ;;  %4564 = vtanh.f32 %v2876_v60  ;;  %v4048_v50 = vpop.f32.mrf.mxu1 }
 0x898   :  { %4566 = vrcp.f32 %v2896_v0  ;;  %v2895_v32 = vadd.f32 1.0, %v4551_v12  ;;  %v2878_v33 = vadd.f32 %v4048_v50, %v832_v1 }
 0x899   :  { %v4553_v56 = vpop.eup %4552  ;;  %4568 = vtanh.f32 %v2875_v17  ;;  %v2838_v29 = vpop.f32.mrf.mxu1 }
 0x89a   :  { %4570 = vrcp.f32 %v2895_v32  ;;  %v2898_v52 = vadd.f32 1.0, %v4553_v56  ;;  %v2877_v44 = vadd.f32 %v2838_v29, %v826_v30 }
 0x89b   :  { %v4555_v20 = vpop.eup %4554  ;;  %4572 = vtanh.f32 %v2878_v33  ;;  %v4051_v6 = vpop.f32.mrf.mxu1 }
 0x89c   :  { %4574 = vrcp.f32 %v2898_v52  ;;  %v2897_v38 = vadd.f32 1.0, %v4555_v20  ;;  %v2880_v3 = vadd.f32 %v4051_v6, %v844_v42 }
 0x89d   :  { %v4557_v54 = vpop.eup %4556  ;;  %4576 = vtanh.f32 %v2877_v44  ;;  %v2848_v41 = vpop.f32.mrf.mxu1 }
 0x89e   :  { %4578 = vrcp.f32 %v2897_v38  ;;  %v2920_v16 = vadd.f32 1.0, %v4557_v54  ;;  %v3609_v11 = vmul.f32 -1.442695, %v2880_v3  ;;  %v2879_v47 = vadd.f32 %v2848_v41, %v838_v7  ;;  %v2981_v41 = vld [vmem:[%s6318_s4 + $0x10] sm:$0xff] }
 0x89f   :  { %v4559_v36 = vpop.eup %4558  ;;  %v4054_v53 = vpop.f32.mrf.mxu1 }
 0x8a0   :  { %4580 = vrcp.f32 %v2920_v16  ;;  %v2919_v18 = vadd.f32 1.0, %v4559_v36  ;;  %v3608_v59 = vmul.f32 -1.442695, %v2879_v47  ;;  %v2882_v27 = vadd.f32 %v4054_v53, %v856_v24  ;;  %v2982_v16 = vld [vmem:[%s6318_s4 + $0x18] sm:$0xff]  ;;  %v2984_v47 = vld [vmem:[%s6318_s4 + $0x28] sm:$0xff]  ;;  %v2985_v36 = vld [vmem:[%s6318_s4 + $0x30] sm:$0xff] }
 0x8a1   :  { %v4561_v19 = vpop.eup %4560  ;;  %4582 = vpow2.f32 %v3609_v11  ;;  %v2858_v39 = vpop.f32.mrf.mxu1  ;;  %v2983_v11 = vld [vmem:[%s6318_s4 + $0x20] sm:$0xff]  ;;  %v2988_v53 = vld [vmem:[%s6318_s4 + $0x48] sm:$0xff] }
 0x8a2   :  { %4584 = vrcp.f32 %v2919_v18  ;;  %v2922_v31 = vadd.f32 1.0, %v4561_v19  ;;  %v3611_v14 = vmul.f32 -1.442695, %v2882_v27  ;;  %v2881_v61 = vadd.f32 %v2858_v39, %v850_v23  ;;  %v2987_v23 = vld [vmem:[%s6318_s4 + $0x40] sm:$0xff]  ;;  %v2989_v18 = vld [vmem:[%s6318_s4 + $0x50] sm:$0xff]  ;;  %v2992_v19 = vld [vmem:[%s6318_s4 + $0x68] sm:$0xff] }
 0x8a3   :  { %v4563_v48 = vpop.eup %4562  ;;  %4586 = vpow2.f32 %v3608_v59  ;;  %v2990_v59 = vld [vmem:[%s6318_s4 + $0x58] sm:$0xff]  ;;  %v2991_v27 = vld [vmem:[%s6318_s4 + $0x60] sm:$0xff]  ;;  %v2993_v39 = vld [vmem:[%s6318_s4 + $0x70] sm:$0xff] }
 0x8a4   :  { %v4565_v4 = vpop.eup %4564  ;;  %4588 = vrcp.f32 %v2922_v31  ;;  %v2921_v35 = vadd.f32 1.0, %v4563_v48  ;;  %v3610_v43 = vmul.f32 -1.442695, %v2881_v61  ;;  %v2994_v31 = vld [vmem:[%s6318_s4 + $0x78] sm:$0xff]  ;;  %v3014_v61 = vpop.permute.xlu0 %3013 }
 0x8a5   :  { %v4567_v8 = vpop.eup %4566  ;;  %4590 = vpow2.f32 %v3611_v14  ;;  %v3019_v14 = vpop.permute.xlu1 %3018 }
 0x8a6   :  { %v4569_v49 = vpop.eup %4568  ;;  %4592 = vrcp.f32 %v2921_v35  ;;  %v2964_v63 = vmul.f32 %v4567_v8, %v4565_v4 }
 0x8a7   :  { %v4571_v37 = vpop.eup %4570  ;;  %4594 = vpow2.f32 %v3610_v43 }
 0x8a8   :  { %v4573_v34 = vpop.eup %4572  ;;  %v2963_v13 = vmul.f32 %v4571_v37, %v4569_v49  ;;  %v3024_v4 = vpop.permute.xlu0 %3023 }
 0x8a9   :  { %v4575_v45 = vpop.eup %4574  ;;  %v3029_v48 = vpop.permute.xlu1 %3028 }
 0x8aa   :  { %v4577_v2 = vpop.eup %4576  ;;  %v2966_v15 = vmul.f32 %v4575_v45, %v4573_v34 }
 0x8ab   :  { %v4579_v57 = vpop.eup %4578 }
 0x8ac   :  { %v2965_v46 = vmul.f32 %v4579_v57, %v4577_v2  ;;  %v3034_v43 = vpop.permute.xlu0 %3033 }
 0x8ad   :  { %v4581_v10 = vpop.eup %4580  ;;  %v3039_v35 = vpop.permute.xlu1 %3038 }
 0x8ae   :  { %v4583_v60 = vpop.eup %4582  ;;  %v2960_v22 = vmul.f32 %v4581_v10, %v6166_v25 }
 0x8af   :  { %v4585_v28 = vpop.eup %4584  ;;  %v2948_v55 = vadd.f32 1.0, %v4583_v60 }
 0x8b0   :  { %v4587_v1 = vpop.eup %4586  ;;  %v2968_v0 = vadd.f32 %v2964_v63, %v2960_v22  ;;  %v2959_v17 = vmul.f32 %v4585_v28, %v6169_v40  ;;  %v3044_v2 = vpop.permute.xlu0 %3043 }
 0x8b1   :  { %v4589_v12 = vpop.eup %4588  ;;  %4596 = vrcp.f32 %v2948_v55  ;;  %v2947_v50 = vadd.f32 1.0, %v4587_v1  ;;  %v3049_v34 = vpop.permute.xlu1 %3048 }
 0x8b2   :  { %v4591_v51 = vpop.eup %4590  ;;  %4598 = vtanh.f32 %v2968_v0  ;;  %v2967_v30 = vadd.f32 %v2963_v13, %v2959_v17  ;;  %v2962_v32 = vmul.f32 %v4589_v12, %v6172_v9 }
 0x8b3   :  { %v4593_v33 = vpop.eup %4592  ;;  %4600 = vrcp.f32 %v2947_v50  ;;  %v2950_v56 = vadd.f32 1.0, %v4591_v51 }
 0x8b4   :  { %v4595_v29 = vpop.eup %4594  ;;  %4602 = vtanh.f32 %v2967_v30  ;;  %v2970_v25 = vadd.f32 %v2966_v15, %v2962_v32  ;;  %v2961_v62 = vmul.f32 %v4593_v33, %v6176_v21  ;;  %v2980_v21 = vld [vmem:[%s6318_s4 + $0x8] sm:$0xff]  ;;  %v3054_v55 = vpop.permute.xlu0 %3053  ;;  %s4668_s4 = smov [#allocation2]  }
 0x8b5   :  { %4604 = vrcp.f32 %v2950_v56  ;;  %v2949_v42 = vadd.f32 1.0, %v4595_v29  ;;  %v3059_v60 = vpop.permute.xlu1 %3058  ;;  %s3305_s10 = sshll.u32 %s4668_s4, 4  ;;  %s3306_s10 = int_to_ptr.vmem [resolvable:$true] %s3305_s10 }
 0x8b6   :  { %4606 = vtanh.f32 %v2970_v25  ;;  %v2969_v40 = vadd.f32 %v2965_v46, %v2961_v62  ;;  %s4644_s11 = scalar_lea.vmem %s3306_s10, 2048  ;;  %p4649_p1 = scmp.lt.s32.totalorder %s3306_s10, %s3306_s10 }
 0x8b7   :  { %4608 = vrcp.f32 %v2949_v42  ;;  %p4645_p0 = scmp.ne.s32.totalorder %s3306_s10, %s4644_s11  ;;  %p4650_p2 = scmp.lt.s32.totalorder %s4644_s11, %s4644_s11 }
 0x8b8   :  { %4610 = vtanh.f32 %v2969_v40  ;;  %v3064_v32 = vpop.permute.xlu0 %3063 }
 0x8b9   :  { %v3069_v50 = vpop.permute.xlu1 %3068  ;;  %p4651_p3 = por %p4650_p2, %p4649_p1 }
 0x8bb   :  { %p4652_p4 = pnand %p4651_p3, %p4645_p0 }
 0x8bd   :  { %v3079_v62 = vpop.permute.xlu1 %3078 }
 0x8be   :  { %v4597_v52 = vpop.eup %4596 }
 0x8bf   :  { %v4599_v44 = vpop.eup %4598 }
 0x8c0   :  { %v4601_v20 = vpop.eup %4600  ;;  %v2976_v6 = vmul.f32 %v4599_v44, %v4597_v52  ;;  %v3074_v52 = vpop.permute.xlu0 %3073 }
 0x8c1   :  { %v4603_v5 = vpop.eup %4602 }
 0x8c2   :  { %v4605_v9 = vpop.eup %4604  ;;  %v2975_v7 = vmul.f32 %v4603_v5, %v4601_v20 }
 0x8c3   :  { %v4607_v38 = vpop.eup %4606 }
 0x8c4   :  { %v4609_v3 = vpop.eup %4608  ;;  %v2978_v54 = vmul.f32 %v4607_v38, %v4605_v9  ;;  %v3089_v9 = vpop.permute.xlu1 %3088 }
 0x8c5   :  { %v4611_v26 = vpop.eup %4610 }
 0x8c6   :  { %4055 = vmatprep.subr.mxu0 %v2978_v54  ;;  %v2977_v24 = vmul.f32 %v4611_v26, %v4609_v3  ;;  %v3084_v3 = vpop.permute.xlu0 %3083 }
 0x8c7   :  { %4056 = vmatpush3.msra.mxu0 %v2978_v54 }
 0x8c8   :  { %4057 = vmatprep.subr.mxu0 %v2977_v24 }
 0x8c9   :  { %4058 = vmatpush3.msra.mxu0 %v2977_v24 }
 0x8ca   :  { %4059 = vmatprep.subr.mxu0 %v2976_v6 }
 0x8cb   :  { %4060 = vmatpush3.msra.mxu0 %v2976_v6 }
 0x8cc   :  { %4061 = vmatprep.subr.mxu0 %v2975_v7 }
 0x8cd   :  { %4062 = vmatpush3.msra.mxu0 %v2975_v7 }
 0x8ce   :  { %4064 = vmatmul.mubr.msk.f32.vlgmr.msra.gmra.mxu0 %vm874_vm2, %v2980_v21 }
 0x8cf   :  { %4066 = vmatprep.mubr.msk.f32.mxu0 %vm874_vm2, %v2981_v41 }
 0x8d2   :  { %4067 = vmatmul.mubr.msk.f32.gmra.mxu0 %vm874_vm2, %v2982_v16 }
 0x8d3   :  { %4069 = vmatprep.mubr.msk.f32.mxu0 %vm874_vm2, %v2983_v11 }
 0x8d6   :  { %4070 = vmatmul.mubr.msk.f32.gmra.mxu0 %vm874_vm2, %v2984_v47 }
 0x8d7   :  { %4072 = vmatprep.mubr.msk.f32.mxu0 %vm874_vm2, %v2985_v36 }
 0x8da   :  { %4073 = vmatmul.mubr.msk.f32.gmra.mxu0 %vm874_vm2, %v2986_v58 }
 0x8db   :  { %4075 = vmatprep.mubr.msk.f32.mxu0 %vm874_vm2, %v2987_v23 }
 0x8de   :  { %4076 = vmatmul.mubr.msk.f32.gmra.mxu0 %vm874_vm2, %v2988_v53 }
 0x8df   :  { %4078 = vmatprep.mubr.msk.f32.mxu0 %vm874_vm2, %v2989_v18 }
 0x8e2   :  { %4079 = vmatmul.mubr.msk.f32.gmra.mxu0 %vm874_vm2, %v2990_v59 }
 0x8e3   :  { %4081 = vmatprep.mubr.msk.f32.mxu0 %vm874_vm2, %v2991_v27 }
 0x8e6   :  { %4082 = vmatmul.mubr.msk.f32.gmra.mxu0 %vm874_vm2, %v2992_v19 }
 0x8e7   :  { %4084 = vmatprep.mubr.msk.f32.mxu0 %vm874_vm2, %v2993_v39 }
 0x8ea   :  { %4085 = vmatmul.mubr.msk.f32.gmra.mxu0 %vm874_vm2, %v2994_v31 }
 0x98e   :  { %v4065_v8 = vpop.f32.mrf.mxu0 }
 0x98f   :  { %v3211_v49 = vadd.f32 %v4065_v8, %v3019_v14 }
 0x990   :  { %v3205_v63 = vpop.f32.mrf.mxu0 }
 0x991   :  { %3285 = vst [vmem:[#allocation2 + $0x8] sm:$0xff] %v3211_v49  ;;  %v3206_v37 = vadd.f32 %v3205_v63, %v3014_v61 }
 0x992   :  { %v4068_v13 = vpop.f32.mrf.mxu0 }
 0x993   :  { %3284 = vst [vmem:[#allocation2] sm:$0xff] %v3206_v37  ;;  %v3221_v45 = vadd.f32 %v4068_v13, %v3029_v48 }
 0x994   :  { %v3215_v15 = vpop.f32.mrf.mxu0 }
 0x995   :  { %3287 = vst [vmem:[#allocation2 + $0x18] sm:$0xff] %v3221_v45  ;;  %v3216_v57 = vadd.f32 %v3215_v15, %v3024_v4 }
 0x996   :  { %v4071_v46 = vpop.f32.mrf.mxu0 }
 0x997   :  { %3286 = vst [vmem:[#allocation2 + $0x10] sm:$0xff] %v3216_v57  ;;  %v3231_v10 = vadd.f32 %v4071_v46, %v3039_v35 }
 0x998   :  { %v3225_v22 = vpop.f32.mrf.mxu0 }
 0x999   :  { %3289 = vst [vmem:[#allocation2 + $0x28] sm:$0xff] %v3231_v10  ;;  %v3226_v28 = vadd.f32 %v3225_v22, %v3034_v43 }
 0x99a   :  { %v4074_v1 = vpop.f32.mrf.mxu0 }
 0x99b   :  { %3288 = vst [vmem:[#allocation2 + $0x20] sm:$0xff] %v3226_v28  ;;  %v3241_v0 = vadd.f32 %v4074_v1, %v3049_v34 }
 0x99c   :  { %v3235_v17 = vpop.f32.mrf.mxu0 }
 0x99d   :  { %3291 = vst [vmem:[#allocation2 + $0x38] sm:$0xff] %v3241_v0  ;;  %v3236_v12 = vadd.f32 %v3235_v17, %v3044_v2 }
 0x99e   :  { %v4077_v51 = vpop.f32.mrf.mxu0 }
 0x99f   :  { %3290 = vst [vmem:[#allocation2 + $0x30] sm:$0xff] %v3236_v12  ;;  %v3251_v30 = vadd.f32 %v4077_v51, %v3059_v60 }
 0x9a0   :  { %v3245_v33 = vpop.f32.mrf.mxu0 }
 0x9a1   :  { %3293 = vst [vmem:[#allocation2 + $0x48] sm:$0xff] %v3251_v30  ;;  %v3246_v56 = vadd.f32 %v3245_v33, %v3054_v55 }
 0x9a2   :  { %v4080_v29 = vpop.f32.mrf.mxu0 }
 0x9a3   :  { %3292 = vst [vmem:[#allocation2 + $0x40] sm:$0xff] %v3246_v56  ;;  %v3261_v25 = vadd.f32 %v4080_v29, %v3069_v50 }
 0x9a4   :  { %v3255_v42 = vpop.f32.mrf.mxu0 }
 0x9a5   :  { %3295 = vst [vmem:[#allocation2 + $0x58] sm:$0xff] %v3261_v25  ;;  %v3256_v40 = vadd.f32 %v3255_v42, %v3064_v32 }
 0x9a6   :  { %v4083_v44 = vpop.f32.mrf.mxu0 }
 0x9a7   :  { %3294 = vst [vmem:[#allocation2 + $0x50] sm:$0xff] %v3256_v40  ;;  %v3271_v20 = vadd.f32 %v4083_v44, %v3079_v62 }
 0x9a8   :  { %v3265_v6 = vpop.f32.mrf.mxu0 }
 0x9a9   :  { %3297 = vst [vmem:[#allocation2 + $0x68] sm:$0xff] %v3271_v20  ;;  %v3266_v5 = vadd.f32 %v3265_v6, %v3074_v52 }
 0x9aa   :  { %v4086_v7 = vpop.f32.mrf.mxu0 }
 0x9ab   :  { %3296 = vst [vmem:[#allocation2 + $0x60] sm:$0xff] %v3266_v5  ;;  %v3281_v38 = vadd.f32 %v4086_v7, %v3089_v9 }
 0x9ac   :  { %v3275_v54 = vpop.f32.mrf.mxu0 }
 0x9ad   :  { %3299 = vst [vmem:[#allocation2 + $0x78] sm:$0xff] %v3281_v38  ;;  %v3276_v26 = vadd.f32 %v3275_v54, %v3084_v3 }
 0x9af   :  { %3298 = vst [vmem:[#allocation2 + $0x70] sm:$0xff] %v3276_v26 }
 0x9b0   :  { %4655 = shalt.err (!%p4652_p4)
}
 0x9b1   :  { %s4669_s12 = smov 128   ;;  %s4670_s13 = smov 8  }
 0x9b2   :  { %3311 = dma.vmem_to_hbm [thread:$0]  %s3306_s10, 2048, %s6320_s6, [#allocation3], %s4669_s12, %s4669_s12, %s4670_s13  }
 0x9b3   :  { %4664 = dma.done.wait [#allocation3], 2048  }
 0x9b4   :  { %4665 = vsyncadd [#allocation3], 4294965248 }
 0x9b5   :  { %3315 = vsyncpa [#allocation3], 1 }

</bundles_post_ra>
